<compile_context>
chip_gen: v7x
topology: tpu7x:2x2x1
jax: 0.10.0
libtpu: 0.0.40
codegen_flags: <defaults>
</compile_context>

<pallas_src>
import functools

import jax
import jax.numpy as jnp
from jax.experimental import pallas as pl
from jax.experimental.pallas import tpu as pltpu

_VMEM_LIMIT = 48 * 1024 * 1024   # safe on v7x (64 MiB physical), generous on v5e/v6e


def _mosaic_params(**kwargs):
    return pltpu.CompilerParams(vmem_limit_bytes=_VMEM_LIMIT, **kwargs)


def _round_up(x, m):
    return (x + m - 1) // m * m


# ---------------------------------------------------------------------------
# BatchNorm batch statistics (training-mode) -> per-channel scale/shift.
# Per-block partial sums on a 'parallel' grid; tiny reduction in JAX glue.
# ---------------------------------------------------------------------------

def _bn_stats_partial_kernel(x_ref, o_ref, *, rows, block_rows):
    x = x_ref[...].astype(jnp.float32)
    if rows % block_rows != 0:                       # statically skipped when aligned
        i = pl.program_id(0)
        ridx = i * block_rows + jax.lax.broadcasted_iota(jnp.int32, x.shape, 0)
        x = jnp.where(ridx < rows, x, 0.0)
    o_ref[...] = jnp.concatenate(
        [jnp.sum(x, axis=0, keepdims=True),
         jnp.sum(x * x, axis=0, keepdims=True)], axis=0)


def _stats_to_scale_shift(sums_2c, count, gamma, beta, eps=1e-5):
    # NOTE: E[x^2] - E[x]^2 in f32; acceptable here, see review correctness notes.
    mean = sums_2c[0] / count
    var = jnp.maximum(sums_2c[1] / count - mean * mean, 0.0)   # biased var (train)
    scale = gamma * jax.lax.rsqrt(var + eps)
    shift = beta - mean * scale
    return scale, shift


def bn_batch_scale_shift(x_nhwc, gamma, beta, *, eps=1e-5):
    n, h, w, c = x_nhwc.shape
    rows, wc = n * h, w * c
    x2 = x_nhwc.reshape(rows, wc)                    # lane-dense presentation
    tb = min(1024, _round_up(rows, 8))
    nblk = pl.cdiv(rows, tb)
    partials = pl.pallas_call(
        functools.partial(_bn_stats_partial_kernel, rows=rows, block_rows=tb),
        out_shape=jax.ShapeDtypeStruct((nblk, 2, wc), jnp.float32),
        grid=(nblk,),
        in_specs=[pl.BlockSpec((tb, wc), lambda i: (i, 0))],
        out_specs=pl.BlockSpec((None, 2, wc), lambda i: (i, 0, 0)),
        compiler_params=_mosaic_params(dimension_semantics=("parallel",)),
    )(x2)
    sums = partials.sum(axis=0).reshape(2, w, c).sum(axis=1)   # (2, C) tiny glue
    return _stats_to_scale_shift(sums, float(n * h * w), gamma, beta, eps)


# ---------------------------------------------------------------------------
# Fused BN+ReLU -> 3x3 stride-1 conv (per-image grid).
#   - BN scale/shift applied to the loaded tile, zero-padded into a VMEM pad
#     scratch, taps packed into one (H*W, 9*cin) patch buffer, one MXU matmul.
#   - optional epilogues: per-image BN stats partials and/or channel mean.
# TODO(synk): add row-halo tiling (manual DMA) for images too large for VMEM.
# ---------------------------------------------------------------------------

def _conv3x3_s1_bn_kernel(x_ref, sc_ref, sh_ref, w_ref, *rest,
                          emit_stats, emit_cmean):
    pad_ref, patch_ref = rest[-2], rest[-1]
    outs = rest[:-2]
    out_ref = outs[0]
    k = 1
    stats_ref = cmean_ref = None
    if emit_stats:
        stats_ref = outs[k]; k += 1
    if emit_cmean:
        cmean_ref = outs[k]; k += 1

    h, w, cout = out_ref.shape
    cin = x_ref.shape[-1]

    y = jnp.maximum(x_ref[...].astype(jnp.float32) * sc_ref[...] + sh_ref[...], 0.0)
    pad_ref[...] = jnp.zeros(pad_ref.shape, pad_ref.dtype)
    pad_ref[1:1 + h, 1:1 + w, :] = y.astype(pad_ref.dtype)

    t = 0
    for dy in range(3):
        for dx in range(3):
            patch_ref[:, t * cin:(t + 1) * cin] = \
                pad_ref[dy:dy + h, dx:dx + w, :].reshape(h * w, cin)
            t += 1

    acc = jnp.dot(patch_ref[...], w_ref[...], preferred_element_type=jnp.float32)
    out_ref[...] = acc.reshape(h, w, cout).astype(out_ref.dtype)
    if emit_stats:
        stats_ref[...] = jnp.concatenate(
            [jnp.sum(acc, axis=0, keepdims=True),
             jnp.sum(acc * acc, axis=0, keepdims=True)], axis=0)
    if emit_cmean:
        cmean_ref[...] = jnp.mean(acc, axis=1, keepdims=True)


def conv3x3_s1_bn_fused(x_nhwc, scale_c, shift_c, w_hwio, *, emit_stats, emit_cmean):
    n, h, w, cin = x_nhwc.shape
    kh, kw, cin2, cout = w_hwio.shape
    assert (kh, kw) == (3, 3) and cin == cin2
    wk = w_hwio.reshape(9 * cin, cout).astype(jnp.bfloat16)
    sc = scale_c.reshape(1, 1, cin).astype(jnp.float32)
    sh = shift_c.reshape(1, 1, cin).astype(jnp.float32)

    out_shapes = [jax.ShapeDtypeStruct((n, h, w, cout), jnp.bfloat16)]
    out_specs = [pl.BlockSpec((None, h, w, cout), lambda i: (i, 0, 0, 0))]
    if emit_stats:
        out_shapes.append(jax.ShapeDtypeStruct((n, 2, cout), jnp.float32))
        out_specs.append(pl.BlockSpec((None, 2, cout), lambda i: (i, 0, 0)))
    if emit_cmean:
        out_shapes.append(jax.ShapeDtypeStruct((n, h * w, 1), jnp.float32))
        out_specs.append(pl.BlockSpec((None, h * w, 1), lambda i: (i, 0, 0)))

    return pl.pallas_call(
        functools.partial(_conv3x3_s1_bn_kernel,
                          emit_stats=emit_stats, emit_cmean=emit_cmean),
        out_shape=tuple(out_shapes),
        grid=(n,),
        in_specs=[pl.BlockSpec((None, h, w, cin), lambda i: (i, 0, 0, 0)),
                  pl.BlockSpec((1, 1, cin), lambda i: (0, 0, 0)),
                  pl.BlockSpec((1, 1, cin), lambda i: (0, 0, 0)),
                  pl.BlockSpec((9 * cin, cout), lambda i: (0, 0))],
        out_specs=tuple(out_specs),
        scratch_shapes=[pltpu.VMEM((h + 2, w + 2, cin), jnp.bfloat16),
                        pltpu.VMEM((h * w, 9 * cin), jnp.bfloat16)],
        compiler_params=_mosaic_params(dimension_semantics=("parallel",)),
    )(x_nhwc, sc, sh, wk)


# ---------------------------------------------------------------------------
# Fused BN+ReLU -> 3x3 stride-2 pad-1 conv (per-image grid).
# Input is the zero-padded raw tensor split into 4 parity sub-images that were
# concatenated along channels in JAX: (n, H/2+1, W/2+1, 4*cin).  Stride-2 taps
# become plain static slices; padded positions are re-zeroed after BN+ReLU.
# Epilogue emits per-image BN2-stats partial sums.
# ---------------------------------------------------------------------------

def _conv3x3_s2_bn_kernel(xs_ref, sc_ref, sh_ref, w_ref, out_ref, stats_ref,
                          patch_ref):
    ho, wo, cout = out_ref.shape
    hh, ww, cin4 = xs_ref.shape
    cin = cin4 // 4

    subs = []
    for p in range(2):
        for q in range(2):
            k = 2 * p + q
            x = xs_ref[:, :, k * cin:(k + 1) * cin].astype(jnp.float32)
            y = jnp.maximum(x * sc_ref[...] + sh_ref[...], 0.0)
            r = jax.lax.broadcasted_iota(jnp.int32, y.shape, 0)
            c = jax.lax.broadcasted_iota(jnp.int32, y.shape, 1)
            pad_r = (r == 0) if p == 0 else (r == hh - 1)
            pad_c = (c == 0) if q == 0 else (c == ww - 1)
            y = jnp.where(jnp.logical_or(pad_r, pad_c), 0.0, y)
            subs.append(y.astype(jnp.bfloat16))

    t = 0
    for dy in range(3):
        for dx in range(3):
            p, q, oy, ox = dy % 2, dx % 2, dy // 2, dx // 2
            patch_ref[:, t * cin:(t + 1) * cin] = \
                subs[2 * p + q][oy:oy + ho, ox:ox + wo, :].reshape(ho * wo, cin)
            t += 1

    acc = jnp.dot(patch_ref[...], w_ref[...], preferred_element_type=jnp.float32)
    out_ref[...] = acc.reshape(ho, wo, cout).astype(out_ref.dtype)
    stats_ref[...] = jnp.concatenate(
        [jnp.sum(acc, axis=0, keepdims=True),
         jnp.sum(acc * acc, axis=0, keepdims=True)], axis=0)


def conv3x3_s2_bn_fused(x_nhwc, scale_c, shift_c, w_hwio):
    n, h, w, cin = x_nhwc.shape
    kh, kw, cin2, cout = w_hwio.shape
    assert (kh, kw) == (3, 3) and cin == cin2
    assert h % 2 == 0 and w % 2 == 0
    ho, wo = h // 2, w // 2
    hh, ww = ho + 1, wo + 1

    xp = jnp.pad(x_nhwc, ((0, 0), (1, 1), (1, 1), (0, 0)))
    subs = [xp[:, p::2, q::2, :] for p in range(2) for q in range(2)]
    xs = jnp.concatenate(subs, axis=-1).astype(jnp.bfloat16)   # (n, hh, ww, 4*cin)

    wk = w_hwio.reshape(9 * cin, cout).astype(jnp.bfloat16)
    sc = scale_c.reshape(1, 1, cin).astype(jnp.float32)
    sh = shift_c.reshape(1, 1, cin).astype(jnp.float32)

    return pl.pallas_call(
        _conv3x3_s2_bn_kernel,
        out_shape=(jax.ShapeDtypeStruct((n, ho, wo, cout), jnp.bfloat16),
                   jax.ShapeDtypeStruct((n, 2, cout), jnp.float32)),
        grid=(n,),
        in_specs=[pl.BlockSpec((None, hh, ww, 4 * cin), lambda i: (i, 0, 0, 0)),
                  pl.BlockSpec((1, 1, cin), lambda i: (0, 0, 0)),
                  pl.BlockSpec((1, 1, cin), lambda i: (0, 0, 0)),
                  pl.BlockSpec((9 * cin, cout), lambda i: (0, 0))],
        out_specs=(pl.BlockSpec((None, ho, wo, cout), lambda i: (i, 0, 0, 0)),
                   pl.BlockSpec((None, 2, cout), lambda i: (i, 0, 0))),
        scratch_shapes=[pltpu.VMEM((ho * wo, 9 * cin), jnp.bfloat16)],
        compiler_params=_mosaic_params(dimension_semantics=("parallel",)),
    )(xs, sc, sh, wk)


# ---------------------------------------------------------------------------
# Shortcut: fused BN+ReLU -> 1x1 matmul (row-tiled, bf16 MXU operands).
# ---------------------------------------------------------------------------

def _bn_relu_matmul_kernel(x_ref, sc_ref, sh_ref, w_ref, o_ref):
    x = x_ref[...].astype(jnp.float32)
    y = jnp.maximum(x * sc_ref[...] + sh_ref[...], 0.0).astype(jnp.bfloat16)
    o_ref[...] = jnp.dot(y, w_ref[...],
                         preferred_element_type=jnp.float32).astype(o_ref.dtype)


def bn_relu_matmul(x2, scale_c, shift_c, w):
    m, cin = x2.shape
    cin2, cout = w.shape
    assert cin == cin2
    tm = min(1024, _round_up(m, 8))
    return pl.pallas_call(
        _bn_relu_matmul_kernel,
        out_shape=jax.ShapeDtypeStruct((m, cout), jnp.float32),
        grid=(pl.cdiv(m, tm),),
        in_specs=[pl.BlockSpec((tm, cin), lambda i: (i, 0)),
                  pl.BlockSpec((1, cin), lambda i: (0, 0)),
                  pl.BlockSpec((1, cin), lambda i: (0, 0)),
                  pl.BlockSpec((cin, cout), lambda i: (0, 0))],
        out_specs=pl.BlockSpec((tm, cout), lambda i: (i, 0)),
        compiler_params=_mosaic_params(dimension_semantics=("parallel",)),
    )(x2, scale_c.reshape(1, cin).astype(jnp.float32),
      shift_c.reshape(1, cin).astype(jnp.float32), w.astype(jnp.bfloat16))


# ---------------------------------------------------------------------------
# RSLayer fused tail (per-image grid, pure VPU stencil on the 1-channel map):
#   5x5 conv -> ReLU -> 3x3 s2 conv -> ReLU -> nearest x2 up -> 3x3 excite conv
#   -> + pre_att (optionally itself a 3x3 s2 att_conv via parity pre-split).
# ---------------------------------------------------------------------------

_W1, _W2, _W3, _B1, _B2, _B3, _WA, _BA = 0, 25, 34, 43, 44, 45, 46, 55


def _rs_attention_kernel(cm_ref, pre_ref, p_ref, att_ref, pada, padb, padc, *,
                         pre_mode):
    ho, wo = att_ref.shape

    # gather[1]: 5x5, pad 2, +bias, ReLU
    pada[...] = jnp.zeros(pada.shape, pada.dtype)
    pada[2:2 + ho, 2:2 + wo] = cm_ref[...]
    y1 = jnp.zeros((ho, wo), jnp.float32)
    for dy in range(5):
        for dx in range(5):
            y1 = y1 + p_ref[_W1 + dy * 5 + dx] * pada[dy:dy + ho, dx:dx + wo]
    y1 = jnp.maximum(y1 + p_ref[_B1], 0.0)

    # gather[3]: 3x3 stride-2 pad-1 conv + ReLU, fused with nearest x2 upsample
    # via a parity-select (no strided memory access).
    # TODO(synk): compute at half resolution + repeat to cut ~4x VALU work.
    padb[...] = jnp.zeros(padb.shape, padb.dtype)
    padb[2:2 + ho, 2:2 + wo] = y1
    tsel = []
    for s in (0, 1):
        row = []
        for t in (0, 1):
            acc = jnp.zeros((ho, wo), jnp.float32)
            for ey in range(3):
                for ex in range(3):
                    acc = acc + p_ref[_W2 + ey * 3 + ex] * \
                        padb[1 - s + ey:1 - s + ey + ho, 1 - t + ex:1 - t + ex + wo]
            row.append(acc)
        tsel.append(row)
    ra = jax.lax.broadcasted_iota(jnp.int32, (ho, wo), 0) % 2
    rb = jax.lax.broadcasted_iota(jnp.int32, (ho, wo), 1) % 2
    y2u = jnp.where(ra == 0,
                    jnp.where(rb == 0, tsel[0][0], tsel[0][1]),
                    jnp.where(rb == 0, tsel[1][0], tsel[1][1]))
    y3 = jnp.maximum(y2u + p_ref[_B2], 0.0)

    # excite: 3x3, pad 1, +bias
    padc[...] = jnp.zeros(padc.shape, padc.dtype)
    padc[1:1 + ho, 1:1 + wo] = y3
    y = jnp.zeros((ho, wo), jnp.float32)
    for dy in range(3):
        for dx in range(3):
            y = y + p_ref[_W3 + dy * 3 + dx] * padc[dy:dy + ho, dx:dx + wo]
    y = y + p_ref[_B3]

    # pre-attention
    if pre_mode == "conv":          # 1->1 3x3 s2 pad1 conv via parity sub-images
        pre = jnp.zeros((ho, wo), jnp.float32)
        for dy in range(3):
            for dx in range(3):
                pp, qq, oy, ox = dy % 2, dx % 2, dy // 2, dx // 2
                pre = pre + p_ref[_WA + dy * 3 + dx] * \
                    pre_ref[2 * pp + qq, oy:oy + ho, ox:ox + wo]
        pre = pre + p_ref[_BA]
    else:
        pre = pre_ref[...]

    att_ref[...] = y + pre


def rs_attention(cm, pre, rs_params, *, pre_mode):
    n, ho, wo = cm.shape
    assert ho % 2 == 0 and wo % 2 == 0, "RSLayer down/upsample needs even dims"
    if pre_mode == "conv":
        _, _, hh, ww = pre.shape
        pre_spec = pl.BlockSpec((None, 4, hh, ww), lambda i: (i, 0, 0, 0))
    else:
        pre_spec = pl.BlockSpec((None, ho, wo), lambda i: (i, 0, 0))
    return pl.pallas_call(
        functools.partial(_rs_attention_kernel, pre_mode=pre_mode),
        out_shape=jax.ShapeDtypeStruct((n, ho, wo), jnp.float32),
        grid=(n,),
        in_specs=[pl.BlockSpec((None, ho, wo), lambda i: (i, 0, 0)),
                  pre_spec,
                  pl.BlockSpec(memory_space=pltpu.MemorySpace.SMEM)],
        out_specs=pl.BlockSpec((None, ho, wo), lambda i: (i, 0, 0)),
        scratch_shapes=[pltpu.VMEM((ho + 4, wo + 4), jnp.float32),
                        pltpu.VMEM((ho + 4, wo + 4), jnp.float32),
                        pltpu.VMEM((ho + 2, wo + 2), jnp.float32)],
        compiler_params=_mosaic_params(dimension_semantics=("parallel",)),
    )(cm.astype(jnp.float32), pre.astype(jnp.float32),
      rs_params.astype(jnp.float32))


def parity_stack_2d(x_nhw):
    n, h, w = x_nhw.shape
    assert h % 2 == 0 and w % 2 == 0
    xp = jnp.pad(x_nhw, ((0, 0), (1, 1), (1, 1)))
    subs = [xp[:, p::2, q::2] for p in range(2) for q in range(2)]
    return jnp.stack(subs, axis=1)                    # (n, 4, h/2+1, w/2+1)


# ---------------------------------------------------------------------------
# Gate (sigmoid attention) * conv2 output + shortcut residual (row-tiled).
# ---------------------------------------------------------------------------

def _gate_residual_kernel(x_ref, att_ref, short_ref, o_ref):
    gate = jax.nn.sigmoid(att_ref[...])
    o_ref[...] = x_ref[...].astype(jnp.float32) * gate + short_ref[...]


def gate_residual(x2, att_col, short2):
    m, c = x2.shape
    tm = min(1024, _round_up(m, 8))
    return pl.pallas_call(
        _gate_residual_kernel,
        out_shape=jax.ShapeDtypeStruct((m, c), jnp.float32),
        grid=(pl.cdiv(m, tm),),
        in_specs=[pl.BlockSpec((tm, c), lambda i: (i, 0)),
                  pl.BlockSpec((tm, 1), lambda i: (i, 0)),
                  pl.BlockSpec((tm, c), lambda i: (i, 0))],
        out_specs=pl.BlockSpec((tm, c), lambda i: (i, 0)),
        compiler_params=_mosaic_params(dimension_semantics=("parallel",)),
    )(x2, att_col, short2)


# ---------------------------------------------------------------------------
# Parameters (deterministic synthetic init — no checkpoint loading)
# ---------------------------------------------------------------------------

def init_params(key, in_planes, planes, stride):
    ks = jax.random.split(key, 8)

    def conv_w(k, kh, kw, cin, cout):
        fan = kh * kw * cin
        return jax.random.normal(k, (kh, kw, cin, cout), jnp.float32) / jnp.sqrt(fan)

    p = {
        "bn1_gamma": jnp.ones((in_planes,), jnp.float32),
        "bn1_beta": jnp.zeros((in_planes,), jnp.float32),
        "conv1_w": conv_w(ks[0], 3, 3, in_planes, planes),
        "bn2_gamma": jnp.ones((planes,), jnp.float32),
        "bn2_beta": jnp.zeros((planes,), jnp.float32),
        "conv2_w": conv_w(ks[1], 3, 3, planes, planes),
        # RSLayer.gather / excite: 1->1 channel stencils
        "gather1_w": jax.random.normal(ks[2], (5, 5), jnp.float32) / 5.0,
        "gather1_b": jnp.array(0.01, jnp.float32),
        "gather2_w": jax.random.normal(ks[3], (3, 3), jnp.float32) / 3.0,
        "gather2_b": jnp.array(0.02, jnp.float32),
        "excite_w": jax.random.normal(ks[4], (3, 3), jnp.float32) / 3.0,
        "excite_b": jnp.array(0.03, jnp.float32),
    }
    if stride != 1 or in_planes != planes:                  # PreActBlock.shortcut
        p["shortcut_w"] = conv_w(ks[5], 1, 1, in_planes, planes)
    if in_planes != planes:                                 # RSLayer.att_conv
        p["att_conv_w"] = conv_w(ks[6], 3, 3, 1, 1)
        p["att_conv_b"] = jnp.array([0.04], jnp.float32)
    # RSLayer.avg_pool and RSLayer.fc are declared in __init__ but unused in
    # forward(), so they are intentionally not materialised.
    return p


# ---------------------------------------------------------------------------
# PreActBlock forward
# ---------------------------------------------------------------------------

def preact_block_forward(params, x0_nchw, x1_nchw, *, stride):
    # NCHW<->NHWC transposes kept only at the module boundary (PyTorch interface).
    x0 = jnp.transpose(x0_nchw, (0, 2, 3, 1)).astype(jnp.float32)
    n, h, w, cin = x0.shape
    planes = params["conv1_w"].shape[-1]

    # BN1 batch statistics (training-mode) -> per-channel scale / shift.
    bn1_scale, bn1_shift = bn_batch_scale_shift(
        x0, params["bn1_gamma"], params["bn1_beta"])

    # Shortcut: fused BN1+ReLU -> 1x1 (strided) conv.
    if "shortcut_w" in params:
        # TODO(synk): fold the spatial subsample into the kernel's index_map.
        xs = x0[:, ::stride, ::stride, :]
        ns, hos, wos, _ = xs.shape
        shortcut2 = bn_relu_matmul(xs.reshape(ns * hos * wos, cin),
                                   bn1_scale, bn1_shift,
                                   params["shortcut_w"].reshape(cin, planes))
    else:
        shortcut2 = x0.reshape(n * h * w, cin)            # cin == planes here

    # conv1 with fused BN1+ReLU; epilogue emits BN2 partial stats.
    if stride == 1:
        out1, bn2_part = conv3x3_s1_bn_fused(
            x0, bn1_scale, bn1_shift, params["conv1_w"],
            emit_stats=True, emit_cmean=False)
    else:
        out1, bn2_part = conv3x3_s2_bn_fused(
            x0, bn1_scale, bn1_shift, params["conv1_w"])
    nb, ho, wo, _ = out1.shape

    bn2_scale, bn2_shift = _stats_to_scale_shift(
        bn2_part.sum(axis=0), float(nb * ho * wo),
        params["bn2_gamma"], params["bn2_beta"])

    # conv2 with fused BN2+ReLU; epilogue emits the RSLayer channel mean.
    out2, cmean = conv3x3_s1_bn_fused(
        out1, bn2_scale, bn2_shift, params["conv2_w"],
        emit_stats=False, emit_cmean=True)
    cm = cmean.reshape(nb, ho, wo)

    # -------- RSLayer --------
    if x1_nchw is None:
        pre = jnp.zeros((nb, ho, wo), jnp.float32)
        pre_mode = "direct"
    else:
        x1 = jnp.transpose(x1_nchw, (0, 2, 3, 1)).astype(jnp.float32)[..., 0]
        if "att_conv_w" in params:
            pre = parity_stack_2d(x1)                     # stride-2 conv folded in-kernel
            pre_mode = "conv"
        else:
            pre = x1
            pre_mode = "direct"

    rs_list = [params["gather1_w"].reshape(-1),
               params["gather2_w"].reshape(-1),
               params["excite_w"].reshape(-1),
               jnp.stack([params["gather1_b"], params["gather2_b"],
                          params["excite_b"]])]
    if pre_mode == "conv":
        rs_list += [params["att_conv_w"].reshape(-1),
                    params["att_conv_b"].reshape(-1)]
    rs_params = jnp.concatenate(rs_list)

    att = rs_attention(cm, pre, rs_params, pre_mode=pre_mode)     # (N, Ho, Wo)

    m, c = nb * ho * wo, planes
    out_x2 = gate_residual(out2.reshape(m, c), att.reshape(m, 1),
                           shortcut2.astype(jnp.float32))

    out_x = jnp.transpose(out_x2.reshape(nb, ho, wo, c), (0, 3, 1, 2))
    out_att = att[:, None, :, :]                                  # NCHW, C=1
    return {0: out_x, 1: out_att}


# ---------------------------------------------------------------------------
# Demo
# ---------------------------------------------------------------------------

if __name__ == "__main__":
    N, IN_PLANES, PLANES, H, W, STRIDE = 2, 4, 8, 16, 16, 2

    key = jax.random.PRNGKey(0)
    k_x0, k_x1, k_p = jax.random.split(key, 3)
    x0 = jax.random.normal(k_x0, (N, IN_PLANES, H, W), jnp.float32)   # x[0]
    x1 = jax.random.normal(k_x1, (N, 1, H, W), jnp.float32)           # x[1]

    params = init_params(k_p, IN_PLANES, PLANES, STRIDE)

    fwd = jax.jit(functools.partial(preact_block_forward, stride=STRIDE))
    out = fwd(params, x0, x1)
    jax.block_until_ready(out[0])
    jax.block_until_ready(out[1])
    assert out[0].shape == (N, PLANES, H // STRIDE, W // STRIDE)
    assert out[1].shape == (N, 1, H // STRIDE, W // STRIDE)
    print("KERNEL_OK")
</pallas_src>

<mosaic_0001>
module attributes {stable_mosaic.version = 11 : i64} {
  func.func @_bn_stats_partial_kernel(%arg0: i32, %arg1: memref<32x64xf32, #tpu.memory_space<vmem>>, %arg2: memref<1x2x64xf32, #tpu.memory_space<vmem>>) attributes {dimension_semantics = [#tpu.dimension_semantics<parallel>], iteration_bounds = array<i64: 1>, scalar_prefetch = 0 : i64, scratch_operands = 0 : i64, tpu.core_type = #tpu.core_type<tc>, window_params = [{transform_indices = @transform_0, window_bounds = array<i64: 32, 64>}, {transform_indices = @transform_1, window_bounds = array<i64: 1, 2, 64>}]} {
    %c0 = arith.constant 0 : index
    %c0_0 = arith.constant 0 : index
    %0 = vector.load %arg1[%c0, %c0_0] : memref<32x64xf32, #tpu.memory_space<vmem>>, vector<32x64xf32>
    %cst = arith.constant dense<0.000000e+00> : vector<64xf32>
    %1 = vector.multi_reduction <add>, %0, %cst [0] : vector<32x64xf32> to vector<64xf32>
    %2 = vector.shape_cast %1 : vector<64xf32> to vector<1x64xf32>
    %3 = arith.mulf %0, %0 : vector<32x64xf32>
    %cst_1 = arith.constant dense<0.000000e+00> : vector<64xf32>
    %4 = vector.multi_reduction <add>, %3, %cst_1 [0] : vector<32x64xf32> to vector<64xf32>
    %5 = vector.shape_cast %4 : vector<64xf32> to vector<1x64xf32>
    %6 = tpu.concatenate %2, %5 in 0 : vector<1x64xf32>, vector<1x64xf32> -> vector<2x64xf32>
    %c0_2 = arith.constant 0 : index
    %c0_3 = arith.constant 0 : index
    %c0_4 = arith.constant 0 : index
    %7 = vector.load %arg2[%c0_2, %c0_3, %c0_4] : memref<1x2x64xf32, #tpu.memory_space<vmem>>, vector<1x2x64xf32>
    %8 = vector.shape_cast %7 : vector<1x2x64xf32> to vector<2x64xf32>
    %9 = vector.shape_cast %6 : vector<2x64xf32> to vector<1x2x64xf32>
    tpu.vector_store %arg2[%c0_2, %c0_3, %c0_4], %9 {strides = array<i32>} : memref<1x2x64xf32, #tpu.memory_space<vmem>>, vector<1x2x64xf32>,
    return
  }
  func.func @transform_0(%arg0: i32) -> (i32, i32) {
    %c0_i32 = arith.constant 0 : i32
    %c0_i32_0 = arith.constant 0 : i32
    return %arg0, %c0_i32 : i32, i32
  }
  func.func @transform_1(%arg0: i32) -> (i32, i32, i32) {
    %c0_i32 = arith.constant 0 : i32
    %c0_i32_0 = arith.constant 0 : i32
    %c0_i32_1 = arith.constant 0 : i32
    return %arg0, %c0_i32, %c0_i32_0 : i32, i32, i32
  }
}

module attributes {stable_mosaic.version = 11 : i64} {
  func.func @_bn_relu_matmul_kernel(%arg0: i32, %arg1: memref<128x4xf32, #tpu.memory_space<vmem>>, %arg2: memref<1x4xf32, #tpu.memory_space<vmem>>, %arg3: memref<1x4xf32, #tpu.memory_space<vmem>>, %arg4: memref<4x8xbf16, #tpu.memory_space<vmem>>, %arg5: memref<128x8xf32, #tpu.memory_space<vmem>>) attributes {dimension_semantics = [#tpu.dimension_semantics<parallel>], iteration_bounds = array<i64: 1>, scalar_prefetch = 0 : i64, scratch_operands = 0 : i64, tpu.core_type = #tpu.core_type<tc>, window_params = [{transform_indices = @transform_0, window_bounds = array<i64: 128, 4>}, {pipeline_mode = #tpu.pipeline_mode<synchronous>, transform_indices = @transform_1, window_bounds = array<i64: 1, 4>}, {pipeline_mode = #tpu.pipeline_mode<synchronous>, transform_indices = @transform_2, window_bounds = array<i64: 1, 4>}, {pipeline_mode = #tpu.pipeline_mode<synchronous>, transform_indices = @transform_3, window_bounds = array<i64: 4, 8>}, {transform_indices = @transform_4, window_bounds = array<i64: 128, 8>}]} {
    %c0 = arith.constant 0 : index
    %c0_0 = arith.constant 0 : index
    %0 = vector.load %arg1[%c0, %c0_0] : memref<128x4xf32, #tpu.memory_space<vmem>>, vector<128x4xf32>
    %c0_1 = arith.constant 0 : index
    %c0_2 = arith.constant 0 : index
    %1 = vector.load %arg2[%c0_1, %c0_2] : memref<1x4xf32, #tpu.memory_space<vmem>>, vector<1x4xf32>
    %2 = vector.broadcast %1 : vector<1x4xf32> to vector<128x4xf32>
    %3 = arith.mulf %0, %2 : vector<128x4xf32>
    %c0_3 = arith.constant 0 : index
    %c0_4 = arith.constant 0 : index
    %4 = vector.load %arg3[%c0_3, %c0_4] : memref<1x4xf32, #tpu.memory_space<vmem>>, vector<1x4xf32>
    %5 = vector.broadcast %4 : vector<1x4xf32> to vector<128x4xf32>
    %6 = arith.addf %3, %5 : vector<128x4xf32>
    %cst = arith.constant 0.000000e+00 : f32
    %7 = vector.broadcast %cst : f32 to vector<128x4xf32>
    %8 = arith.maximumf %6, %7 : vector<128x4xf32>
    %9 = arith.truncf %8 : vector<128x4xf32> to vector<128x4xbf16>
    %c0_5 = arith.constant 0 : index
    %c0_6 = arith.constant 0 : index
    %10 = vector.load %arg4[%c0_5, %c0_6] : memref<4x8xbf16, #tpu.memory_space<vmem>>, vector<4x8xbf16>
    %cst_7 = arith.constant dense<0.000000e+00> : vector<128x8xf32>
    %11 = tpu.matmul %9, %10, %cst_7 {dimension_numbers = #tpu.dot_dimension_numbers<[1], [0], [0], [1], [0, 0, 1, 1], [], []>} : vector<128x4xbf16>, vector<4x8xbf16>, vector<128x8xf32> -> vector<128x8xf32>
    %c0_8 = arith.constant 0 : index
    %c0_9 = arith.constant 0 : index
    %12 = vector.load %arg5[%c0_8, %c0_9] : memref<128x8xf32, #tpu.memory_space<vmem>>, vector<128x8xf32>
    tpu.vector_store %arg5[%c0_8, %c0_9], %11 {strides = array<i32>} : memref<128x8xf32, #tpu.memory_space<vmem>>, vector<128x8xf32>,
    return
  }
  func.func @transform_0(%arg0: i32) -> (i32, i32) {
    %c0_i32 = arith.constant 0 : i32
    %c0_i32_0 = arith.constant 0 : i32
    return %arg0, %c0_i32 : i32, i32
  }
  func.func @transform_1(%arg0: i32) -> (i32, i32) {
    %c0_i32 = arith.constant 0 : i32
    %c0_i32_0 = arith.constant 0 : i32
    %c0_i32_1 = arith.constant 0 : i32
    return %c0_i32, %c0_i32_0 : i32, i32
  }
  func.func @transform_2(%arg0: i32) -> (i32, i32) {
    %c0_i32 = arith.constant 0 : i32
    %c0_i32_0 = arith.constant 0 : i32
    %c0_i32_1 = arith.constant 0 : i32
    return %c0_i32, %c0_i32_0 : i32, i32
  }
  func.func @transform_3(%arg0: i32) -> (i32, i32) {
    %c0_i32 = arith.constant 0 : i32
    %c0_i32_0 = arith.constant 0 : i32
    %c0_i32_1 = arith.constant 0 : i32
    return %c0_i32, %c0_i32_0 : i32, i32
  }
  func.func @transform_4(%arg0: i32) -> (i32, i32) {
    %c0_i32 = arith.constant 0 : i32
    %c0_i32_0 = arith.constant 0 : i32
    return %arg0, %c0_i32 : i32, i32
  }
}

module attributes {stable_mosaic.version = 11 : i64} {
  func.func @_conv3x3_s2_bn_kernel(%arg0: i32, %arg1: memref<1x9x9x16xbf16, #tpu.memory_space<vmem>>, %arg2: memref<1x1x4xf32, #tpu.memory_space<vmem>>, %arg3: memref<1x1x4xf32, #tpu.memory_space<vmem>>, %arg4: memref<36x8xbf16, #tpu.memory_space<vmem>>, %arg5: memref<1x8x8x8xbf16, #tpu.memory_space<vmem>>, %arg6: memref<1x2x8xf32, #tpu.memory_space<vmem>>, %arg7: memref<64x36xbf16, #tpu.memory_space<vmem>>) attributes {dimension_semantics = [#tpu.dimension_semantics<parallel>], iteration_bounds = array<i64: 2>, scalar_prefetch = 0 : i64, scratch_operands = 1 : i64, tpu.core_type = #tpu.core_type<tc>, window_params = [{transform_indices = @transform_0, window_bounds = array<i64: 1, 9, 9, 16>}, {pipeline_mode = #tpu.pipeline_mode<synchronous>, transform_indices = @transform_1, window_bounds = array<i64: 1, 1, 4>}, {pipeline_mode = #tpu.pipeline_mode<synchronous>, transform_indices = @transform_2, window_bounds = array<i64: 1, 1, 4>}, {pipeline_mode = #tpu.pipeline_mode<synchronous>, transform_indices = @transform_3, window_bounds = array<i64: 36, 8>}, {transform_indices = @transform_4, window_bounds = array<i64: 1, 8, 8, 8>}, {transform_indices = @transform_5, window_bounds = array<i64: 1, 2, 8>}]} {
    %c0 = arith.constant 0 : index
    %c0_0 = arith.constant 0 : index
    %c0_1 = arith.constant 0 : index
    %c0_2 = arith.constant 0 : index
    %0 = vector.load %arg1[%c0, %c0_0, %c0_1, %c0_2] : memref<1x9x9x16xbf16, #tpu.memory_space<vmem>>, vector<1x9x9x4xbf16>
    %1 = vector.shape_cast %0 : vector<1x9x9x4xbf16> to vector<9x9x4xbf16>
    %2 = arith.extf %1 : vector<9x9x4xbf16> to vector<9x9x4xf32>
    %c0_3 = arith.constant 0 : index
    %c0_4 = arith.constant 0 : index
    %c0_5 = arith.constant 0 : index
    %3 = vector.load %arg2[%c0_3, %c0_4, %c0_5] : memref<1x1x4xf32, #tpu.memory_space<vmem>>, vector<1x1x4xf32>
    %4 = vector.broadcast %3 : vector<1x1x4xf32> to vector<9x9x4xf32>
    %5 = arith.mulf %2, %4 : vector<9x9x4xf32>
    %c0_6 = arith.constant 0 : index
    %c0_7 = arith.constant 0 : index
    %c0_8 = arith.constant 0 : index
    %6 = vector.load %arg3[%c0_6, %c0_7, %c0_8] : memref<1x1x4xf32, #tpu.memory_space<vmem>>, vector<1x1x4xf32>
    %7 = vector.broadcast %6 : vector<1x1x4xf32> to vector<9x9x4xf32>
    %8 = arith.addf %5, %7 : vector<9x9x4xf32>
    %cst = arith.constant 0.000000e+00 : f32
    %9 = vector.broadcast %cst : f32 to vector<9x9x4xf32>
    %10 = arith.maximumf %8, %9 : vector<9x9x4xf32>
    %11 = tpu.iota {dimensions = array<i32: 0>} : vector<9x9x4xi32>
    %12 = tpu.iota {dimensions = array<i32: 1>} : vector<9x9x4xi32>
    %c0_i32 = arith.constant 0 : i32
    %13 = vector.broadcast %c0_i32 : i32 to vector<9x9x4xi32>
    %14 = arith.cmpi eq, %11, %13 : vector<9x9x4xi32>
    %c0_i32_9 = arith.constant 0 : i32
    %15 = vector.broadcast %c0_i32_9 : i32 to vector<9x9x4xi32>
    %16 = arith.cmpi eq, %12, %15 : vector<9x9x4xi32>
    %17 = arith.ori %14, %16 : vector<9x9x4xi1>
    %cst_10 = arith.constant 0.000000e+00 : f32
    %18 = vector.broadcast %cst_10 : f32 to vector<9x9x4xf32>
    %19 = arith.select %17, %18, %10 : vector<9x9x4xi1>, vector<9x9x4xf32>
    %20 = arith.truncf %19 : vector<9x9x4xf32> to vector<9x9x4xbf16>
    %c0_11 = arith.constant 0 : index
    %c0_12 = arith.constant 0 : index
    %c0_13 = arith.constant 0 : index
    %c4 = arith.constant 4 : index
    %21 = vector.load %arg1[%c0_11, %c0_12, %c0_13, %c4] : memref<1x9x9x16xbf16, #tpu.memory_space<vmem>>, vector<1x9x9x4xbf16>
    %22 = vector.shape_cast %21 : vector<1x9x9x4xbf16> to vector<9x9x4xbf16>
    %23 = arith.extf %22 : vector<9x9x4xbf16> to vector<9x9x4xf32>
    %c0_14 = arith.constant 0 : index
    %c0_15 = arith.constant 0 : index
    %c0_16 = arith.constant 0 : index
    %24 = vector.load %arg2[%c0_14, %c0_15, %c0_16] : memref<1x1x4xf32, #tpu.memory_space<vmem>>, vector<1x1x4xf32>
    %25 = vector.broadcast %24 : vector<1x1x4xf32> to vector<9x9x4xf32>
    %26 = arith.mulf %23, %25 : vector<9x9x4xf32>
    %c0_17 = arith.constant 0 : index
    %c0_18 = arith.constant 0 : index
    %c0_19 = arith.constant 0 : index
    %27 = vector.load %arg3[%c0_17, %c0_18, %c0_19] : memref<1x1x4xf32, #tpu.memory_space<vmem>>, vector<1x1x4xf32>
    %28 = vector.broadcast %27 : vector<1x1x4xf32> to vector<9x9x4xf32>
    %29 = arith.addf %26, %28 : vector<9x9x4xf32>
    %cst_20 = arith.constant 0.000000e+00 : f32
    %30 = vector.broadcast %cst_20 : f32 to vector<9x9x4xf32>
    %31 = arith.maximumf %29, %30 : vector<9x9x4xf32>
    %32 = tpu.iota {dimensions = array<i32: 0>} : vector<9x9x4xi32>
    %33 = tpu.iota {dimensions = array<i32: 1>} : vector<9x9x4xi32>
    %c0_i32_21 = arith.constant 0 : i32
    %34 = vector.broadcast %c0_i32_21 : i32 to vector<9x9x4xi32>
    %35 = arith.cmpi eq, %32, %34 : vector<9x9x4xi32>
    %c8_i32 = arith.constant 8 : i32
    %36 = vector.broadcast %c8_i32 : i32 to vector<9x9x4xi32>
    %37 = arith.cmpi eq, %33, %36 : vector<9x9x4xi32>
    %38 = arith.ori %35, %37 : vector<9x9x4xi1>
    %cst_22 = arith.constant 0.000000e+00 : f32
    %39 = vector.broadcast %cst_22 : f32 to vector<9x9x4xf32>
    %40 = arith.select %38, %39, %31 : vector<9x9x4xi1>, vector<9x9x4xf32>
    %41 = arith.truncf %40 : vector<9x9x4xf32> to vector<9x9x4xbf16>
    %c0_23 = arith.constant 0 : index
    %c0_24 = arith.constant 0 : index
    %c0_25 = arith.constant 0 : index
    %c8 = arith.constant 8 : index
    %42 = vector.load %arg1[%c0_23, %c0_24, %c0_25, %c8] : memref<1x9x9x16xbf16, #tpu.memory_space<vmem>>, vector<1x9x9x4xbf16>
    %43 = vector.shape_cast %42 : vector<1x9x9x4xbf16> to vector<9x9x4xbf16>
    %44 = arith.extf %43 : vector<9x9x4xbf16> to vector<9x9x4xf32>
    %c0_26 = arith.constant 0 : index
    %c0_27 = arith.constant 0 : index
    %c0_28 = arith.constant 0 : index
    %45 = vector.load %arg2[%c0_26, %c0_27, %c0_28] : memref<1x1x4xf32, #tpu.memory_space<vmem>>, vector<1x1x4xf32>
    %46 = vector.broadcast %45 : vector<1x1x4xf32> to vector<9x9x4xf32>
    %47 = arith.mulf %44, %46 : vector<9x9x4xf32>
    %c0_29 = arith.constant 0 : index
    %c0_30 = arith.constant 0 : index
    %c0_31 = arith.constant 0 : index
    %48 = vector.load %arg3[%c0_29, %c0_30, %c0_31] : memref<1x1x4xf32, #tpu.memory_space<vmem>>, vector<1x1x4xf32>
    %49 = vector.broadcast %48 : vector<1x1x4xf32> to vector<9x9x4xf32>
    %50 = arith.addf %47, %49 : vector<9x9x4xf32>
    %cst_32 = arith.constant 0.000000e+00 : f32
    %51 = vector.broadcast %cst_32 : f32 to vector<9x9x4xf32>
    %52 = arith.maximumf %50, %51 : vector<9x9x4xf32>
    %53 = tpu.iota {dimensions = array<i32: 0>} : vector<9x9x4xi32>
    %54 = tpu.iota {dimensions = array<i32: 1>} : vector<9x9x4xi32>
    %c8_i32_33 = arith.constant 8 : i32
    %55 = vector.broadcast %c8_i32_33 : i32 to vector<9x9x4xi32>
    %56 = arith.cmpi eq, %53, %55 : vector<9x9x4xi32>
    %c0_i32_34 = arith.constant 0 : i32
    %57 = vector.broadcast %c0_i32_34 : i32 to vector<9x9x4xi32>
    %58 = arith.cmpi eq, %54, %57 : vector<9x9x4xi32>
    %59 = arith.ori %56, %58 : vector<9x9x4xi1>
    %cst_35 = arith.constant 0.000000e+00 : f32
    %60 = vector.broadcast %cst_35 : f32 to vector<9x9x4xf32>
    %61 = arith.select %59, %60, %52 : vector<9x9x4xi1>, vector<9x9x4xf32>
    %62 = arith.truncf %61 : vector<9x9x4xf32> to vector<9x9x4xbf16>
    %c0_36 = arith.constant 0 : index
    %c0_37 = arith.constant 0 : index
    %c0_38 = arith.constant 0 : index
    %c12 = arith.constant 12 : index
    %63 = vector.load %arg1[%c0_36, %c0_37, %c0_38, %c12] : memref<1x9x9x16xbf16, #tpu.memory_space<vmem>>, vector<1x9x9x4xbf16>
    %64 = vector.shape_cast %63 : vector<1x9x9x4xbf16> to vector<9x9x4xbf16>
    %65 = arith.extf %64 : vector<9x9x4xbf16> to vector<9x9x4xf32>
    %c0_39 = arith.constant 0 : index
    %c0_40 = arith.constant 0 : index
    %c0_41 = arith.constant 0 : index
    %66 = vector.load %arg2[%c0_39, %c0_40, %c0_41] : memref<1x1x4xf32, #tpu.memory_space<vmem>>, vector<1x1x4xf32>
    %67 = vector.broadcast %66 : vector<1x1x4xf32> to vector<9x9x4xf32>
    %68 = arith.mulf %65, %67 : vector<9x9x4xf32>
    %c0_42 = arith.constant 0 : index
    %c0_43 = arith.constant 0 : index
    %c0_44 = arith.constant 0 : index
    %69 = vector.load %arg3[%c0_42, %c0_43, %c0_44] : memref<1x1x4xf32, #tpu.memory_space<vmem>>, vector<1x1x4xf32>
    %70 = vector.broadcast %69 : vector<1x1x4xf32> to vector<9x9x4xf32>
    %71 = arith.addf %68, %70 : vector<9x9x4xf32>
    %cst_45 = arith.constant 0.000000e+00 : f32
    %72 = vector.broadcast %cst_45 : f32 to vector<9x9x4xf32>
    %73 = arith.maximumf %71, %72 : vector<9x9x4xf32>
    %74 = tpu.iota {dimensions = array<i32: 0>} : vector<9x9x4xi32>
    %75 = tpu.iota {dimensions = array<i32: 1>} : vector<9x9x4xi32>
    %c8_i32_46 = arith.constant 8 : i32
    %76 = vector.broadcast %c8_i32_46 : i32 to vector<9x9x4xi32>
    %77 = arith.cmpi eq, %74, %76 : vector<9x9x4xi32>
    %c8_i32_47 = arith.constant 8 : i32
    %78 = vector.broadcast %c8_i32_47 : i32 to vector<9x9x4xi32>
    %79 = arith.cmpi eq, %75, %78 : vector<9x9x4xi32>
    %80 = arith.ori %77, %79 : vector<9x9x4xi1>
    %cst_48 = arith.constant 0.000000e+00 : f32
    %81 = vector.broadcast %cst_48 : f32 to vector<9x9x4xf32>
    %82 = arith.select %80, %81, %73 : vector<9x9x4xi1>, vector<9x9x4xf32>
    %83 = arith.truncf %82 : vector<9x9x4xf32> to vector<9x9x4xbf16>
    %84 = vector.extract_strided_slice %20 {offsets = [0, 0, 0], sizes = [8, 8, 4], strides = [1, 1, 1]} : vector<9x9x4xbf16> to vector<8x8x4xbf16>
    %85 = vector.shape_cast %84 : vector<8x8x4xbf16> to vector<64x4xbf16>
    %c0_49 = arith.constant 0 : index
    %c0_50 = arith.constant 0 : index
    %86 = vector.load %arg7[%c0_49, %c0_50] : memref<64x36xbf16, #tpu.memory_space<vmem>>, vector<64x4xbf16>
    tpu.vector_store %arg7[%c0_49, %c0_50], %85 {strides = array<i32>} : memref<64x36xbf16, #tpu.memory_space<vmem>>, vector<64x4xbf16>,
    %87 = vector.extract_strided_slice %41 {offsets = [0, 0, 0], sizes = [8, 8, 4], strides = [1, 1, 1]} : vector<9x9x4xbf16> to vector<8x8x4xbf16>
    %88 = vector.shape_cast %87 : vector<8x8x4xbf16> to vector<64x4xbf16>
    %c0_51 = arith.constant 0 : index
    %c4_52 = arith.constant 4 : index
    %89 = vector.load %arg7[%c0_51, %c4_52] : memref<64x36xbf16, #tpu.memory_space<vmem>>, vector<64x4xbf16>
    tpu.vector_store %arg7[%c0_51, %c4_52], %88 {strides = array<i32>} : memref<64x36xbf16, #tpu.memory_space<vmem>>, vector<64x4xbf16>,
    %90 = vector.extract_strided_slice %20 {offsets = [0, 1, 0], sizes = [8, 8, 4], strides = [1, 1, 1]} : vector<9x9x4xbf16> to vector<8x8x4xbf16>
    %91 = vector.shape_cast %90 : vector<8x8x4xbf16> to vector<64x4xbf16>
    %c0_53 = arith.constant 0 : index
    %c8_54 = arith.constant 8 : index
    %92 = vector.load %arg7[%c0_53, %c8_54] : memref<64x36xbf16, #tpu.memory_space<vmem>>, vector<64x4xbf16>
    tpu.vector_store %arg7[%c0_53, %c8_54], %91 {strides = array<i32>} : memref<64x36xbf16, #tpu.memory_space<vmem>>, vector<64x4xbf16>,
    %93 = vector.extract_strided_slice %62 {offsets = [0, 0, 0], sizes = [8, 8, 4], strides = [1, 1, 1]} : vector<9x9x4xbf16> to vector<8x8x4xbf16>
    %94 = vector.shape_cast %93 : vector<8x8x4xbf16> to vector<64x4xbf16>
    %c0_55 = arith.constant 0 : index
    %c12_56 = arith.constant 12 : index
    %95 = vector.load %arg7[%c0_55, %c12_56] : memref<64x36xbf16, #tpu.memory_space<vmem>>, vector<64x4xbf16>
    tpu.vector_store %arg7[%c0_55, %c12_56], %94 {strides = array<i32>} : memref<64x36xbf16, #tpu.memory_space<vmem>>, vector<64x4xbf16>,
    %96 = vector.extract_strided_slice %83 {offsets = [0, 0, 0], sizes = [8, 8, 4], strides = [1, 1, 1]} : vector<9x9x4xbf16> to vector<8x8x4xbf16>
    %97 = vector.shape_cast %96 : vector<8x8x4xbf16> to vector<64x4xbf16>
    %c0_57 = arith.constant 0 : index
    %c16 = arith.constant 16 : index
    %98 = vector.load %arg7[%c0_57, %c16] : memref<64x36xbf16, #tpu.memory_space<vmem>>, vector<64x4xbf16>
    tpu.vector_store %arg7[%c0_57, %c16], %97 {strides = array<i32>} : memref<64x36xbf16, #tpu.memory_space<vmem>>, vector<64x4xbf16>,
    %99 = vector.extract_strided_slice %62 {offsets = [0, 1, 0], sizes = [8, 8, 4], strides = [1, 1, 1]} : vector<9x9x4xbf16> to vector<8x8x4xbf16>
    %100 = vector.shape_cast %99 : vector<8x8x4xbf16> to vector<64x4xbf16>
    %c0_58 = arith.constant 0 : index
    %c20 = arith.constant 20 : index
    %101 = vector.load %arg7[%c0_58, %c20] : memref<64x36xbf16, #tpu.memory_space<vmem>>, vector<64x4xbf16>
    tpu.vector_store %arg7[%c0_58, %c20], %100 {strides = array<i32>} : memref<64x36xbf16, #tpu.memory_space<vmem>>, vector<64x4xbf16>,
    %102 = vector.extract_strided_slice %20 {offsets = [1, 0, 0], sizes = [8, 8, 4], strides = [1, 1, 1]} : vector<9x9x4xbf16> to vector<8x8x4xbf16>
    %103 = vector.shape_cast %102 : vector<8x8x4xbf16> to vector<64x4xbf16>
    %c0_59 = arith.constant 0 : index
    %c24 = arith.constant 24 : index
    %104 = vector.load %arg7[%c0_59, %c24] : memref<64x36xbf16, #tpu.memory_space<vmem>>, vector<64x4xbf16>
    tpu.vector_store %arg7[%c0_59, %c24], %103 {strides = array<i32>} : memref<64x36xbf16, #tpu.memory_space<vmem>>, vector<64x4xbf16>,
    %105 = vector.extract_strided_slice %41 {offsets = [1, 0, 0], sizes = [8, 8, 4], strides = [1, 1, 1]} : vector<9x9x4xbf16> to vector<8x8x4xbf16>
    %106 = vector.shape_cast %105 : vector<8x8x4xbf16> to vector<64x4xbf16>
    %c0_60 = arith.constant 0 : index
    %c28 = arith.constant 28 : index
    %107 = vector.load %arg7[%c0_60, %c28] : memref<64x36xbf16, #tpu.memory_space<vmem>>, vector<64x4xbf16>
    tpu.vector_store %arg7[%c0_60, %c28], %106 {strides = array<i32>} : memref<64x36xbf16, #tpu.memory_space<vmem>>, vector<64x4xbf16>,
    %108 = vector.extract_strided_slice %20 {offsets = [1, 1, 0], sizes = [8, 8, 4], strides = [1, 1, 1]} : vector<9x9x4xbf16> to vector<8x8x4xbf16>
    %109 = vector.shape_cast %108 : vector<8x8x4xbf16> to vector<64x4xbf16>
    %c0_61 = arith.constant 0 : index
    %c32 = arith.constant 32 : index
    %110 = vector.load %arg7[%c0_61, %c32] : memref<64x36xbf16, #tpu.memory_space<vmem>>, vector<64x4xbf16>
    tpu.vector_store %arg7[%c0_61, %c32], %109 {strides = array<i32>} : memref<64x36xbf16, #tpu.memory_space<vmem>>, vector<64x4xbf16>,
    %c0_62 = arith.constant 0 : index
    %c0_63 = arith.constant 0 : index
    %111 = vector.load %arg7[%c0_62, %c0_63] : memref<64x36xbf16, #tpu.memory_space<vmem>>, vector<64x36xbf16>
    %c0_64 = arith.constant 0 : index
    %c0_65 = arith.constant 0 : index
    %112 = vector.load %arg4[%c0_64, %c0_65] : memref<36x8xbf16, #tpu.memory_space<vmem>>, vector<36x8xbf16>
    %cst_66 = arith.constant dense<0.000000e+00> : vector<64x8xf32>
    %113 = tpu.matmul %111, %112, %cst_66 {dimension_numbers = #tpu.dot_dimension_numbers<[1], [0], [0], [1], [0, 0, 1, 1], [], []>} : vector<64x36xbf16>, vector<36x8xbf16>, vector<64x8xf32> -> vector<64x8xf32>
    %114 = vector.shape_cast %113 : vector<64x8xf32> to vector<8x8x8xf32>
    %115 = arith.truncf %114 : vector<8x8x8xf32> to vector<8x8x8xbf16>
    %c0_67 = arith.constant 0 : index
    %c0_68 = arith.constant 0 : index
    %c0_69 = arith.constant 0 : index
    %c0_70 = arith.constant 0 : index
    %116 = vector.load %arg5[%c0_67, %c0_68, %c0_69, %c0_70] : memref<1x8x8x8xbf16, #tpu.memory_space<vmem>>, vector<1x8x8x8xbf16>
    %117 = vector.shape_cast %116 : vector<1x8x8x8xbf16> to vector<8x8x8xbf16>
    %118 = vector.shape_cast %115 : vector<8x8x8xbf16> to vector<1x8x8x8xbf16>
    tpu.vector_store %arg5[%c0_67, %c0_68, %c0_69, %c0_70], %118 {strides = array<i32>} : memref<1x8x8x8xbf16, #tpu.memory_space<vmem>>, vector<1x8x8x8xbf16>,
    %cst_71 = arith.constant dense<0.000000e+00> : vector<8xf32>
    %119 = vector.multi_reduction <add>, %113, %cst_71 [0] : vector<64x8xf32> to vector<8xf32>
    %120 = vector.shape_cast %119 : vector<8xf32> to vector<1x8xf32>
    %121 = arith.mulf %113, %113 : vector<64x8xf32>
    %cst_72 = arith.constant dense<0.000000e+00> : vector<8xf32>
    %122 = vector.multi_reduction <add>, %121, %cst_72 [0] : vector<64x8xf32> to vector<8xf32>
    %123 = vector.shape_cast %122 : vector<8xf32> to vector<1x8xf32>
    %124 = tpu.concatenate %120, %123 in 0 : vector<1x8xf32>, vector<1x8xf32> -> vector<2x8xf32>
    %c0_73 = arith.constant 0 : index
    %c0_74 = arith.constant 0 : index
    %c0_75 = arith.constant 0 : index
    %125 = vector.load %arg6[%c0_73, %c0_74, %c0_75] : memref<1x2x8xf32, #tpu.memory_space<vmem>>, vector<1x2x8xf32>
    %126 = vector.shape_cast %125 : vector<1x2x8xf32> to vector<2x8xf32>
    %127 = vector.shape_cast %124 : vector<2x8xf32> to vector<1x2x8xf32>
    tpu.vector_store %arg6[%c0_73, %c0_74, %c0_75], %127 {strides = array<i32>} : memref<1x2x8xf32, #tpu.memory_space<vmem>>, vector<1x2x8xf32>,
    return
  }
  func.func @transform_0(%arg0: i32) -> (i32, i32, i32, i32) {
    %c0_i32 = arith.constant 0 : i32
    %c0_i32_0 = arith.constant 0 : i32
    %c0_i32_1 = arith.constant 0 : i32
    %c0_i32_2 = arith.constant 0 : i32
    return %arg0, %c0_i32, %c0_i32_0, %c0_i32_1 : i32, i32, i32, i32
  }
  func.func @transform_1(%arg0: i32) -> (i32, i32, i32) {
    %c0_i32 = arith.constant 0 : i32
    %c0_i32_0 = arith.constant 0 : i32
    %c0_i32_1 = arith.constant 0 : i32
    %c0_i32_2 = arith.constant 0 : i32
    return %c0_i32, %c0_i32_0, %c0_i32_1 : i32, i32, i32
  }
  func.func @transform_2(%arg0: i32) -> (i32, i32, i32) {
    %c0_i32 = arith.constant 0 : i32
    %c0_i32_0 = arith.constant 0 : i32
    %c0_i32_1 = arith.constant 0 : i32
    %c0_i32_2 = arith.constant 0 : i32
    return %c0_i32, %c0_i32_0, %c0_i32_1 : i32, i32, i32
  }
  func.func @transform_3(%arg0: i32) -> (i32, i32) {
    %c0_i32 = arith.constant 0 : i32
    %c0_i32_0 = arith.constant 0 : i32
    %c0_i32_1 = arith.constant 0 : i32
    return %c0_i32, %c0_i32_0 : i32, i32
  }
  func.func @transform_4(%arg0: i32) -> (i32, i32, i32, i32) {
    %c0_i32 = arith.constant 0 : i32
    %c0_i32_0 = arith.constant 0 : i32
    %c0_i32_1 = arith.constant 0 : i32
    %c0_i32_2 = arith.constant 0 : i32
    return %arg0, %c0_i32, %c0_i32_0, %c0_i32_1 : i32, i32, i32, i32
  }
  func.func @transform_5(%arg0: i32) -> (i32, i32, i32) {
    %c0_i32 = arith.constant 0 : i32
    %c0_i32_0 = arith.constant 0 : i32
    %c0_i32_1 = arith.constant 0 : i32
    return %arg0, %c0_i32, %c0_i32_0 : i32, i32, i32
  }
}

module attributes {stable_mosaic.version = 11 : i64} {
  func.func @_conv3x3_s1_bn_kernel(%arg0: i32, %arg1: memref<1x8x8x8xbf16, #tpu.memory_space<vmem>>, %arg2: memref<1x1x8xf32, #tpu.memory_space<vmem>>, %arg3: memref<1x1x8xf32, #tpu.memory_space<vmem>>, %arg4: memref<72x8xbf16, #tpu.memory_space<vmem>>, %arg5: memref<1x8x8x8xbf16, #tpu.memory_space<vmem>>, %arg6: memref<1x64x1xf32, #tpu.memory_space<vmem>>, %arg7: memref<10x10x8xbf16, #tpu.memory_space<vmem>>, %arg8: memref<64x72xbf16, #tpu.memory_space<vmem>>) attributes {dimension_semantics = [#tpu.dimension_semantics<parallel>], iteration_bounds = array<i64: 2>, scalar_prefetch = 0 : i64, scratch_operands = 2 : i64, tpu.core_type = #tpu.core_type<tc>, window_params = [{transform_indices = @transform_0, window_bounds = array<i64: 1, 8, 8, 8>}, {pipeline_mode = #tpu.pipeline_mode<synchronous>, transform_indices = @transform_1, window_bounds = array<i64: 1, 1, 8>}, {pipeline_mode = #tpu.pipeline_mode<synchronous>, transform_indices = @transform_2, window_bounds = array<i64: 1, 1, 8>}, {pipeline_mode = #tpu.pipeline_mode<synchronous>, transform_indices = @transform_3, window_bounds = array<i64: 72, 8>}, {transform_indices = @transform_4, window_bounds = array<i64: 1, 8, 8, 8>}, {transform_indices = @transform_5, window_bounds = array<i64: 1, 64, 1>}]} {
    %c0 = arith.constant 0 : index
    %c0_0 = arith.constant 0 : index
    %c0_1 = arith.constant 0 : index
    %c0_2 = arith.constant 0 : index
    %0 = vector.load %arg1[%c0, %c0_0, %c0_1, %c0_2] : memref<1x8x8x8xbf16, #tpu.memory_space<vmem>>, vector<1x8x8x8xbf16>
    %1 = vector.shape_cast %0 : vector<1x8x8x8xbf16> to vector<8x8x8xbf16>
    %2 = arith.extf %1 : vector<8x8x8xbf16> to vector<8x8x8xf32>
    %c0_3 = arith.constant 0 : index
    %c0_4 = arith.constant 0 : index
    %c0_5 = arith.constant 0 : index
    %3 = vector.load %arg2[%c0_3, %c0_4, %c0_5] : memref<1x1x8xf32, #tpu.memory_space<vmem>>, vector<1x1x8xf32>
    %4 = vector.broadcast %3 : vector<1x1x8xf32> to vector<8x8x8xf32>
    %5 = arith.mulf %2, %4 : vector<8x8x8xf32>
    %c0_6 = arith.constant 0 : index
    %c0_7 = arith.constant 0 : index
    %c0_8 = arith.constant 0 : index
    %6 = vector.load %arg3[%c0_6, %c0_7, %c0_8] : memref<1x1x8xf32, #tpu.memory_space<vmem>>, vector<1x1x8xf32>
    %7 = vector.broadcast %6 : vector<1x1x8xf32> to vector<8x8x8xf32>
    %8 = arith.addf %5, %7 : vector<8x8x8xf32>
    %cst = arith.constant 0.000000e+00 : f32
    %9 = vector.broadcast %cst : f32 to vector<8x8x8xf32>
    %10 = arith.maximumf %8, %9 : vector<8x8x8xf32>
    %cst_9 = arith.constant 0.000000e+00 : bf16
    %11 = vector.broadcast %cst_9 : bf16 to vector<10x10x8xbf16>
    %c0_10 = arith.constant 0 : index
    %c0_11 = arith.constant 0 : index
    %c0_12 = arith.constant 0 : index
    %12 = vector.load %arg7[%c0_10, %c0_11, %c0_12] : memref<10x10x8xbf16, #tpu.memory_space<vmem>>, vector<10x10x8xbf16>
    tpu.vector_store %arg7[%c0_10, %c0_11, %c0_12], %11 {strides = array<i32>} : memref<10x10x8xbf16, #tpu.memory_space<vmem>>, vector<10x10x8xbf16>,
    %13 = arith.truncf %10 : vector<8x8x8xf32> to vector<8x8x8xbf16>
    %c1 = arith.constant 1 : index
    %c1_13 = arith.constant 1 : index
    %c0_14 = arith.constant 0 : index
    %14 = vector.load %arg7[%c1, %c1_13, %c0_14] : memref<10x10x8xbf16, #tpu.memory_space<vmem>>, vector<8x8x8xbf16>
    tpu.vector_store %arg7[%c1, %c1_13, %c0_14], %13 {strides = array<i32>} : memref<10x10x8xbf16, #tpu.memory_space<vmem>>, vector<8x8x8xbf16>,
    %c0_15 = arith.constant 0 : index
    %c0_16 = arith.constant 0 : index
    %c0_17 = arith.constant 0 : index
    %15 = vector.load %arg7[%c0_15, %c0_16, %c0_17] : memref<10x10x8xbf16, #tpu.memory_space<vmem>>, vector<8x8x8xbf16>
    %16 = vector.shape_cast %15 : vector<8x8x8xbf16> to vector<64x8xbf16>
    %c0_18 = arith.constant 0 : index
    %c0_19 = arith.constant 0 : index
    %17 = vector.load %arg8[%c0_18, %c0_19] : memref<64x72xbf16, #tpu.memory_space<vmem>>, vector<64x8xbf16>
    tpu.vector_store %arg8[%c0_18, %c0_19], %16 {strides = array<i32>} : memref<64x72xbf16, #tpu.memory_space<vmem>>, vector<64x8xbf16>,
    %c0_20 = arith.constant 0 : index
    %c1_21 = arith.constant 1 : index
    %c0_22 = arith.constant 0 : index
    %18 = vector.load %arg7[%c0_20, %c1_21, %c0_22] : memref<10x10x8xbf16, #tpu.memory_space<vmem>>, vector<8x8x8xbf16>
    %19 = vector.shape_cast %18 : vector<8x8x8xbf16> to vector<64x8xbf16>
    %c0_23 = arith.constant 0 : index
    %c8 = arith.constant 8 : index
    %20 = vector.load %arg8[%c0_23, %c8] : memref<64x72xbf16, #tpu.memory_space<vmem>>, vector<64x8xbf16>
    tpu.vector_store %arg8[%c0_23, %c8], %19 {strides = array<i32>} : memref<64x72xbf16, #tpu.memory_space<vmem>>, vector<64x8xbf16>,
    %c0_24 = arith.constant 0 : index
    %c2 = arith.constant 2 : index
    %c0_25 = arith.constant 0 : index
    %21 = vector.load %arg7[%c0_24, %c2, %c0_25] : memref<10x10x8xbf16, #tpu.memory_space<vmem>>, vector<8x8x8xbf16>
    %22 = vector.shape_cast %21 : vector<8x8x8xbf16> to vector<64x8xbf16>
    %c0_26 = arith.constant 0 : index
    %c16 = arith.constant 16 : index
    %23 = vector.load %arg8[%c0_26, %c16] : memref<64x72xbf16, #tpu.memory_space<vmem>>, vector<64x8xbf16>
    tpu.vector_store %arg8[%c0_26, %c16], %22 {strides = array<i32>} : memref<64x72xbf16, #tpu.memory_space<vmem>>, vector<64x8xbf16>,
    %c1_27 = arith.constant 1 : index
    %c0_28 = arith.constant 0 : index
    %c0_29 = arith.constant 0 : index
    %24 = vector.load %arg7[%c1_27, %c0_28, %c0_29] : memref<10x10x8xbf16, #tpu.memory_space<vmem>>, vector<8x8x8xbf16>
    %25 = vector.shape_cast %24 : vector<8x8x8xbf16> to vector<64x8xbf16>
    %c0_30 = arith.constant 0 : index
    %c24 = arith.constant 24 : index
    %26 = vector.load %arg8[%c0_30, %c24] : memref<64x72xbf16, #tpu.memory_space<vmem>>, vector<64x8xbf16>
    tpu.vector_store %arg8[%c0_30, %c24], %25 {strides = array<i32>} : memref<64x72xbf16, #tpu.memory_space<vmem>>, vector<64x8xbf16>,
    %c1_31 = arith.constant 1 : index
    %c1_32 = arith.constant 1 : index
    %c0_33 = arith.constant 0 : index
    %27 = vector.load %arg7[%c1_31, %c1_32, %c0_33] : memref<10x10x8xbf16, #tpu.memory_space<vmem>>, vector<8x8x8xbf16>
    %28 = vector.shape_cast %27 : vector<8x8x8xbf16> to vector<64x8xbf16>
    %c0_34 = arith.constant 0 : index
    %c32 = arith.constant 32 : index
    %29 = vector.load %arg8[%c0_34, %c32] : memref<64x72xbf16, #tpu.memory_space<vmem>>, vector<64x8xbf16>
    tpu.vector_store %arg8[%c0_34, %c32], %28 {strides = array<i32>} : memref<64x72xbf16, #tpu.memory_space<vmem>>, vector<64x8xbf16>,
    %c1_35 = arith.constant 1 : index
    %c2_36 = arith.constant 2 : index
    %c0_37 = arith.constant 0 : index
    %30 = vector.load %arg7[%c1_35, %c2_36, %c0_37] : memref<10x10x8xbf16, #tpu.memory_space<vmem>>, vector<8x8x8xbf16>
    %31 = vector.shape_cast %30 : vector<8x8x8xbf16> to vector<64x8xbf16>
    %c0_38 = arith.constant 0 : index
    %c40 = arith.constant 40 : index
    %32 = vector.load %arg8[%c0_38, %c40] : memref<64x72xbf16, #tpu.memory_space<vmem>>, vector<64x8xbf16>
    tpu.vector_store %arg8[%c0_38, %c40], %31 {strides = array<i32>} : memref<64x72xbf16, #tpu.memory_space<vmem>>, vector<64x8xbf16>,
    %c2_39 = arith.constant 2 : index
    %c0_40 = arith.constant 0 : index
    %c0_41 = arith.constant 0 : index
    %33 = vector.load %arg7[%c2_39, %c0_40, %c0_41] : memref<10x10x8xbf16, #tpu.memory_space<vmem>>, vector<8x8x8xbf16>
    %34 = vector.shape_cast %33 : vector<8x8x8xbf16> to vector<64x8xbf16>
    %c0_42 = arith.constant 0 : index
    %c48 = arith.constant 48 : index
    %35 = vector.load %arg8[%c0_42, %c48] : memref<64x72xbf16, #tpu.memory_space<vmem>>, vector<64x8xbf16>
    tpu.vector_store %arg8[%c0_42, %c48], %34 {strides = array<i32>} : memref<64x72xbf16, #tpu.memory_space<vmem>>, vector<64x8xbf16>,
    %c2_43 = arith.constant 2 : index
    %c1_44 = arith.constant 1 : index
    %c0_45 = arith.constant 0 : index
    %36 = vector.load %arg7[%c2_43, %c1_44, %c0_45] : memref<10x10x8xbf16, #tpu.memory_space<vmem>>, vector<8x8x8xbf16>
    %37 = vector.shape_cast %36 : vector<8x8x8xbf16> to vector<64x8xbf16>
    %c0_46 = arith.constant 0 : index
    %c56 = arith.constant 56 : index
    %38 = vector.load %arg8[%c0_46, %c56] : memref<64x72xbf16, #tpu.memory_space<vmem>>, vector<64x8xbf16>
    tpu.vector_store %arg8[%c0_46, %c56], %37 {strides = array<i32>} : memref<64x72xbf16, #tpu.memory_space<vmem>>, vector<64x8xbf16>,
    %c2_47 = arith.constant 2 : index
    %c2_48 = arith.constant 2 : index
    %c0_49 = arith.constant 0 : index
    %39 = vector.load %arg7[%c2_47, %c2_48, %c0_49] : memref<10x10x8xbf16, #tpu.memory_space<vmem>>, vector<8x8x8xbf16>
    %40 = vector.shape_cast %39 : vector<8x8x8xbf16> to vector<64x8xbf16>
    %c0_50 = arith.constant 0 : index
    %c64 = arith.constant 64 : index
    %41 = vector.load %arg8[%c0_50, %c64] : memref<64x72xbf16, #tpu.memory_space<vmem>>, vector<64x8xbf16>
    tpu.vector_store %arg8[%c0_50, %c64], %40 {strides = array<i32>} : memref<64x72xbf16, #tpu.memory_space<vmem>>, vector<64x8xbf16>,
    %c0_51 = arith.constant 0 : index
    %c0_52 = arith.constant 0 : index
    %42 = vector.load %arg8[%c0_51, %c0_52] : memref<64x72xbf16, #tpu.memory_space<vmem>>, vector<64x72xbf16>
    %c0_53 = arith.constant 0 : index
    %c0_54 = arith.constant 0 : index
    %43 = vector.load %arg4[%c0_53, %c0_54] : memref<72x8xbf16, #tpu.memory_space<vmem>>, vector<72x8xbf16>
    %cst_55 = arith.constant dense<0.000000e+00> : vector<64x8xf32>
    %44 = tpu.matmul %42, %43, %cst_55 {dimension_numbers = #tpu.dot_dimension_numbers<[1], [0], [0], [1], [0, 0, 1, 1], [], []>} : vector<64x72xbf16>, vector<72x8xbf16>, vector<64x8xf32> -> vector<64x8xf32>
    %45 = vector.shape_cast %44 : vector<64x8xf32> to vector<8x8x8xf32>
    %46 = arith.truncf %45 : vector<8x8x8xf32> to vector<8x8x8xbf16>
    %c0_56 = arith.constant 0 : index
    %c0_57 = arith.constant 0 : index
    %c0_58 = arith.constant 0 : index
    %c0_59 = arith.constant 0 : index
    %47 = vector.load %arg5[%c0_56, %c0_57, %c0_58, %c0_59] : memref<1x8x8x8xbf16, #tpu.memory_space<vmem>>, vector<1x8x8x8xbf16>
    %48 = vector.shape_cast %47 : vector<1x8x8x8xbf16> to vector<8x8x8xbf16>
    %49 = vector.shape_cast %46 : vector<8x8x8xbf16> to vector<1x8x8x8xbf16>
    tpu.vector_store %arg5[%c0_56, %c0_57, %c0_58, %c0_59], %49 {strides = array<i32>} : memref<1x8x8x8xbf16, #tpu.memory_space<vmem>>, vector<1x8x8x8xbf16>,
    %cst_60 = arith.constant dense<0.000000e+00> : vector<64xf32>
    %50 = vector.multi_reduction <add>, %44, %cst_60 [1] : vector<64x8xf32> to vector<64xf32>
    %51 = vector.shape_cast %50 : vector<64xf32> to vector<64x1xf32>
    %cst_61 = arith.constant 8.000000e+00 : f32
    %52 = vector.broadcast %cst_61 : f32 to vector<64x1xf32>
    %53 = arith.divf %51, %52 : vector<64x1xf32>
    %c0_62 = arith.constant 0 : index
    %c0_63 = arith.constant 0 : index
    %c0_64 = arith.constant 0 : index
    %54 = vector.load %arg6[%c0_62, %c0_63, %c0_64] : memref<1x64x1xf32, #tpu.memory_space<vmem>>, vector<1x64x1xf32>
    %55 = vector.shape_cast %54 : vector<1x64x1xf32> to vector<64x1xf32>
    %56 = vector.shape_cast %53 : vector<64x1xf32> to vector<1x64x1xf32>
    tpu.vector_store %arg6[%c0_62, %c0_63, %c0_64], %56 {strides = array<i32>} : memref<1x64x1xf32, #tpu.memory_space<vmem>>, vector<1x64x1xf32>,
    return
  }
  func.func @transform_0(%arg0: i32) -> (i32, i32, i32, i32) {
    %c0_i32 = arith.constant 0 : i32
    %c0_i32_0 = arith.constant 0 : i32
    %c0_i32_1 = arith.constant 0 : i32
    %c0_i32_2 = arith.constant 0 : i32
    return %arg0, %c0_i32, %c0_i32_0, %c0_i32_1 : i32, i32, i32, i32
  }
  func.func @transform_1(%arg0: i32) -> (i32, i32, i32) {
    %c0_i32 = arith.constant 0 : i32
    %c0_i32_0 = arith.constant 0 : i32
    %c0_i32_1 = arith.constant 0 : i32
    %c0_i32_2 = arith.constant 0 : i32
    return %c0_i32, %c0_i32_0, %c0_i32_1 : i32, i32, i32
  }
  func.func @transform_2(%arg0: i32) -> (i32, i32, i32) {
    %c0_i32 = arith.constant 0 : i32
    %c0_i32_0 = arith.constant 0 : i32
    %c0_i32_1 = arith.constant 0 : i32
    %c0_i32_2 = arith.constant 0 : i32
    return %c0_i32, %c0_i32_0, %c0_i32_1 : i32, i32, i32
  }
  func.func @transform_3(%arg0: i32) -> (i32, i32) {
    %c0_i32 = arith.constant 0 : i32
    %c0_i32_0 = arith.constant 0 : i32
    %c0_i32_1 = arith.constant 0 : i32
    return %c0_i32, %c0_i32_0 : i32, i32
  }
  func.func @transform_4(%arg0: i32) -> (i32, i32, i32, i32) {
    %c0_i32 = arith.constant 0 : i32
    %c0_i32_0 = arith.constant 0 : i32
    %c0_i32_1 = arith.constant 0 : i32
    %c0_i32_2 = arith.constant 0 : i32
    return %arg0, %c0_i32, %c0_i32_0, %c0_i32_1 : i32, i32, i32, i32
  }
  func.func @transform_5(%arg0: i32) -> (i32, i32, i32) {
    %c0_i32 = arith.constant 0 : i32
    %c0_i32_0 = arith.constant 0 : i32
    %c0_i32_1 = arith.constant 0 : i32
    return %arg0, %c0_i32, %c0_i32_0 : i32, i32, i32
  }
}

module attributes {stable_mosaic.version = 11 : i64} {
  func.func @_gate_residual_kernel(%arg0: i32, %arg1: memref<128x8xbf16, #tpu.memory_space<vmem>>, %arg2: memref<128x1xf32, #tpu.memory_space<vmem>>, %arg3: memref<128x8xf32, #tpu.memory_space<vmem>>, %arg4: memref<128x8xf32, #tpu.memory_space<vmem>>) attributes {dimension_semantics = [#tpu.dimension_semantics<parallel>], iteration_bounds = array<i64: 1>, scalar_prefetch = 0 : i64, scratch_operands = 0 : i64, tpu.core_type = #tpu.core_type<tc>, window_params = [{transform_indices = @transform_0, window_bounds = array<i64: 128, 8>}, {transform_indices = @transform_1, window_bounds = array<i64: 128, 1>}, {transform_indices = @transform_2, window_bounds = array<i64: 128, 8>}, {transform_indices = @transform_3, window_bounds = array<i64: 128, 8>}]} {
    %c0 = arith.constant 0 : index
    %c0_0 = arith.constant 0 : index
    %0 = vector.load %arg2[%c0, %c0_0] : memref<128x1xf32, #tpu.memory_space<vmem>>, vector<128x1xf32>
    %1 = arith.negf %0 : vector<128x1xf32>
    %2 = math.exp %1 : vector<128x1xf32>
    %cst = arith.constant 1.000000e+00 : f32
    %3 = vector.broadcast %cst : f32 to vector<128x1xf32>
    %4 = arith.addf %3, %2 : vector<128x1xf32>
    %5 = arith.divf %3, %4 : vector<128x1xf32>
    %c0_1 = arith.constant 0 : index
    %c0_2 = arith.constant 0 : index
    %6 = vector.load %arg1[%c0_1, %c0_2] : memref<128x8xbf16, #tpu.memory_space<vmem>>, vector<128x8xbf16>
    %7 = arith.extf %6 : vector<128x8xbf16> to vector<128x8xf32>
    %8 = vector.broadcast %5 : vector<128x1xf32> to vector<128x8xf32>
    %9 = arith.mulf %7, %8 : vector<128x8xf32>
    %c0_3 = arith.constant 0 : index
    %c0_4 = arith.constant 0 : index
    %10 = vector.load %arg3[%c0_3, %c0_4] : memref<128x8xf32, #tpu.memory_space<vmem>>, vector<128x8xf32>
    %11 = arith.addf %9, %10 : vector<128x8xf32>
    %c0_5 = arith.constant 0 : index
    %c0_6 = arith.constant 0 : index
    %12 = vector.load %arg4[%c0_5, %c0_6] : memref<128x8xf32, #tpu.memory_space<vmem>>, vector<128x8xf32>
    tpu.vector_store %arg4[%c0_5, %c0_6], %11 {strides = array<i32>} : memref<128x8xf32, #tpu.memory_space<vmem>>, vector<128x8xf32>,
    return
  }
  func.func @transform_0(%arg0: i32) -> (i32, i32) {
    %c0_i32 = arith.constant 0 : i32
    %c0_i32_0 = arith.constant 0 : i32
    return %arg0, %c0_i32 : i32, i32
  }
  func.func @transform_1(%arg0: i32) -> (i32, i32) {
    %c0_i32 = arith.constant 0 : i32
    %c0_i32_0 = arith.constant 0 : i32
    return %arg0, %c0_i32 : i32, i32
  }
  func.func @transform_2(%arg0: i32) -> (i32, i32) {
    %c0_i32 = arith.constant 0 : i32
    %c0_i32_0 = arith.constant 0 : i32
    return %arg0, %c0_i32 : i32, i32
  }
  func.func @transform_3(%arg0: i32) -> (i32, i32) {
    %c0_i32 = arith.constant 0 : i32
    %c0_i32_0 = arith.constant 0 : i32
    return %arg0, %c0_i32 : i32, i32
  }
}

module attributes {stable_mosaic.version = 11 : i64} {
  func.func @_rs_attention_kernel(%arg0: i32, %arg1: memref<1x8x8xf32, #tpu.memory_space<vmem>>, %arg2: memref<1x4x9x9xf32, #tpu.memory_space<vmem>>, %arg3: memref<56xf32, #tpu.memory_space<smem>>, %arg4: memref<1x8x8xf32, #tpu.memory_space<vmem>>, %arg5: memref<12x12xf32, #tpu.memory_space<vmem>>, %arg6: memref<12x12xf32, #tpu.memory_space<vmem>>, %arg7: memref<10x10xf32, #tpu.memory_space<vmem>>) attributes {dimension_semantics = [#tpu.dimension_semantics<parallel>], iteration_bounds = array<i64: 2>, scalar_prefetch = 0 : i64, scratch_operands = 3 : i64, tpu.core_type = #tpu.core_type<tc>, window_params = [{transform_indices = @transform_0, window_bounds = array<i64: 1, 8, 8>}, {transform_indices = @transform_1, window_bounds = array<i64: 1, 4, 9, 9>}, {transform_indices = @transform_2, window_bounds = array<i64: 56>}, {transform_indices = @transform_3, window_bounds = array<i64: 1, 8, 8>}]} {
    %cst = arith.constant 0.000000e+00 : f32
    %0 = vector.broadcast %cst : f32 to vector<12x12xf32>
    %c0 = arith.constant 0 : index
    %c0_0 = arith.constant 0 : index
    %1 = vector.load %arg5[%c0, %c0_0] : memref<12x12xf32, #tpu.memory_space<vmem>>, vector<12x12xf32>
    tpu.vector_store %arg5[%c0, %c0_0], %0 {strides = array<i32>} : memref<12x12xf32, #tpu.memory_space<vmem>>, vector<12x12xf32>,
    %c0_1 = arith.constant 0 : index
    %c0_2 = arith.constant 0 : index
    %c0_3 = arith.constant 0 : index
    %2 = vector.load %arg1[%c0_1, %c0_2, %c0_3] : memref<1x8x8xf32, #tpu.memory_space<vmem>>, vector<1x8x8xf32>
    %3 = vector.shape_cast %2 : vector<1x8x8xf32> to vector<8x8xf32>
    %c2 = arith.constant 2 : index
    %c2_4 = arith.constant 2 : index
    %4 = vector.load %arg5[%c2, %c2_4] : memref<12x12xf32, #tpu.memory_space<vmem>>, vector<8x8xf32>
    tpu.vector_store %arg5[%c2, %c2_4], %3 {strides = array<i32>} : memref<12x12xf32, #tpu.memory_space<vmem>>, vector<8x8xf32>,
    %cst_5 = arith.constant 0.000000e+00 : f32
    %5 = vector.broadcast %cst_5 : f32 to vector<8x8xf32>
    %c0_6 = arith.constant 0 : index
    %6 = memref.load %arg3[%c0_6] : memref<56xf32, #tpu.memory_space<smem>>
    %c0_7 = arith.constant 0 : index
    %c0_8 = arith.constant 0 : index
    %7 = vector.load %arg5[%c0_7, %c0_8] : memref<12x12xf32, #tpu.memory_space<vmem>>, vector<8x8xf32>
    %8 = vector.broadcast %6 : f32 to vector<8x8xf32>
    %9 = arith.mulf %8, %7 : vector<8x8xf32>
    %10 = arith.addf %5, %9 : vector<8x8xf32>
    %c1 = arith.constant 1 : index
    %11 = memref.load %arg3[%c1] : memref<56xf32, #tpu.memory_space<smem>>
    %c0_9 = arith.constant 0 : index
    %c1_10 = arith.constant 1 : index
    %12 = vector.load %arg5[%c0_9, %c1_10] : memref<12x12xf32, #tpu.memory_space<vmem>>, vector<8x8xf32>
    %13 = vector.broadcast %11 : f32 to vector<8x8xf32>
    %14 = arith.mulf %13, %12 : vector<8x8xf32>
    %15 = arith.addf %10, %14 : vector<8x8xf32>
    %c2_11 = arith.constant 2 : index
    %16 = memref.load %arg3[%c2_11] : memref<56xf32, #tpu.memory_space<smem>>
    %c0_12 = arith.constant 0 : index
    %c2_13 = arith.constant 2 : index
    %17 = vector.load %arg5[%c0_12, %c2_13] : memref<12x12xf32, #tpu.memory_space<vmem>>, vector<8x8xf32>
    %18 = vector.broadcast %16 : f32 to vector<8x8xf32>
    %19 = arith.mulf %18, %17 : vector<8x8xf32>
    %20 = arith.addf %15, %19 : vector<8x8xf32>
    %c3 = arith.constant 3 : index
    %21 = memref.load %arg3[%c3] : memref<56xf32, #tpu.memory_space<smem>>
    %c0_14 = arith.constant 0 : index
    %c3_15 = arith.constant 3 : index
    %22 = vector.load %arg5[%c0_14, %c3_15] : memref<12x12xf32, #tpu.memory_space<vmem>>, vector<8x8xf32>
    %23 = vector.broadcast %21 : f32 to vector<8x8xf32>
    %24 = arith.mulf %23, %22 : vector<8x8xf32>
    %25 = arith.addf %20, %24 : vector<8x8xf32>
    %c4 = arith.constant 4 : index
    %26 = memref.load %arg3[%c4] : memref<56xf32, #tpu.memory_space<smem>>
    %c0_16 = arith.constant 0 : index
    %c4_17 = arith.constant 4 : index
    %27 = vector.load %arg5[%c0_16, %c4_17] : memref<12x12xf32, #tpu.memory_space<vmem>>, vector<8x8xf32>
    %28 = vector.broadcast %26 : f32 to vector<8x8xf32>
    %29 = arith.mulf %28, %27 : vector<8x8xf32>
    %30 = arith.addf %25, %29 : vector<8x8xf32>
    %c5 = arith.constant 5 : index
    %31 = memref.load %arg3[%c5] : memref<56xf32, #tpu.memory_space<smem>>
    %c1_18 = arith.constant 1 : index
    %c0_19 = arith.constant 0 : index
    %32 = vector.load %arg5[%c1_18, %c0_19] : memref<12x12xf32, #tpu.memory_space<vmem>>, vector<8x8xf32>
    %33 = vector.broadcast %31 : f32 to vector<8x8xf32>
    %34 = arith.mulf %33, %32 : vector<8x8xf32>
    %35 = arith.addf %30, %34 : vector<8x8xf32>
    %c6 = arith.constant 6 : index
    %36 = memref.load %arg3[%c6] : memref<56xf32, #tpu.memory_space<smem>>
    %c1_20 = arith.constant 1 : index
    %c1_21 = arith.constant 1 : index
    %37 = vector.load %arg5[%c1_20, %c1_21] : memref<12x12xf32, #tpu.memory_space<vmem>>, vector<8x8xf32>
    %38 = vector.broadcast %36 : f32 to vector<8x8xf32>
    %39 = arith.mulf %38, %37 : vector<8x8xf32>
    %40 = arith.addf %35, %39 : vector<8x8xf32>
    %c7 = arith.constant 7 : index
    %41 = memref.load %arg3[%c7] : memref<56xf32, #tpu.memory_space<smem>>
    %c1_22 = arith.constant 1 : index
    %c2_23 = arith.constant 2 : index
    %42 = vector.load %arg5[%c1_22, %c2_23] : memref<12x12xf32, #tpu.memory_space<vmem>>, vector<8x8xf32>
    %43 = vector.broadcast %41 : f32 to vector<8x8xf32>
    %44 = arith.mulf %43, %42 : vector<8x8xf32>
    %45 = arith.addf %40, %44 : vector<8x8xf32>
    %c8 = arith.constant 8 : index
    %46 = memref.load %arg3[%c8] : memref<56xf32, #tpu.memory_space<smem>>
    %c1_24 = arith.constant 1 : index
    %c3_25 = arith.constant 3 : index
    %47 = vector.load %arg5[%c1_24, %c3_25] : memref<12x12xf32, #tpu.memory_space<vmem>>, vector<8x8xf32>
    %48 = vector.broadcast %46 : f32 to vector<8x8xf32>
    %49 = arith.mulf %48, %47 : vector<8x8xf32>
    %50 = arith.addf %45, %49 : vector<8x8xf32>
    %c9 = arith.constant 9 : index
    %51 = memref.load %arg3[%c9] : memref<56xf32, #tpu.memory_space<smem>>
    %c1_26 = arith.constant 1 : index
    %c4_27 = arith.constant 4 : index
    %52 = vector.load %arg5[%c1_26, %c4_27] : memref<12x12xf32, #tpu.memory_space<vmem>>, vector<8x8xf32>
    %53 = vector.broadcast %51 : f32 to vector<8x8xf32>
    %54 = arith.mulf %53, %52 : vector<8x8xf32>
    %55 = arith.addf %50, %54 : vector<8x8xf32>
    %c10 = arith.constant 10 : index
    %56 = memref.load %arg3[%c10] : memref<56xf32, #tpu.memory_space<smem>>
    %c2_28 = arith.constant 2 : index
    %c0_29 = arith.constant 0 : index
    %57 = vector.load %arg5[%c2_28, %c0_29] : memref<12x12xf32, #tpu.memory_space<vmem>>, vector<8x8xf32>
    %58 = vector.broadcast %56 : f32 to vector<8x8xf32>
    %59 = arith.mulf %58, %57 : vector<8x8xf32>
    %60 = arith.addf %55, %59 : vector<8x8xf32>
    %c11 = arith.constant 11 : index
    %61 = memref.load %arg3[%c11] : memref<56xf32, #tpu.memory_space<smem>>
    %c2_30 = arith.constant 2 : index
    %c1_31 = arith.constant 1 : index
    %62 = vector.load %arg5[%c2_30, %c1_31] : memref<12x12xf32, #tpu.memory_space<vmem>>, vector<8x8xf32>
    %63 = vector.broadcast %61 : f32 to vector<8x8xf32>
    %64 = arith.mulf %63, %62 : vector<8x8xf32>
    %65 = arith.addf %60, %64 : vector<8x8xf32>
    %c12 = arith.constant 12 : index
    %66 = memref.load %arg3[%c12] : memref<56xf32, #tpu.memory_space<smem>>
    %c2_32 = arith.constant 2 : index
    %c2_33 = arith.constant 2 : index
    %67 = vector.load %arg5[%c2_32, %c2_33] : memref<12x12xf32, #tpu.memory_space<vmem>>, vector<8x8xf32>
    %68 = vector.broadcast %66 : f32 to vector<8x8xf32>
    %69 = arith.mulf %68, %67 : vector<8x8xf32>
    %70 = arith.addf %65, %69 : vector<8x8xf32>
    %c13 = arith.constant 13 : index
    %71 = memref.load %arg3[%c13] : memref<56xf32, #tpu.memory_space<smem>>
    %c2_34 = arith.constant 2 : index
    %c3_35 = arith.constant 3 : index
    %72 = vector.load %arg5[%c2_34, %c3_35] : memref<12x12xf32, #tpu.memory_space<vmem>>, vector<8x8xf32>
    %73 = vector.broadcast %71 : f32 to vector<8x8xf32>
    %74 = arith.mulf %73, %72 : vector<8x8xf32>
    %75 = arith.addf %70, %74 : vector<8x8xf32>
    %c14 = arith.constant 14 : index
    %76 = memref.load %arg3[%c14] : memref<56xf32, #tpu.memory_space<smem>>
    %c2_36 = arith.constant 2 : index
    %c4_37 = arith.constant 4 : index
    %77 = vector.load %arg5[%c2_36, %c4_37] : memref<12x12xf32, #tpu.memory_space<vmem>>, vector<8x8xf32>
    %78 = vector.broadcast %76 : f32 to vector<8x8xf32>
    %79 = arith.mulf %78, %77 : vector<8x8xf32>
    %80 = arith.addf %75, %79 : vector<8x8xf32>
    %c15 = arith.constant 15 : index
    %81 = memref.load %arg3[%c15] : memref<56xf32, #tpu.memory_space<smem>>
    %c3_38 = arith.constant 3 : index
    %c0_39 = arith.constant 0 : index
    %82 = vector.load %arg5[%c3_38, %c0_39] : memref<12x12xf32, #tpu.memory_space<vmem>>, vector<8x8xf32>
    %83 = vector.broadcast %81 : f32 to vector<8x8xf32>
    %84 = arith.mulf %83, %82 : vector<8x8xf32>
    %85 = arith.addf %80, %84 : vector<8x8xf32>
    %c16 = arith.constant 16 : index
    %86 = memref.load %arg3[%c16] : memref<56xf32, #tpu.memory_space<smem>>
    %c3_40 = arith.constant 3 : index
    %c1_41 = arith.constant 1 : index
    %87 = vector.load %arg5[%c3_40, %c1_41] : memref<12x12xf32, #tpu.memory_space<vmem>>, vector<8x8xf32>
    %88 = vector.broadcast %86 : f32 to vector<8x8xf32>
    %89 = arith.mulf %88, %87 : vector<8x8xf32>
    %90 = arith.addf %85, %89 : vector<8x8xf32>
    %c17 = arith.constant 17 : index
    %91 = memref.load %arg3[%c17] : memref<56xf32, #tpu.memory_space<smem>>
    %c3_42 = arith.constant 3 : index
    %c2_43 = arith.constant 2 : index
    %92 = vector.load %arg5[%c3_42, %c2_43] : memref<12x12xf32, #tpu.memory_space<vmem>>, vector<8x8xf32>
    %93 = vector.broadcast %91 : f32 to vector<8x8xf32>
    %94 = arith.mulf %93, %92 : vector<8x8xf32>
    %95 = arith.addf %90, %94 : vector<8x8xf32>
    %c18 = arith.constant 18 : index
    %96 = memref.load %arg3[%c18] : memref<56xf32, #tpu.memory_space<smem>>
    %c3_44 = arith.constant 3 : index
    %c3_45 = arith.constant 3 : index
    %97 = vector.load %arg5[%c3_44, %c3_45] : memref<12x12xf32, #tpu.memory_space<vmem>>, vector<8x8xf32>
    %98 = vector.broadcast %96 : f32 to vector<8x8xf32>
    %99 = arith.mulf %98, %97 : vector<8x8xf32>
    %100 = arith.addf %95, %99 : vector<8x8xf32>
    %c19 = arith.constant 19 : index
    %101 = memref.load %arg3[%c19] : memref<56xf32, #tpu.memory_space<smem>>
    %c3_46 = arith.constant 3 : index
    %c4_47 = arith.constant 4 : index
    %102 = vector.load %arg5[%c3_46, %c4_47] : memref<12x12xf32, #tpu.memory_space<vmem>>, vector<8x8xf32>
    %103 = vector.broadcast %101 : f32 to vector<8x8xf32>
    %104 = arith.mulf %103, %102 : vector<8x8xf32>
    %105 = arith.addf %100, %104 : vector<8x8xf32>
    %c20 = arith.constant 20 : index
    %106 = memref.load %arg3[%c20] : memref<56xf32, #tpu.memory_space<smem>>
    %c4_48 = arith.constant 4 : index
    %c0_49 = arith.constant 0 : index
    %107 = vector.load %arg5[%c4_48, %c0_49] : memref<12x12xf32, #tpu.memory_space<vmem>>, vector<8x8xf32>
    %108 = vector.broadcast %106 : f32 to vector<8x8xf32>
    %109 = arith.mulf %108, %107 : vector<8x8xf32>
    %110 = arith.addf %105, %109 : vector<8x8xf32>
    %c21 = arith.constant 21 : index
    %111 = memref.load %arg3[%c21] : memref<56xf32, #tpu.memory_space<smem>>
    %c4_50 = arith.constant 4 : index
    %c1_51 = arith.constant 1 : index
    %112 = vector.load %arg5[%c4_50, %c1_51] : memref<12x12xf32, #tpu.memory_space<vmem>>, vector<8x8xf32>
    %113 = vector.broadcast %111 : f32 to vector<8x8xf32>
    %114 = arith.mulf %113, %112 : vector<8x8xf32>
    %115 = arith.addf %110, %114 : vector<8x8xf32>
    %c22 = arith.constant 22 : index
    %116 = memref.load %arg3[%c22] : memref<56xf32, #tpu.memory_space<smem>>
    %c4_52 = arith.constant 4 : index
    %c2_53 = arith.constant 2 : index
    %117 = vector.load %arg5[%c4_52, %c2_53] : memref<12x12xf32, #tpu.memory_space<vmem>>, vector<8x8xf32>
    %118 = vector.broadcast %116 : f32 to vector<8x8xf32>
    %119 = arith.mulf %118, %117 : vector<8x8xf32>
    %120 = arith.addf %115, %119 : vector<8x8xf32>
    %c23 = arith.constant 23 : index
    %121 = memref.load %arg3[%c23] : memref<56xf32, #tpu.memory_space<smem>>
    %c4_54 = arith.constant 4 : index
    %c3_55 = arith.constant 3 : index
    %122 = vector.load %arg5[%c4_54, %c3_55] : memref<12x12xf32, #tpu.memory_space<vmem>>, vector<8x8xf32>
    %123 = vector.broadcast %121 : f32 to vector<8x8xf32>
    %124 = arith.mulf %123, %122 : vector<8x8xf32>
    %125 = arith.addf %120, %124 : vector<8x8xf32>
    %c24 = arith.constant 24 : index
    %126 = memref.load %arg3[%c24] : memref<56xf32, #tpu.memory_space<smem>>
    %c4_56 = arith.constant 4 : index
    %c4_57 = arith.constant 4 : index
    %127 = vector.load %arg5[%c4_56, %c4_57] : memref<12x12xf32, #tpu.memory_space<vmem>>, vector<8x8xf32>
    %128 = vector.broadcast %126 : f32 to vector<8x8xf32>
    %129 = arith.mulf %128, %127 : vector<8x8xf32>
    %130 = arith.addf %125, %129 : vector<8x8xf32>
    %c43 = arith.constant 43 : index
    %131 = memref.load %arg3[%c43] : memref<56xf32, #tpu.memory_space<smem>>
    %132 = vector.broadcast %131 : f32 to vector<8x8xf32>
    %133 = arith.addf %130, %132 : vector<8x8xf32>
    %cst_58 = arith.constant 0.000000e+00 : f32
    %134 = vector.broadcast %cst_58 : f32 to vector<8x8xf32>
    %135 = arith.maximumf %133, %134 : vector<8x8xf32>
    %cst_59 = arith.constant 0.000000e+00 : f32
    %136 = vector.broadcast %cst_59 : f32 to vector<12x12xf32>
    %c0_60 = arith.constant 0 : index
    %c0_61 = arith.constant 0 : index
    %137 = vector.load %arg6[%c0_60, %c0_61] : memref<12x12xf32, #tpu.memory_space<vmem>>, vector<12x12xf32>
    tpu.vector_store %arg6[%c0_60, %c0_61], %136 {strides = array<i32>} : memref<12x12xf32, #tpu.memory_space<vmem>>, vector<12x12xf32>,
    %c2_62 = arith.constant 2 : index
    %c2_63 = arith.constant 2 : index
    %138 = vector.load %arg6[%c2_62, %c2_63] : memref<12x12xf32, #tpu.memory_space<vmem>>, vector<8x8xf32>
    tpu.vector_store %arg6[%c2_62, %c2_63], %135 {strides = array<i32>} : memref<12x12xf32, #tpu.memory_space<vmem>>, vector<8x8xf32>,
    %cst_64 = arith.constant 0.000000e+00 : f32
    %139 = vector.broadcast %cst_64 : f32 to vector<8x8xf32>
    %c25 = arith.constant 25 : index
    %140 = memref.load %arg3[%c25] : memref<56xf32, #tpu.memory_space<smem>>
    %c1_65 = arith.constant 1 : index
    %c1_66 = arith.constant 1 : index
    %141 = vector.load %arg6[%c1_65, %c1_66] : memref<12x12xf32, #tpu.memory_space<vmem>>, vector<8x8xf32>
    %142 = vector.broadcast %140 : f32 to vector<8x8xf32>
    %143 = arith.mulf %142, %141 : vector<8x8xf32>
    %144 = arith.addf %139, %143 : vector<8x8xf32>
    %c26 = arith.constant 26 : index
    %145 = memref.load %arg3[%c26] : memref<56xf32, #tpu.memory_space<smem>>
    %c1_67 = arith.constant 1 : index
    %c2_68 = arith.constant 2 : index
    %146 = vector.load %arg6[%c1_67, %c2_68] : memref<12x12xf32, #tpu.memory_space<vmem>>, vector<8x8xf32>
    %147 = vector.broadcast %145 : f32 to vector<8x8xf32>
    %148 = arith.mulf %147, %146 : vector<8x8xf32>
    %149 = arith.addf %144, %148 : vector<8x8xf32>
    %c27 = arith.constant 27 : index
    %150 = memref.load %arg3[%c27] : memref<56xf32, #tpu.memory_space<smem>>
    %c1_69 = arith.constant 1 : index
    %c3_70 = arith.constant 3 : index
    %151 = vector.load %arg6[%c1_69, %c3_70] : memref<12x12xf32, #tpu.memory_space<vmem>>, vector<8x8xf32>
    %152 = vector.broadcast %150 : f32 to vector<8x8xf32>
    %153 = arith.mulf %152, %151 : vector<8x8xf32>
    %154 = arith.addf %149, %153 : vector<8x8xf32>
    %c28 = arith.constant 28 : index
    %155 = memref.load %arg3[%c28] : memref<56xf32, #tpu.memory_space<smem>>
    %c2_71 = arith.constant 2 : index
    %c1_72 = arith.constant 1 : index
    %156 = vector.load %arg6[%c2_71, %c1_72] : memref<12x12xf32, #tpu.memory_space<vmem>>, vector<8x8xf32>
    %157 = vector.broadcast %155 : f32 to vector<8x8xf32>
    %158 = arith.mulf %157, %156 : vector<8x8xf32>
    %159 = arith.addf %154, %158 : vector<8x8xf32>
    %c29 = arith.constant 29 : index
    %160 = memref.load %arg3[%c29] : memref<56xf32, #tpu.memory_space<smem>>
    %c2_73 = arith.constant 2 : index
    %c2_74 = arith.constant 2 : index
    %161 = vector.load %arg6[%c2_73, %c2_74] : memref<12x12xf32, #tpu.memory_space<vmem>>, vector<8x8xf32>
    %162 = vector.broadcast %160 : f32 to vector<8x8xf32>
    %163 = arith.mulf %162, %161 : vector<8x8xf32>
    %164 = arith.addf %159, %163 : vector<8x8xf32>
    %c30 = arith.constant 30 : index
    %165 = memref.load %arg3[%c30] : memref<56xf32, #tpu.memory_space<smem>>
    %c2_75 = arith.constant 2 : index
    %c3_76 = arith.constant 3 : index
    %166 = vector.load %arg6[%c2_75, %c3_76] : memref<12x12xf32, #tpu.memory_space<vmem>>, vector<8x8xf32>
    %167 = vector.broadcast %165 : f32 to vector<8x8xf32>
    %168 = arith.mulf %167, %166 : vector<8x8xf32>
    %169 = arith.addf %164, %168 : vector<8x8xf32>
    %c31 = arith.constant 31 : index
    %170 = memref.load %arg3[%c31] : memref<56xf32, #tpu.memory_space<smem>>
    %c3_77 = arith.constant 3 : index
    %c1_78 = arith.constant 1 : index
    %171 = vector.load %arg6[%c3_77, %c1_78] : memref<12x12xf32, #tpu.memory_space<vmem>>, vector<8x8xf32>
    %172 = vector.broadcast %170 : f32 to vector<8x8xf32>
    %173 = arith.mulf %172, %171 : vector<8x8xf32>
    %174 = arith.addf %169, %173 : vector<8x8xf32>
    %c32 = arith.constant 32 : index
    %175 = memref.load %arg3[%c32] : memref<56xf32, #tpu.memory_space<smem>>
    %c3_79 = arith.constant 3 : index
    %c2_80 = arith.constant 2 : index
    %176 = vector.load %arg6[%c3_79, %c2_80] : memref<12x12xf32, #tpu.memory_space<vmem>>, vector<8x8xf32>
    %177 = vector.broadcast %175 : f32 to vector<8x8xf32>
    %178 = arith.mulf %177, %176 : vector<8x8xf32>
    %179 = arith.addf %174, %178 : vector<8x8xf32>
    %c33 = arith.constant 33 : index
    %180 = memref.load %arg3[%c33] : memref<56xf32, #tpu.memory_space<smem>>
    %c3_81 = arith.constant 3 : index
    %c3_82 = arith.constant 3 : index
    %181 = vector.load %arg6[%c3_81, %c3_82] : memref<12x12xf32, #tpu.memory_space<vmem>>, vector<8x8xf32>
    %182 = vector.broadcast %180 : f32 to vector<8x8xf32>
    %183 = arith.mulf %182, %181 : vector<8x8xf32>
    %184 = arith.addf %179, %183 : vector<8x8xf32>
    %cst_83 = arith.constant 0.000000e+00 : f32
    %185 = vector.broadcast %cst_83 : f32 to vector<8x8xf32>
    %c25_84 = arith.constant 25 : index
    %186 = memref.load %arg3[%c25_84] : memref<56xf32, #tpu.memory_space<smem>>
    %c1_85 = arith.constant 1 : index
    %c0_86 = arith.constant 0 : index
    %187 = vector.load %arg6[%c1_85, %c0_86] : memref<12x12xf32, #tpu.memory_space<vmem>>, vector<8x8xf32>
    %188 = vector.broadcast %186 : f32 to vector<8x8xf32>
    %189 = arith.mulf %188, %187 : vector<8x8xf32>
    %190 = arith.addf %185, %189 : vector<8x8xf32>
    %c26_87 = arith.constant 26 : index
    %191 = memref.load %arg3[%c26_87] : memref<56xf32, #tpu.memory_space<smem>>
    %c1_88 = arith.constant 1 : index
    %c1_89 = arith.constant 1 : index
    %192 = vector.load %arg6[%c1_88, %c1_89] : memref<12x12xf32, #tpu.memory_space<vmem>>, vector<8x8xf32>
    %193 = vector.broadcast %191 : f32 to vector<8x8xf32>
    %194 = arith.mulf %193, %192 : vector<8x8xf32>
    %195 = arith.addf %190, %194 : vector<8x8xf32>
    %c27_90 = arith.constant 27 : index
    %196 = memref.load %arg3[%c27_90] : memref<56xf32, #tpu.memory_space<smem>>
    %c1_91 = arith.constant 1 : index
    %c2_92 = arith.constant 2 : index
    %197 = vector.load %arg6[%c1_91, %c2_92] : memref<12x12xf32, #tpu.memory_space<vmem>>, vector<8x8xf32>
    %198 = vector.broadcast %196 : f32 to vector<8x8xf32>
    %199 = arith.mulf %198, %197 : vector<8x8xf32>
    %200 = arith.addf %195, %199 : vector<8x8xf32>
    %c28_93 = arith.constant 28 : index
    %201 = memref.load %arg3[%c28_93] : memref<56xf32, #tpu.memory_space<smem>>
    %c2_94 = arith.constant 2 : index
    %c0_95 = arith.constant 0 : index
    %202 = vector.load %arg6[%c2_94, %c0_95] : memref<12x12xf32, #tpu.memory_space<vmem>>, vector<8x8xf32>
    %203 = vector.broadcast %201 : f32 to vector<8x8xf32>
    %204 = arith.mulf %203, %202 : vector<8x8xf32>
    %205 = arith.addf %200, %204 : vector<8x8xf32>
    %c29_96 = arith.constant 29 : index
    %206 = memref.load %arg3[%c29_96] : memref<56xf32, #tpu.memory_space<smem>>
    %c2_97 = arith.constant 2 : index
    %c1_98 = arith.constant 1 : index
    %207 = vector.load %arg6[%c2_97, %c1_98] : memref<12x12xf32, #tpu.memory_space<vmem>>, vector<8x8xf32>
    %208 = vector.broadcast %206 : f32 to vector<8x8xf32>
    %209 = arith.mulf %208, %207 : vector<8x8xf32>
    %210 = arith.addf %205, %209 : vector<8x8xf32>
    %c30_99 = arith.constant 30 : index
    %211 = memref.load %arg3[%c30_99] : memref<56xf32, #tpu.memory_space<smem>>
    %c2_100 = arith.constant 2 : index
    %c2_101 = arith.constant 2 : index
    %212 = vector.load %arg6[%c2_100, %c2_101] : memref<12x12xf32, #tpu.memory_space<vmem>>, vector<8x8xf32>
    %213 = vector.broadcast %211 : f32 to vector<8x8xf32>
    %214 = arith.mulf %213, %212 : vector<8x8xf32>
    %215 = arith.addf %210, %214 : vector<8x8xf32>
    %c31_102 = arith.constant 31 : index
    %216 = memref.load %arg3[%c31_102] : memref<56xf32, #tpu.memory_space<smem>>
    %c3_103 = arith.constant 3 : index
    %c0_104 = arith.constant 0 : index
    %217 = vector.load %arg6[%c3_103, %c0_104] : memref<12x12xf32, #tpu.memory_space<vmem>>, vector<8x8xf32>
    %218 = vector.broadcast %216 : f32 to vector<8x8xf32>
    %219 = arith.mulf %218, %217 : vector<8x8xf32>
    %220 = arith.addf %215, %219 : vector<8x8xf32>
    %c32_105 = arith.constant 32 : index
    %221 = memref.load %arg3[%c32_105] : memref<56xf32, #tpu.memory_space<smem>>
    %c3_106 = arith.constant 3 : index
    %c1_107 = arith.constant 1 : index
    %222 = vector.load %arg6[%c3_106, %c1_107] : memref<12x12xf32, #tpu.memory_space<vmem>>, vector<8x8xf32>
    %223 = vector.broadcast %221 : f32 to vector<8x8xf32>
    %224 = arith.mulf %223, %222 : vector<8x8xf32>
    %225 = arith.addf %220, %224 : vector<8x8xf32>
    %c33_108 = arith.constant 33 : index
    %226 = memref.load %arg3[%c33_108] : memref<56xf32, #tpu.memory_space<smem>>
    %c3_109 = arith.constant 3 : index
    %c2_110 = arith.constant 2 : index
    %227 = vector.load %arg6[%c3_109, %c2_110] : memref<12x12xf32, #tpu.memory_space<vmem>>, vector<8x8xf32>
    %228 = vector.broadcast %226 : f32 to vector<8x8xf32>
    %229 = arith.mulf %228, %227 : vector<8x8xf32>
    %230 = arith.addf %225, %229 : vector<8x8xf32>
    %cst_111 = arith.constant 0.000000e+00 : f32
    %231 = vector.broadcast %cst_111 : f32 to vector<8x8xf32>
    %c25_112 = arith.constant 25 : index
    %232 = memref.load %arg3[%c25_112] : memref<56xf32, #tpu.memory_space<smem>>
    %c0_113 = arith.constant 0 : index
    %c1_114 = arith.constant 1 : index
    %233 = vector.load %arg6[%c0_113, %c1_114] : memref<12x12xf32, #tpu.memory_space<vmem>>, vector<8x8xf32>
    %234 = vector.broadcast %232 : f32 to vector<8x8xf32>
    %235 = arith.mulf %234, %233 : vector<8x8xf32>
    %236 = arith.addf %231, %235 : vector<8x8xf32>
    %c26_115 = arith.constant 26 : index
    %237 = memref.load %arg3[%c26_115] : memref<56xf32, #tpu.memory_space<smem>>
    %c0_116 = arith.constant 0 : index
    %c2_117 = arith.constant 2 : index
    %238 = vector.load %arg6[%c0_116, %c2_117] : memref<12x12xf32, #tpu.memory_space<vmem>>, vector<8x8xf32>
    %239 = vector.broadcast %237 : f32 to vector<8x8xf32>
    %240 = arith.mulf %239, %238 : vector<8x8xf32>
    %241 = arith.addf %236, %240 : vector<8x8xf32>
    %c27_118 = arith.constant 27 : index
    %242 = memref.load %arg3[%c27_118] : memref<56xf32, #tpu.memory_space<smem>>
    %c0_119 = arith.constant 0 : index
    %c3_120 = arith.constant 3 : index
    %243 = vector.load %arg6[%c0_119, %c3_120] : memref<12x12xf32, #tpu.memory_space<vmem>>, vector<8x8xf32>
    %244 = vector.broadcast %242 : f32 to vector<8x8xf32>
    %245 = arith.mulf %244, %243 : vector<8x8xf32>
    %246 = arith.addf %241, %245 : vector<8x8xf32>
    %c28_121 = arith.constant 28 : index
    %247 = memref.load %arg3[%c28_121] : memref<56xf32, #tpu.memory_space<smem>>
    %c1_122 = arith.constant 1 : index
    %c1_123 = arith.constant 1 : index
    %248 = vector.load %arg6[%c1_122, %c1_123] : memref<12x12xf32, #tpu.memory_space<vmem>>, vector<8x8xf32>
    %249 = vector.broadcast %247 : f32 to vector<8x8xf32>
    %250 = arith.mulf %249, %248 : vector<8x8xf32>
    %251 = arith.addf %246, %250 : vector<8x8xf32>
    %c29_124 = arith.constant 29 : index
    %252 = memref.load %arg3[%c29_124] : memref<56xf32, #tpu.memory_space<smem>>
    %c1_125 = arith.constant 1 : index
    %c2_126 = arith.constant 2 : index
    %253 = vector.load %arg6[%c1_125, %c2_126] : memref<12x12xf32, #tpu.memory_space<vmem>>, vector<8x8xf32>
    %254 = vector.broadcast %252 : f32 to vector<8x8xf32>
    %255 = arith.mulf %254, %253 : vector<8x8xf32>
    %256 = arith.addf %251, %255 : vector<8x8xf32>
    %c30_127 = arith.constant 30 : index
    %257 = memref.load %arg3[%c30_127] : memref<56xf32, #tpu.memory_space<smem>>
    %c1_128 = arith.constant 1 : index
    %c3_129 = arith.constant 3 : index
    %258 = vector.load %arg6[%c1_128, %c3_129] : memref<12x12xf32, #tpu.memory_space<vmem>>, vector<8x8xf32>
    %259 = vector.broadcast %257 : f32 to vector<8x8xf32>
    %260 = arith.mulf %259, %258 : vector<8x8xf32>
    %261 = arith.addf %256, %260 : vector<8x8xf32>
    %c31_130 = arith.constant 31 : index
    %262 = memref.load %arg3[%c31_130] : memref<56xf32, #tpu.memory_space<smem>>
    %c2_131 = arith.constant 2 : index
    %c1_132 = arith.constant 1 : index
    %263 = vector.load %arg6[%c2_131, %c1_132] : memref<12x12xf32, #tpu.memory_space<vmem>>, vector<8x8xf32>
    %264 = vector.broadcast %262 : f32 to vector<8x8xf32>
    %265 = arith.mulf %264, %263 : vector<8x8xf32>
    %266 = arith.addf %261, %265 : vector<8x8xf32>
    %c32_133 = arith.constant 32 : index
    %267 = memref.load %arg3[%c32_133] : memref<56xf32, #tpu.memory_space<smem>>
    %c2_134 = arith.constant 2 : index
    %c2_135 = arith.constant 2 : index
    %268 = vector.load %arg6[%c2_134, %c2_135] : memref<12x12xf32, #tpu.memory_space<vmem>>, vector<8x8xf32>
    %269 = vector.broadcast %267 : f32 to vector<8x8xf32>
    %270 = arith.mulf %269, %268 : vector<8x8xf32>
    %271 = arith.addf %266, %270 : vector<8x8xf32>
    %c33_136 = arith.constant 33 : index
    %272 = memref.load %arg3[%c33_136] : memref<56xf32, #tpu.memory_space<smem>>
    %c2_137 = arith.constant 2 : index
    %c3_138 = arith.constant 3 : index
    %273 = vector.load %arg6[%c2_137, %c3_138] : memref<12x12xf32, #tpu.memory_space<vmem>>, vector<8x8xf32>
    %274 = vector.broadcast %272 : f32 to vector<8x8xf32>
    %275 = arith.mulf %274, %273 : vector<8x8xf32>
    %276 = arith.addf %271, %275 : vector<8x8xf32>
    %cst_139 = arith.constant 0.000000e+00 : f32
    %277 = vector.broadcast %cst_139 : f32 to vector<8x8xf32>
    %c25_140 = arith.constant 25 : index
    %278 = memref.load %arg3[%c25_140] : memref<56xf32, #tpu.memory_space<smem>>
    %c0_141 = arith.constant 0 : index
    %c0_142 = arith.constant 0 : index
    %279 = vector.load %arg6[%c0_141, %c0_142] : memref<12x12xf32, #tpu.memory_space<vmem>>, vector<8x8xf32>
    %280 = vector.broadcast %278 : f32 to vector<8x8xf32>
    %281 = arith.mulf %280, %279 : vector<8x8xf32>
    %282 = arith.addf %277, %281 : vector<8x8xf32>
    %c26_143 = arith.constant 26 : index
    %283 = memref.load %arg3[%c26_143] : memref<56xf32, #tpu.memory_space<smem>>
    %c0_144 = arith.constant 0 : index
    %c1_145 = arith.constant 1 : index
    %284 = vector.load %arg6[%c0_144, %c1_145] : memref<12x12xf32, #tpu.memory_space<vmem>>, vector<8x8xf32>
    %285 = vector.broadcast %283 : f32 to vector<8x8xf32>
    %286 = arith.mulf %285, %284 : vector<8x8xf32>
    %287 = arith.addf %282, %286 : vector<8x8xf32>
    %c27_146 = arith.constant 27 : index
    %288 = memref.load %arg3[%c27_146] : memref<56xf32, #tpu.memory_space<smem>>
    %c0_147 = arith.constant 0 : index
    %c2_148 = arith.constant 2 : index
    %289 = vector.load %arg6[%c0_147, %c2_148] : memref<12x12xf32, #tpu.memory_space<vmem>>, vector<8x8xf32>
    %290 = vector.broadcast %288 : f32 to vector<8x8xf32>
    %291 = arith.mulf %290, %289 : vector<8x8xf32>
    %292 = arith.addf %287, %291 : vector<8x8xf32>
    %c28_149 = arith.constant 28 : index
    %293 = memref.load %arg3[%c28_149] : memref<56xf32, #tpu.memory_space<smem>>
    %c1_150 = arith.constant 1 : index
    %c0_151 = arith.constant 0 : index
    %294 = vector.load %arg6[%c1_150, %c0_151] : memref<12x12xf32, #tpu.memory_space<vmem>>, vector<8x8xf32>
    %295 = vector.broadcast %293 : f32 to vector<8x8xf32>
    %296 = arith.mulf %295, %294 : vector<8x8xf32>
    %297 = arith.addf %292, %296 : vector<8x8xf32>
    %c29_152 = arith.constant 29 : index
    %298 = memref.load %arg3[%c29_152] : memref<56xf32, #tpu.memory_space<smem>>
    %c1_153 = arith.constant 1 : index
    %c1_154 = arith.constant 1 : index
    %299 = vector.load %arg6[%c1_153, %c1_154] : memref<12x12xf32, #tpu.memory_space<vmem>>, vector<8x8xf32>
    %300 = vector.broadcast %298 : f32 to vector<8x8xf32>
    %301 = arith.mulf %300, %299 : vector<8x8xf32>
    %302 = arith.addf %297, %301 : vector<8x8xf32>
    %c30_155 = arith.constant 30 : index
    %303 = memref.load %arg3[%c30_155] : memref<56xf32, #tpu.memory_space<smem>>
    %c1_156 = arith.constant 1 : index
    %c2_157 = arith.constant 2 : index
    %304 = vector.load %arg6[%c1_156, %c2_157] : memref<12x12xf32, #tpu.memory_space<vmem>>, vector<8x8xf32>
    %305 = vector.broadcast %303 : f32 to vector<8x8xf32>
    %306 = arith.mulf %305, %304 : vector<8x8xf32>
    %307 = arith.addf %302, %306 : vector<8x8xf32>
    %c31_158 = arith.constant 31 : index
    %308 = memref.load %arg3[%c31_158] : memref<56xf32, #tpu.memory_space<smem>>
    %c2_159 = arith.constant 2 : index
    %c0_160 = arith.constant 0 : index
    %309 = vector.load %arg6[%c2_159, %c0_160] : memref<12x12xf32, #tpu.memory_space<vmem>>, vector<8x8xf32>
    %310 = vector.broadcast %308 : f32 to vector<8x8xf32>
    %311 = arith.mulf %310, %309 : vector<8x8xf32>
    %312 = arith.addf %307, %311 : vector<8x8xf32>
    %c32_161 = arith.constant 32 : index
    %313 = memref.load %arg3[%c32_161] : memref<56xf32, #tpu.memory_space<smem>>
    %c2_162 = arith.constant 2 : index
    %c1_163 = arith.constant 1 : index
    %314 = vector.load %arg6[%c2_162, %c1_163] : memref<12x12xf32, #tpu.memory_space<vmem>>, vector<8x8xf32>
    %315 = vector.broadcast %313 : f32 to vector<8x8xf32>
    %316 = arith.mulf %315, %314 : vector<8x8xf32>
    %317 = arith.addf %312, %316 : vector<8x8xf32>
    %c33_164 = arith.constant 33 : index
    %318 = memref.load %arg3[%c33_164] : memref<56xf32, #tpu.memory_space<smem>>
    %c2_165 = arith.constant 2 : index
    %c2_166 = arith.constant 2 : index
    %319 = vector.load %arg6[%c2_165, %c2_166] : memref<12x12xf32, #tpu.memory_space<vmem>>, vector<8x8xf32>
    %320 = vector.broadcast %318 : f32 to vector<8x8xf32>
    %321 = arith.mulf %320, %319 : vector<8x8xf32>
    %322 = arith.addf %317, %321 : vector<8x8xf32>
    %323 = tpu.iota {dimensions = array<i32: 0>} : vector<8x8xi32>
    %c2_i32 = arith.constant 2 : i32
    %c0_i32 = arith.constant 0 : i32
    %324 = arith.cmpi eq, %c2_i32, %c0_i32 : i32
    %c1_i32 = arith.constant 1 : i32
    %325 = arith.select %324, %c1_i32, %c2_i32 : i32
    %326 = vector.broadcast %325 : i32 to vector<8x8xi32>
    %327 = arith.remsi %323, %326 : vector<8x8xi32>
    %c0_i32_167 = arith.constant 0 : i32
    %328 = vector.broadcast %c0_i32_167 : i32 to vector<8x8xi32>
    %329 = arith.cmpi ne, %327, %328 : vector<8x8xi32>
    %c0_i32_168 = arith.constant 0 : i32
    %330 = vector.broadcast %c0_i32_168 : i32 to vector<8x8xi32>
    %331 = arith.cmpi slt, %327, %330 : vector<8x8xi32>
    %c0_i32_169 = arith.constant 0 : i32
    %332 = arith.cmpi slt, %325, %c0_i32_169 : i32
    %333 = vector.broadcast %332 : i1 to vector<8x8xi1>
    %334 = vector.broadcast %333 : vector<8x8xi1> to vector<8x8xi1>
    %335 = arith.xori %331, %334 : vector<8x8xi1>
    %336 = arith.andi %335, %329 : vector<8x8xi1>
    %337 = vector.broadcast %325 : i32 to vector<8x8xi32>
    %338 = arith.addi %327, %337 : vector<8x8xi32>
    %339 = arith.select %336, %338, %327 : vector<8x8xi1>, vector<8x8xi32>
    %340 = tpu.iota {dimensions = array<i32: 1>} : vector<8x8xi32>
    %c2_i32_170 = arith.constant 2 : i32
    %c0_i32_171 = arith.constant 0 : i32
    %341 = arith.cmpi eq, %c2_i32_170, %c0_i32_171 : i32
    %c1_i32_172 = arith.constant 1 : i32
    %342 = arith.select %341, %c1_i32_172, %c2_i32_170 : i32
    %343 = vector.broadcast %342 : i32 to vector<8x8xi32>
    %344 = arith.remsi %340, %343 : vector<8x8xi32>
    %c0_i32_173 = arith.constant 0 : i32
    %345 = vector.broadcast %c0_i32_173 : i32 to vector<8x8xi32>
    %346 = arith.cmpi ne, %344, %345 : vector<8x8xi32>
    %c0_i32_174 = arith.constant 0 : i32
    %347 = vector.broadcast %c0_i32_174 : i32 to vector<8x8xi32>
    %348 = arith.cmpi slt, %344, %347 : vector<8x8xi32>
    %c0_i32_175 = arith.constant 0 : i32
    %349 = arith.cmpi slt, %342, %c0_i32_175 : i32
    %350 = vector.broadcast %349 : i1 to vector<8x8xi1>
    %351 = vector.broadcast %350 : vector<8x8xi1> to vector<8x8xi1>
    %352 = arith.xori %348, %351 : vector<8x8xi1>
    %353 = arith.andi %352, %346 : vector<8x8xi1>
    %354 = vector.broadcast %342 : i32 to vector<8x8xi32>
    %355 = arith.addi %344, %354 : vector<8x8xi32>
    %356 = arith.select %353, %355, %344 : vector<8x8xi1>, vector<8x8xi32>
    %c0_i32_176 = arith.constant 0 : i32
    %357 = vector.broadcast %c0_i32_176 : i32 to vector<8x8xi32>
    %358 = arith.cmpi eq, %339, %357 : vector<8x8xi32>
    %c0_i32_177 = arith.constant 0 : i32
    %359 = vector.broadcast %c0_i32_177 : i32 to vector<8x8xi32>
    %360 = arith.cmpi eq, %356, %359 : vector<8x8xi32>
    %361 = arith.select %360, %184, %230 : vector<8x8xi1>, vector<8x8xf32>
    %c0_i32_178 = arith.constant 0 : i32
    %362 = vector.broadcast %c0_i32_178 : i32 to vector<8x8xi32>
    %363 = arith.cmpi eq, %356, %362 : vector<8x8xi32>
    %364 = arith.select %363, %276, %322 : vector<8x8xi1>, vector<8x8xf32>
    %365 = arith.select %358, %361, %364 : vector<8x8xi1>, vector<8x8xf32>
    %c44 = arith.constant 44 : index
    %366 = memref.load %arg3[%c44] : memref<56xf32, #tpu.memory_space<smem>>
    %367 = vector.broadcast %366 : f32 to vector<8x8xf32>
    %368 = arith.addf %365, %367 : vector<8x8xf32>
    %cst_179 = arith.constant 0.000000e+00 : f32
    %369 = vector.broadcast %cst_179 : f32 to vector<8x8xf32>
    %370 = arith.maximumf %368, %369 : vector<8x8xf32>
    %cst_180 = arith.constant 0.000000e+00 : f32
    %371 = vector.broadcast %cst_180 : f32 to vector<10x10xf32>
    %c0_181 = arith.constant 0 : index
    %c0_182 = arith.constant 0 : index
    %372 = vector.load %arg7[%c0_181, %c0_182] : memref<10x10xf32, #tpu.memory_space<vmem>>, vector<10x10xf32>
    tpu.vector_store %arg7[%c0_181, %c0_182], %371 {strides = array<i32>} : memref<10x10xf32, #tpu.memory_space<vmem>>, vector<10x10xf32>,
    %c1_183 = arith.constant 1 : index
    %c1_184 = arith.constant 1 : index
    %373 = vector.load %arg7[%c1_183, %c1_184] : memref<10x10xf32, #tpu.memory_space<vmem>>, vector<8x8xf32>
    tpu.vector_store %arg7[%c1_183, %c1_184], %370 {strides = array<i32>} : memref<10x10xf32, #tpu.memory_space<vmem>>, vector<8x8xf32>,
    %cst_185 = arith.constant 0.000000e+00 : f32
    %374 = vector.broadcast %cst_185 : f32 to vector<8x8xf32>
    %c34 = arith.constant 34 : index
    %375 = memref.load %arg3[%c34] : memref<56xf32, #tpu.memory_space<smem>>
    %c0_186 = arith.constant 0 : index
    %c0_187 = arith.constant 0 : index
    %376 = vector.load %arg7[%c0_186, %c0_187] : memref<10x10xf32, #tpu.memory_space<vmem>>, vector<8x8xf32>
    %377 = vector.broadcast %375 : f32 to vector<8x8xf32>
    %378 = arith.mulf %377, %376 : vector<8x8xf32>
    %379 = arith.addf %374, %378 : vector<8x8xf32>
    %c35 = arith.constant 35 : index
    %380 = memref.load %arg3[%c35] : memref<56xf32, #tpu.memory_space<smem>>
    %c0_188 = arith.constant 0 : index
    %c1_189 = arith.constant 1 : index
    %381 = vector.load %arg7[%c0_188, %c1_189] : memref<10x10xf32, #tpu.memory_space<vmem>>, vector<8x8xf32>
    %382 = vector.broadcast %380 : f32 to vector<8x8xf32>
    %383 = arith.mulf %382, %381 : vector<8x8xf32>
    %384 = arith.addf %379, %383 : vector<8x8xf32>
    %c36 = arith.constant 36 : index
    %385 = memref.load %arg3[%c36] : memref<56xf32, #tpu.memory_space<smem>>
    %c0_190 = arith.constant 0 : index
    %c2_191 = arith.constant 2 : index
    %386 = vector.load %arg7[%c0_190, %c2_191] : memref<10x10xf32, #tpu.memory_space<vmem>>, vector<8x8xf32>
    %387 = vector.broadcast %385 : f32 to vector<8x8xf32>
    %388 = arith.mulf %387, %386 : vector<8x8xf32>
    %389 = arith.addf %384, %388 : vector<8x8xf32>
    %c37 = arith.constant 37 : index
    %390 = memref.load %arg3[%c37] : memref<56xf32, #tpu.memory_space<smem>>
    %c1_192 = arith.constant 1 : index
    %c0_193 = arith.constant 0 : index
    %391 = vector.load %arg7[%c1_192, %c0_193] : memref<10x10xf32, #tpu.memory_space<vmem>>, vector<8x8xf32>
    %392 = vector.broadcast %390 : f32 to vector<8x8xf32>
    %393 = arith.mulf %392, %391 : vector<8x8xf32>
    %394 = arith.addf %389, %393 : vector<8x8xf32>
    %c38 = arith.constant 38 : index
    %395 = memref.load %arg3[%c38] : memref<56xf32, #tpu.memory_space<smem>>
    %c1_194 = arith.constant 1 : index
    %c1_195 = arith.constant 1 : index
    %396 = vector.load %arg7[%c1_194, %c1_195] : memref<10x10xf32, #tpu.memory_space<vmem>>, vector<8x8xf32>
    %397 = vector.broadcast %395 : f32 to vector<8x8xf32>
    %398 = arith.mulf %397, %396 : vector<8x8xf32>
    %399 = arith.addf %394, %398 : vector<8x8xf32>
    %c39 = arith.constant 39 : index
    %400 = memref.load %arg3[%c39] : memref<56xf32, #tpu.memory_space<smem>>
    %c1_196 = arith.constant 1 : index
    %c2_197 = arith.constant 2 : index
    %401 = vector.load %arg7[%c1_196, %c2_197] : memref<10x10xf32, #tpu.memory_space<vmem>>, vector<8x8xf32>
    %402 = vector.broadcast %400 : f32 to vector<8x8xf32>
    %403 = arith.mulf %402, %401 : vector<8x8xf32>
    %404 = arith.addf %399, %403 : vector<8x8xf32>
    %c40 = arith.constant 40 : index
    %405 = memref.load %arg3[%c40] : memref<56xf32, #tpu.memory_space<smem>>
    %c2_198 = arith.constant 2 : index
    %c0_199 = arith.constant 0 : index
    %406 = vector.load %arg7[%c2_198, %c0_199] : memref<10x10xf32, #tpu.memory_space<vmem>>, vector<8x8xf32>
    %407 = vector.broadcast %405 : f32 to vector<8x8xf32>
    %408 = arith.mulf %407, %406 : vector<8x8xf32>
    %409 = arith.addf %404, %408 : vector<8x8xf32>
    %c41 = arith.constant 41 : index
    %410 = memref.load %arg3[%c41] : memref<56xf32, #tpu.memory_space<smem>>
    %c2_200 = arith.constant 2 : index
    %c1_201 = arith.constant 1 : index
    %411 = vector.load %arg7[%c2_200, %c1_201] : memref<10x10xf32, #tpu.memory_space<vmem>>, vector<8x8xf32>
    %412 = vector.broadcast %410 : f32 to vector<8x8xf32>
    %413 = arith.mulf %412, %411 : vector<8x8xf32>
    %414 = arith.addf %409, %413 : vector<8x8xf32>
    %c42 = arith.constant 42 : index
    %415 = memref.load %arg3[%c42] : memref<56xf32, #tpu.memory_space<smem>>
    %c2_202 = arith.constant 2 : index
    %c2_203 = arith.constant 2 : index
    %416 = vector.load %arg7[%c2_202, %c2_203] : memref<10x10xf32, #tpu.memory_space<vmem>>, vector<8x8xf32>
    %417 = vector.broadcast %415 : f32 to vector<8x8xf32>
    %418 = arith.mulf %417, %416 : vector<8x8xf32>
    %419 = arith.addf %414, %418 : vector<8x8xf32>
    %c45 = arith.constant 45 : index
    %420 = memref.load %arg3[%c45] : memref<56xf32, #tpu.memory_space<smem>>
    %421 = vector.broadcast %420 : f32 to vector<8x8xf32>
    %422 = arith.addf %419, %421 : vector<8x8xf32>
    %cst_204 = arith.constant 0.000000e+00 : f32
    %423 = vector.broadcast %cst_204 : f32 to vector<8x8xf32>
    %c46 = arith.constant 46 : index
    %424 = memref.load %arg3[%c46] : memref<56xf32, #tpu.memory_space<smem>>
    %c0_205 = arith.constant 0 : index
    %c0_206 = arith.constant 0 : index
    %c0_207 = arith.constant 0 : index
    %c0_208 = arith.constant 0 : index
    %425 = vector.load %arg2[%c0_205, %c0_206, %c0_207, %c0_208] : memref<1x4x9x9xf32, #tpu.memory_space<vmem>>, vector<1x1x8x8xf32>
    %426 = vector.shape_cast %425 : vector<1x1x8x8xf32> to vector<8x8xf32>
    %427 = vector.broadcast %424 : f32 to vector<8x8xf32>
    %428 = arith.mulf %427, %426 : vector<8x8xf32>
    %429 = arith.addf %423, %428 : vector<8x8xf32>
    %c47 = arith.constant 47 : index
    %430 = memref.load %arg3[%c47] : memref<56xf32, #tpu.memory_space<smem>>
    %c0_209 = arith.constant 0 : index
    %c1_210 = arith.constant 1 : index
    %c0_211 = arith.constant 0 : index
    %c0_212 = arith.constant 0 : index
    %431 = vector.load %arg2[%c0_209, %c1_210, %c0_211, %c0_212] : memref<1x4x9x9xf32, #tpu.memory_space<vmem>>, vector<1x1x8x8xf32>
    %432 = vector.shape_cast %431 : vector<1x1x8x8xf32> to vector<8x8xf32>
    %433 = vector.broadcast %430 : f32 to vector<8x8xf32>
    %434 = arith.mulf %433, %432 : vector<8x8xf32>
    %435 = arith.addf %429, %434 : vector<8x8xf32>
    %c48 = arith.constant 48 : index
    %436 = memref.load %arg3[%c48] : memref<56xf32, #tpu.memory_space<smem>>
    %c0_213 = arith.constant 0 : index
    %c0_214 = arith.constant 0 : index
    %c0_215 = arith.constant 0 : index
    %c1_216 = arith.constant 1 : index
    %437 = vector.load %arg2[%c0_213, %c0_214, %c0_215, %c1_216] : memref<1x4x9x9xf32, #tpu.memory_space<vmem>>, vector<1x1x8x8xf32>
    %438 = vector.shape_cast %437 : vector<1x1x8x8xf32> to vector<8x8xf32>
    %439 = vector.broadcast %436 : f32 to vector<8x8xf32>
    %440 = arith.mulf %439, %438 : vector<8x8xf32>
    %441 = arith.addf %435, %440 : vector<8x8xf32>
    %c49 = arith.constant 49 : index
    %442 = memref.load %arg3[%c49] : memref<56xf32, #tpu.memory_space<smem>>
    %c0_217 = arith.constant 0 : index
    %c2_218 = arith.constant 2 : index
    %c0_219 = arith.constant 0 : index
    %c0_220 = arith.constant 0 : index
    %443 = vector.load %arg2[%c0_217, %c2_218, %c0_219, %c0_220] : memref<1x4x9x9xf32, #tpu.memory_space<vmem>>, vector<1x1x8x8xf32>
    %444 = vector.shape_cast %443 : vector<1x1x8x8xf32> to vector<8x8xf32>
    %445 = vector.broadcast %442 : f32 to vector<8x8xf32>
    %446 = arith.mulf %445, %444 : vector<8x8xf32>
    %447 = arith.addf %441, %446 : vector<8x8xf32>
    %c50 = arith.constant 50 : index
    %448 = memref.load %arg3[%c50] : memref<56xf32, #tpu.memory_space<smem>>
    %c0_221 = arith.constant 0 : index
    %c3_222 = arith.constant 3 : index
    %c0_223 = arith.constant 0 : index
    %c0_224 = arith.constant 0 : index
    %449 = vector.load %arg2[%c0_221, %c3_222, %c0_223, %c0_224] : memref<1x4x9x9xf32, #tpu.memory_space<vmem>>, vector<1x1x8x8xf32>
    %450 = vector.shape_cast %449 : vector<1x1x8x8xf32> to vector<8x8xf32>
    %451 = vector.broadcast %448 : f32 to vector<8x8xf32>
    %452 = arith.mulf %451, %450 : vector<8x8xf32>
    %453 = arith.addf %447, %452 : vector<8x8xf32>
    %c51 = arith.constant 51 : index
    %454 = memref.load %arg3[%c51] : memref<56xf32, #tpu.memory_space<smem>>
    %c0_225 = arith.constant 0 : index
    %c2_226 = arith.constant 2 : index
    %c0_227 = arith.constant 0 : index
    %c1_228 = arith.constant 1 : index
    %455 = vector.load %arg2[%c0_225, %c2_226, %c0_227, %c1_228] : memref<1x4x9x9xf32, #tpu.memory_space<vmem>>, vector<1x1x8x8xf32>
    %456 = vector.shape_cast %455 : vector<1x1x8x8xf32> to vector<8x8xf32>
    %457 = vector.broadcast %454 : f32 to vector<8x8xf32>
    %458 = arith.mulf %457, %456 : vector<8x8xf32>
    %459 = arith.addf %453, %458 : vector<8x8xf32>
    %c52 = arith.constant 52 : index
    %460 = memref.load %arg3[%c52] : memref<56xf32, #tpu.memory_space<smem>>
    %c0_229 = arith.constant 0 : index
    %c0_230 = arith.constant 0 : index
    %c1_231 = arith.constant 1 : index
    %c0_232 = arith.constant 0 : index
    %461 = vector.load %arg2[%c0_229, %c0_230, %c1_231, %c0_232] : memref<1x4x9x9xf32, #tpu.memory_space<vmem>>, vector<1x1x8x8xf32>
    %462 = vector.shape_cast %461 : vector<1x1x8x8xf32> to vector<8x8xf32>
    %463 = vector.broadcast %460 : f32 to vector<8x8xf32>
    %464 = arith.mulf %463, %462 : vector<8x8xf32>
    %465 = arith.addf %459, %464 : vector<8x8xf32>
    %c53 = arith.constant 53 : index
    %466 = memref.load %arg3[%c53] : memref<56xf32, #tpu.memory_space<smem>>
    %c0_233 = arith.constant 0 : index
    %c1_234 = arith.constant 1 : index
    %c1_235 = arith.constant 1 : index
    %c0_236 = arith.constant 0 : index
    %467 = vector.load %arg2[%c0_233, %c1_234, %c1_235, %c0_236] : memref<1x4x9x9xf32, #tpu.memory_space<vmem>>, vector<1x1x8x8xf32>
    %468 = vector.shape_cast %467 : vector<1x1x8x8xf32> to vector<8x8xf32>
    %469 = vector.broadcast %466 : f32 to vector<8x8xf32>
    %470 = arith.mulf %469, %468 : vector<8x8xf32>
    %471 = arith.addf %465, %470 : vector<8x8xf32>
    %c54 = arith.constant 54 : index
    %472 = memref.load %arg3[%c54] : memref<56xf32, #tpu.memory_space<smem>>
    %c0_237 = arith.constant 0 : index
    %c0_238 = arith.constant 0 : index
    %c1_239 = arith.constant 1 : index
    %c1_240 = arith.constant 1 : index
    %473 = vector.load %arg2[%c0_237, %c0_238, %c1_239, %c1_240] : memref<1x4x9x9xf32, #tpu.memory_space<vmem>>, vector<1x1x8x8xf32>
    %474 = vector.shape_cast %473 : vector<1x1x8x8xf32> to vector<8x8xf32>
    %475 = vector.broadcast %472 : f32 to vector<8x8xf32>
    %476 = arith.mulf %475, %474 : vector<8x8xf32>
    %477 = arith.addf %471, %476 : vector<8x8xf32>
    %c55 = arith.constant 55 : index
    %478 = memref.load %arg3[%c55] : memref<56xf32, #tpu.memory_space<smem>>
    %479 = vector.broadcast %478 : f32 to vector<8x8xf32>
    %480 = arith.addf %477, %479 : vector<8x8xf32>
    %481 = arith.addf %422, %480 : vector<8x8xf32>
    %c0_241 = arith.constant 0 : index
    %c0_242 = arith.constant 0 : index
    %c0_243 = arith.constant 0 : index
    %482 = vector.load %arg4[%c0_241, %c0_242, %c0_243] : memref<1x8x8xf32, #tpu.memory_space<vmem>>, vector<1x8x8xf32>
    %483 = vector.shape_cast %482 : vector<1x8x8xf32> to vector<8x8xf32>
    %484 = vector.shape_cast %481 : vector<8x8xf32> to vector<1x8x8xf32>
    tpu.vector_store %arg4[%c0_241, %c0_242, %c0_243], %484 {strides = array<i32>} : memref<1x8x8xf32, #tpu.memory_space<vmem>>, vector<1x8x8xf32>,
    return
  }
  func.func @transform_0(%arg0: i32) -> (i32, i32, i32) {
    %c0_i32 = arith.constant 0 : i32
    %c0_i32_0 = arith.constant 0 : i32
    %c0_i32_1 = arith.constant 0 : i32
    return %arg0, %c0_i32, %c0_i32_0 : i32, i32, i32
  }
  func.func @transform_1(%arg0: i32) -> (i32, i32, i32, i32) {
    %c0_i32 = arith.constant 0 : i32
    %c0_i32_0 = arith.constant 0 : i32
    %c0_i32_1 = arith.constant 0 : i32
    %c0_i32_2 = arith.constant 0 : i32
    return %arg0, %c0_i32, %c0_i32_0, %c0_i32_1 : i32, i32, i32, i32
  }
  func.func @transform_2(%arg0: i32) -> i32 {
    %c0_i32 = arith.constant 0 : i32
    %c0_i32_0 = arith.constant 0 : i32
    return %c0_i32 : i32
  }
  func.func @transform_3(%arg0: i32) -> (i32, i32, i32) {
    %c0_i32 = arith.constant 0 : i32
    %c0_i32_0 = arith.constant 0 : i32
    %c0_i32_1 = arith.constant 0 : i32
    return %arg0, %c0_i32, %c0_i32_0 : i32, i32, i32
  }
}

</mosaic_0001>

<bundles_post_ra>
// kernel: preact_block_forward.6
= control target key start
LH: loop header
LB: loop body
LE: loop exit
PB: predicated region body
PF: predicated region fallthrough
CT: control target
= control target key end

     0   :  { %vm12_vm0 = vcmask 523264   ;;  %vm43_vm1 = vcmask 1040384   ;;  %vm45_vm2 = vcmask 517120   ;;  %s84_s0 = inlined_call_operand.vmem [shape: f32[32,64], index: 0, kind: input, shape index: {}]   ;;  %s85_s1 = inlined_call_operand.vmem [shape: f32[1,2,64], index: 1, kind: output, shape index: {}]  }
   0x1   :  { %v8_v0 = vld [vmem:[%s84_s0] sm:$0xff]  ;;  %v9_v1 = vld [vmem:[%s84_s0 + $0x8] sm:$0xff]  ;;  %v10_v2 = vld [vmem:[%s84_s0 + $0x10] sm:$0xff] }
   0x2   :  { %v11_v3 = vld [vmem:[%s84_s0 + $0x18] sm:$0xff]  ;;  %v13_v4 = vsel %vm12_vm0, %v8_v0, 0.0  ;;  %v14_v5 = vsel %vm12_vm0, %v9_v1, 0.0  ;;  %v16_v6 = vsel %vm12_vm0, %v10_v2, 0.0  ;;  %v26_v7 = vmul.f32 %v8_v0, %v8_v0 }
   0x3   :  { %v15_v8 = vadd.f32 %v14_v5, %v13_v4  ;;  %v27_v9 = vmul.f32 %v9_v1, %v9_v1  ;;  %v28_v10 = vmul.f32 %v10_v2, %v10_v2  ;;  %v18_v11 = vsel %vm12_vm0, %v11_v3, 0.0 }
   0x4   :  { %v29_v12 = vmul.f32 %v11_v3, %v11_v3  ;;  %v30_v13 = vsel %vm12_vm0, %v26_v7, 0.0 }
   0x5   :  { %v17_v14 = vadd.f32 %v16_v6, %v15_v8  ;;  %v31_v15 = vsel %vm12_vm0, %v27_v9, 0.0  ;;  %v33_v16 = vsel %vm12_vm0, %v28_v10, 0.0 }
   0x6   :  { %v32_v17 = vadd.f32 %v31_v15, %v30_v13  ;;  %v35_v19 = vsel %vm12_vm0, %v29_v12, 0.0 }
   0x7   :  { %v19_v18 = vadd.f32 %v18_v11, %v17_v14 }
   0x8   :  { %v34_v20 = vadd.f32 %v33_v16, %v32_v17 }
   0x9   :  { %v20_v21 = vrot.slane %v19_v18, 4 }
   0xa   :  { %v36_v22 = vadd.f32 %v35_v19, %v34_v20 }
   0xb   :  { %v21_v23 = vadd.f32 %v20_v21, %v19_v18 }
   0xc   :  { %v37_v24 = vrot.slane %v36_v22, 4 }
   0xd   :  { %v22_v25 = vrot.slane %v21_v23, 2 }
   0xe   :  { %v38_v26 = vadd.f32 %v37_v24, %v36_v22 }
   0xf   :  { %v23_v27 = vadd.f32 %v22_v25, %v21_v23 }
  0x10   :  { %v39_v28 = vrot.slane %v38_v26, 2 }
  0x11   :  { %v24_v29 = vrot.slane %v23_v27, 1 }
  0x12   :  { %v40_v30 = vadd.f32 %v39_v28, %v38_v26 }
  0x13   :  { %v25_v31 = vadd.f32 %v24_v29, %v23_v27 }
  0x14   :  { %v41_v32 = vrot.slane %v40_v30, 1 }
  0x16   :  { %v42_v33 = vadd.f32 %v41_v32, %v40_v30 }
  0x18   :  { %v44_v34 = vsel %vm43_vm1, %v25_v31, %v42_v33 }
  0x19   :  { %46 = vst.msk [vmem:[%s85_s1] sm:$0x3] %vm45_vm2, %v44_v34 }

// kernel: preact_block_forward.7
= control target key start
LH: loop header
LB: loop body
LE: loop exit
PB: predicated region body
PF: predicated region fallthrough
CT: control target
= control target key end

     0   :  { %vm130_vm0 = vcmask 1041408   ;;  %vm105_vm1 = vcmask 31744   ;;  %vm231_vm2 = vcmask 64512   ;;  %s483_s3 = inlined_call_operand.vmem [shape: bf16[4,8], index: 3, kind: input, shape index: {}]   ;;  %s484_s0 = inlined_call_operand.vmem [shape: f32[128,4], index: 0, kind: input, shape index: {}]   ;;  %s485_s1 = inlined_call_operand.vmem [shape: f32[1,4], index: 1, kind: input, shape index: {}]   ;;  %s486_s2 = inlined_call_operand.vmem [shape: f32[1,4], index: 2, kind: input, shape index: {}]   ;;  %s487_s4 = inlined_call_operand.vmem [shape: f32[128,8], index: 4, kind: output, shape index: {}]  }
   0x1   :  { %v104_v0 = vld [vmem:[%s483_s3] sm:$0x3]  ;;  %v19_v2 = vld [vmem:[%s484_s0 + $0x8] sm:$0xff]  ;;  %v20_v11 = vld [vmem:[%s484_s0 + $0x10] sm:$0xff] }
   0x2   :  { %v18_v1 = vld [vmem:[%s484_s0] sm:$0xff]  ;;  %291 = vmatprep.subr.msk.bf16.mxu0 %vm130_vm0, %v104_v0  ;;  %292 = vmatprep.subr.msk.bf16.mxu1 %vm130_vm0, %v104_v0  ;;  %v132_v3 = vsel %vm130_vm0, %v104_v0, 0  ;;  %v27_v9 = vld [vmem:[%s484_s0 + $0x48] sm:$0xff]  ;;  %v21_v12 = vld [vmem:[%s484_s0 + $0x18] sm:$0xff] }
   0x3   :  { %v330_v4 = vld [vmem:[%s485_s1] ss:$0 sm:$0xff]  ;;  %272 = vmatpush3.bf16.msra.mxu0 %v132_v3  ;;  %290 = vmatpush3.bf16.msra.mxu1 %v132_v3  ;;  %v28_v16 = vld [vmem:[%s484_s0 + $0x50] sm:$0xff]  ;;  %v29_v17 = vld [vmem:[%s484_s0 + $0x58] sm:$0xff] }
   0x4   :  { %v335_v5 = vld [vmem:[%s486_s2] ss:$0 sm:$0xff]  ;;  %v41_v7 = vmul.f32 %v330_v4, %v18_v1  ;;  %v42_v8 = vmul.f32 %v330_v4, %v19_v2  ;;  %v50_v13 = vmul.f32 %v330_v4, %v27_v9  ;;  %v43_v14 = vmul.f32 %v330_v4, %v20_v11  ;;  %v23_v27 = vld [vmem:[%s484_s0 + $0x28] sm:$0xff]  ;;  %v24_v38 = vld [vmem:[%s484_s0 + $0x30] sm:$0xff] }
   0x5   :  { %v26_v6 = vld [vmem:[%s484_s0 + $0x40] sm:$0xff]  ;;  %v44_v15 = vmul.f32 %v330_v4, %v21_v12  ;;  %v51_v21 = vmul.f32 %v330_v4, %v28_v16  ;;  %v52_v25 = vmul.f32 %v330_v4, %v29_v17  ;;  %v31_v37 = vld [vmem:[%s484_s0 + $0x68] sm:$0xff]  ;;  %v46_v42 = vmul.f32 %v330_v4, %v23_v27  ;;  %v25_v43 = vld [vmem:[%s484_s0 + $0x38] sm:$0xff] }
   0x6   :  { %v49_v10 = vmul.f32 %v330_v4, %v26_v6  ;;  %v64_v18 = vadd.f32 %v335_v5, %v41_v7  ;;  %v65_v19 = vadd.f32 %v335_v5, %v42_v8  ;;  %v73_v22 = vadd.f32 %v335_v5, %v50_v13  ;;  %v22_v26 = vld [vmem:[%s484_s0 + $0x20] sm:$0xff]  ;;  %v32_v52 = vld [vmem:[%s484_s0 + $0x70] sm:$0xff]  ;;  %v33_v53 = vld [vmem:[%s484_s0 + $0x78] sm:$0xff] }
   0x7   :  { %v66_v23 = vadd.f32 %v335_v5, %v43_v14  ;;  %v67_v24 = vadd.f32 %v335_v5, %v44_v15  ;;  %v74_v31 = vadd.f32 %v335_v5, %v51_v21  ;;  %v30_v32 = vld [vmem:[%s484_s0 + $0x60] sm:$0xff]  ;;  %v75_v36 = vadd.f32 %v335_v5, %v52_v25 }
   0x8   :  { %v72_v20 = vadd.f32 %v335_v5, %v49_v10  ;;  %v80_v28 = vmax.f32 %v64_v18, 0.0  ;;  %v81_v29 = vmax.f32 %v65_v19, 0.0  ;;  %v89_v33 = vmax.f32 %v73_v22, 0.0 }
   0x9   :  { %v82_v34 = vmax.f32 %v66_v23, 0.0  ;;  %v83_v35 = vmax.f32 %v67_v24, 0.0  ;;  %v90_v40 = vmax.f32 %v74_v31, 0.0  ;;  %v45_v41 = vmul.f32 %v330_v4, %v22_v26 }
   0xa   :  { %v88_v30 = vmax.f32 %v72_v20, 0.0  ;;  %v96_v39 = vpack.c.bf16 %v81_v29, %v80_v28  ;;  %v91_v46 = vmax.f32 %v75_v36, 0.0  ;;  %v53_v47 = vmul.f32 %v330_v4, %v30_v32 }
   0xb   :  { %v97_v45 = vpack.c.bf16 %v83_v35, %v82_v34  ;;  %v68_v48 = vadd.f32 %v335_v5, %v45_v41  ;;  %v69_v49 = vadd.f32 %v335_v5, %v46_v42  ;;  %v54_v50 = vmul.f32 %v330_v4, %v31_v37 }
   0xc   :  { %v100_v44 = vpack.c.bf16 %v89_v33, %v88_v30  ;;  %273 = vmatprep.mubr.msk.bf16.mxu0 %vm105_vm1, %v96_v39  ;;  %v47_v51 = vmul.f32 %v330_v4, %v24_v38  ;;  %v101_v54 = vpack.c.bf16 %v91_v46, %v90_v40  ;;  %v76_v55 = vadd.f32 %v335_v5, %v53_v47 }
   0xd   :  { %274 = vmatmul.mubr.msk.bf16.vlgmr.msra.gmra.mrb[0].mxu0 %vm105_vm1, %v97_v45  ;;  %v48_v56 = vmul.f32 %v330_v4, %v25_v43  ;;  %v84_v57 = vmax.f32 %v68_v48, 0.0  ;;  %v85_v58 = vmax.f32 %v69_v49, 0.0  ;;  %v77_v59 = vadd.f32 %v335_v5, %v54_v50 }
   0xe   :  { %281 = vmatprep.mubr.msk.bf16.mxu1 %vm105_vm1, %v100_v44  ;;  %v70_v60 = vadd.f32 %v335_v5, %v47_v51  ;;  %v92_v61 = vmax.f32 %v76_v55, 0.0  ;;  %v55_v63 = vmul.f32 %v330_v4, %v32_v52  ;;  %v56_v0 = vmul.f32 %v330_v4, %v33_v53 }
   0xf   :  { %282 = vmatmul.mubr.msk.bf16.vlgmr.msra.gmra.mrb[0].mxu1 %vm105_vm1, %v101_v54  ;;  %v71_v62 = vadd.f32 %v335_v5, %v48_v56  ;;  %v98_v1 = vpack.c.bf16 %v85_v58, %v84_v57  ;;  %v93_v2 = vmax.f32 %v77_v59, 0.0 }
  0x10   :  { %v86_v3 = vmax.f32 %v70_v60, 0.0  ;;  %v78_v7 = vadd.f32 %v335_v5, %v55_v63  ;;  %v79_v8 = vadd.f32 %v335_v5, %v56_v0 }
  0x11   :  { %v87_v6 = vmax.f32 %v71_v62, 0.0  ;;  %277 = vmatprep.mubr.msk.bf16.mxu0 %vm105_vm1, %v98_v1  ;;  %v102_v9 = vpack.c.bf16 %v93_v2, %v92_v61 }
  0x12   :  { %v94_v11 = vmax.f32 %v78_v7, 0.0  ;;  %v95_v12 = vmax.f32 %v79_v8, 0.0 }
  0x13   :  { %v99_v10 = vpack.c.bf16 %v87_v6, %v86_v3  ;;  %285 = vmatprep.mubr.msk.bf16.mxu1 %vm105_vm1, %v102_v9 }
  0x14   :  { %v103_v13 = vpack.c.bf16 %v95_v12, %v94_v11 }
  0x15   :  { %278 = vmatmul.mubr.msk.bf16.gmra.mrb[4].mxu0 %vm105_vm1, %v99_v10 }
  0x17   :  { %286 = vmatmul.mubr.msk.bf16.gmra.mrb[4].mxu1 %vm105_vm1, %v103_v13 }
  0xe0   :  { %v275_v4 = vpop.f32.mrb[0].mxu0 }
  0xe1   :  { %234 = vst.msk [vmem:[%s487_s4 + $0x10] sm:$0xff] %vm231_vm2, %v275_v4  ;;  %v168_v5 = vpop.f32.mrb[1].mxu0 }
  0xe2   :  { %v283_v14 = vpop.f32.mrb[0].mxu1  ;;  %232 = vst.msk [vmem:[%s487_s4] sm:$0xff] %vm231_vm2, %v168_v5  ;;  %v276_v15 = vpop.f32.mrb[2].mxu0 }
  0xe3   :  { %242 = vst.msk [vmem:[%s487_s4 + $0x50] sm:$0xff] %vm231_vm2, %v283_v14  ;;  %v200_v16 = vpop.f32.mrb[1].mxu1  ;;  %235 = vst.msk [vmem:[%s487_s4 + $0x18] sm:$0xff] %vm231_vm2, %v276_v15  ;;  %v171_v17 = vpop.f32.mrb[3].mxu0 }
  0xe4   :  { %240 = vst.msk [vmem:[%s487_s4 + $0x40] sm:$0xff] %vm231_vm2, %v200_v16  ;;  %v284_v18 = vpop.f32.mrb[2].mxu1  ;;  %233 = vst.msk [vmem:[%s487_s4 + $0x8] sm:$0xff] %vm231_vm2, %v171_v17 }
  0xe5   :  { %243 = vst.msk [vmem:[%s487_s4 + $0x58] sm:$0xff] %vm231_vm2, %v284_v18  ;;  %v203_v19 = vpop.f32.mrb[3].mxu1 }
  0xe6   :  { %241 = vst.msk [vmem:[%s487_s4 + $0x48] sm:$0xff] %vm231_vm2, %v203_v19 }
  0xe8   :  { %v279_v20 = vpop.f32.mrb[4].mxu0 }
  0xe9   :  { %238 = vst.msk [vmem:[%s487_s4 + $0x30] sm:$0xff] %vm231_vm2, %v279_v20  ;;  %v184_v21 = vpop.f32.mrb[5].mxu0 }
  0xea   :  { %v287_v22 = vpop.f32.mrb[4].mxu1  ;;  %236 = vst.msk [vmem:[%s487_s4 + $0x20] sm:$0xff] %vm231_vm2, %v184_v21  ;;  %v280_v23 = vpop.f32.mrb[6].mxu0 }
  0xeb   :  { %246 = vst.msk [vmem:[%s487_s4 + $0x70] sm:$0xff] %vm231_vm2, %v287_v22  ;;  %v216_v24 = vpop.f32.mrb[5].mxu1  ;;  %239 = vst.msk [vmem:[%s487_s4 + $0x38] sm:$0xff] %vm231_vm2, %v280_v23  ;;  %v187_v25 = vpop.f32.mrb[7].mxu0 }
  0xec   :  { %244 = vst.msk [vmem:[%s487_s4 + $0x60] sm:$0xff] %vm231_vm2, %v216_v24  ;;  %v288_v26 = vpop.f32.mrb[6].mxu1  ;;  %237 = vst.msk [vmem:[%s487_s4 + $0x28] sm:$0xff] %vm231_vm2, %v187_v25 }
  0xed   :  { %247 = vst.msk [vmem:[%s487_s4 + $0x78] sm:$0xff] %vm231_vm2, %v288_v26  ;;  %v219_v27 = vpop.f32.mrb[7].mxu1 }
  0xee   :  { %245 = vst.msk [vmem:[%s487_s4 + $0x68] sm:$0xff] %vm231_vm2, %v219_v27 }

// kernel: preact_block_forward.11
= control target key start
LH: loop header
LB: loop body
LE: loop exit
PB: predicated region body
PF: predicated region fallthrough
CT: control target
= control target key end

     0   :  { %v429_v0 = vmov 0   ;;  %vm286_vm0 = vcmask 64512   ;;  %s634_s1 = inlined_call_operand.vmem [shape: f32[128,1], index: 1, kind: input, shape index: {}]   ;;  %s635_s0 = inlined_call_operand.vmem [shape: bf16[128,8], index: 0, kind: input, shape index: {}]   ;;  %s636_s2 = inlined_call_operand.vmem [shape: f32[128,8], index: 2, kind: input, shape index: {}]   ;;  %s637_s3 = inlined_call_operand.vmem [shape: f32[128,8], index: 3, kind: output, shape index: {}]  }
   0x1   :  { %364 = vset.pattern.permute.xlu1 %v429_v0  ;;  %363 = vset.pattern.permute.xlu0 %v429_v0  ;;  %v16_v1 = vld [vmem:[%s634_s1 + $0x10] sm:$0xff]  ;;  %v14_v2 = vld [vmem:[%s634_s1] sm:$0xff]  ;;  %v17_v3 = vld [vmem:[%s634_s1 + $0x18] sm:$0xff] }
   0x2   :  { %v309_v4 = vmul.f32 -1.442695, %v16_v1  ;;  %v307_v5 = vmul.f32 -1.442695, %v14_v2  ;;  %v310_v6 = vmul.f32 -1.442695, %v17_v3 }
   0x3   :  { %v15_v7 = vld [vmem:[%s634_s1 + $0x8] sm:$0xff]  ;;  %v18_v9 = vld [vmem:[%s634_s1 + $0x20] sm:$0xff]  ;;  %v21_v13 = vld [vmem:[%s634_s1 + $0x38] sm:$0xff] }
   0x4   :  { %v19_v8 = vld [vmem:[%s634_s1 + $0x28] sm:$0xff]  ;;  %365 = vpow2.f32 %v309_v4  ;;  %v308_v10 = vmul.f32 -1.442695, %v15_v7  ;;  %v311_v12 = vmul.f32 -1.442695, %v18_v9  ;;  %v20_v14 = vld [vmem:[%s634_s1 + $0x30] sm:$0xff] }
   0x5   :  { %v312_v11 = vmul.f32 -1.442695, %v19_v8  ;;  %367 = vpow2.f32 %v307_v5  ;;  %v23_v15 = vld [vmem:[%s634_s1 + $0x48] sm:$0xff]  ;;  %v314_v16 = vmul.f32 -1.442695, %v21_v13  ;;  %v22_v18 = vld [vmem:[%s634_s1 + $0x40] sm:$0xff] }
   0x6   :  { %369 = vpow2.f32 %v310_v6  ;;  %v313_v17 = vmul.f32 -1.442695, %v20_v14  ;;  %v316_v19 = vmul.f32 -1.442695, %v23_v15  ;;  %v25_v20 = vld [vmem:[%s634_s1 + $0x58] sm:$0xff]  ;;  %v24_v22 = vld [vmem:[%s634_s1 + $0x50] sm:$0xff] }
   0x7   :  { %371 = vpow2.f32 %v308_v10  ;;  %v315_v21 = vmul.f32 -1.442695, %v22_v18  ;;  %v318_v23 = vmul.f32 -1.442695, %v25_v20  ;;  %v317_v24 = vmul.f32 -1.442695, %v24_v22 }
   0x8   :  { %373 = vpow2.f32 %v312_v11  ;;  %v27_v28 = vld [vmem:[%s634_s1 + $0x68] sm:$0xff]  ;;  %v26_v45 = vld [vmem:[%s634_s1 + $0x60] sm:$0xff]  ;;  %v29_v47 = vld [vmem:[%s634_s1 + $0x78] sm:$0xff] }
   0x9   :  { %375 = vpow2.f32 %v311_v12  ;;  %v320_v35 = vmul.f32 -1.442695, %v27_v28  ;;  %v28_v50 = vld [vmem:[%s634_s1 + $0x70] sm:$0xff]  ;;  %v319_v52 = vmul.f32 -1.442695, %v26_v45  ;;  %v324_v18 = vld [vmem:[%s635_s0] sm:$0xff]  }
   0xa   :  { %377 = vpow2.f32 %v314_v16  ;;  %v322_v54 = vmul.f32 -1.442695, %v29_v47  ;;  %v321_v56 = vmul.f32 -1.442695, %v28_v50  ;;  %v325_v20 = vunpack.c.l.bf16 %v324_v18 }
   0xb   :  { %379 = vpow2.f32 %v313_v17  ;;  %v355_v17 = vld [vmem:[%s635_s0 + $0x8] sm:$0xff]   ;;  %v326_v28 = vunpack.c.h.bf16 %v324_v18 }
   0xc   :  { %381 = vpow2.f32 %v316_v19  ;;  %v329_v19 = vunpack.c.l.bf16 %v355_v17 }
   0xd   :  { %383 = vpow2.f32 %v315_v21  ;;  %v256_v21 = vld [vmem:[%s636_s2 + $0x10] sm:$0xff] }
   0xe   :  { %v366_v25 = vpop.eup %365  ;;  %385 = vpow2.f32 %v318_v23 }
   0xf   :  { %v368_v26 = vpop.eup %367  ;;  %v80_v27 = vadd.f32 1.0, %v366_v25  ;;  %387 = vpow2.f32 %v317_v24  ;;  %v254_v24 = vld [vmem:[%s636_s2] sm:$0xff] }
  0x10   :  { %v370_v29 = vpop.eup %369  ;;  %v78_v30 = vadd.f32 1.0, %v368_v26  ;;  %v330_v26 = vunpack.c.h.bf16 %v355_v17 }
  0x11   :  { %v372_v31 = vpop.eup %371  ;;  %389 = vrcp.f32 %v80_v27  ;;  %v81_v32 = vadd.f32 1.0, %v370_v29  ;;  %v356_v29 = vld [vmem:[%s635_s0 + $0x10] sm:$0xff]  }
  0x12   :  { %v374_v33 = vpop.eup %373  ;;  %391 = vrcp.f32 %v78_v30  ;;  %v79_v34 = vadd.f32 1.0, %v372_v31 }
  0x13   :  { %v376_v36 = vpop.eup %375  ;;  %393 = vrcp.f32 %v81_v32  ;;  %v83_v37 = vadd.f32 1.0, %v374_v33  ;;  %v257_v32 = vld [vmem:[%s636_s2 + $0x18] sm:$0xff] }
  0x14   :  { %v378_v38 = vpop.eup %377  ;;  %395 = vrcp.f32 %v79_v34  ;;  %v82_v39 = vadd.f32 1.0, %v376_v36 }
  0x15   :  { %v380_v40 = vpop.eup %379  ;;  %v85_v42 = vadd.f32 1.0, %v378_v38  ;;  %397 = vpow2.f32 %v320_v35  ;;  %v255_v35 = vld [vmem:[%s636_s2 + $0x8] sm:$0xff] }
  0x16   :  { %v382_v41 = vpop.eup %381  ;;  %399 = vrcp.f32 %v83_v37  ;;  %v84_v44 = vadd.f32 1.0, %v380_v40  ;;  %v334_v37 = vunpack.c.h.bf16 %v356_v29  ;;  %v357_v40 = vld [vmem:[%s635_s0 + $0x18] sm:$0xff]  }
  0x17   :  { %v384_v43 = vpop.eup %383  ;;  %401 = vrcp.f32 %v82_v39  ;;  %v87_v46 = vadd.f32 1.0, %v382_v41  ;;  %v333_v39 = vunpack.c.l.bf16 %v356_v29  ;;  %v337_v50 = vunpack.c.l.bf16 %v357_v40 }
  0x18   :  { %v386_v48 = vpop.eup %385  ;;  %v86_v49 = vadd.f32 1.0, %v384_v43  ;;  %403 = vrcp.f32 %v85_v42  ;;  %v259_v43 = vld [vmem:[%s636_s2 + $0x28] sm:$0xff] }
  0x19   :  { %v388_v51 = vpop.eup %387  ;;  %405 = vrcp.f32 %v84_v44  ;;  %v89_v59 = vadd.f32 1.0, %v386_v48  ;;  %v338_v48 = vunpack.c.h.bf16 %v357_v40 }
  0x1a   :  { %407 = vrcp.f32 %v87_v46  ;;  %v88_v61 = vadd.f32 1.0, %v388_v51  ;;  %v258_v46 = vld [vmem:[%s636_s2 + $0x20] sm:$0xff] }
  0x1b   :  { %v390_v53 = vpop.eup %389  ;;  %409 = vrcp.f32 %v86_v49  ;;  %v358_v51 = vld [vmem:[%s635_s0 + $0x20] sm:$0xff]  }
  0x1c   :  { %v392_v55 = vpop.eup %391  ;;  %170 = vperm.xlu1 %364, %v390_v53   ;;  %411 = vpow2.f32 %v319_v52 }
  0x1d   :  { %v394_v57 = vpop.eup %393  ;;  %160 = vperm.xlu0 %363, %v392_v55   ;;  %413 = vpow2.f32 %v322_v54  ;;  %v261_v54 = vld [vmem:[%s636_s2 + $0x38] sm:$0xff] }
  0x1e   :  { %v396_v58 = vpop.eup %395  ;;  %415 = vpow2.f32 %v321_v56 }
  0x1f   :  { %v398_v60 = vpop.eup %397  ;;  %417 = vrcp.f32 %v89_v59  ;;  %v342_v59 = vunpack.c.h.bf16 %v358_v51 }
  0x20   :  { %175 = vperm.xlu1 %364, %v394_v57   ;;  %v400_v62 = vpop.eup %399  ;;  %v91_v0 = vadd.f32 1.0, %v398_v60  ;;  %419 = vrcp.f32 %v88_v61  ;;  %v260_v57 = vld [vmem:[%s636_s2 + $0x30] sm:$0xff]  ;;  %v341_v61 = vunpack.c.l.bf16 %v358_v51 }
  0x21   :  { %165 = vperm.xlu0 %363, %v396_v58   ;;  %v402_v63 = vpop.eup %401 }
  0x22   :  { %v404_v1 = vpop.eup %403  ;;  %421 = vrcp.f32 %v91_v0 }
  0x23   :  { %v406_v2 = vpop.eup %405 }
  0x24   :  { %185 = vperm.xlu1 %364, %v400_v62   ;;  %v408_v3 = vpop.eup %407  ;;  %v359_v62 = vld [vmem:[%s635_s0 + $0x28] sm:$0xff]  }
  0x25   :  { %180 = vperm.xlu0 %363, %v402_v63   ;;  %v410_v4 = vpop.eup %409 }
  0x26   :  { %v412_v5 = vpop.eup %411 }
  0x27   :  { %v414_v6 = vpop.eup %413  ;;  %v90_v7 = vadd.f32 1.0, %v412_v5 }
  0x28   :  { %195 = vperm.xlu1 %364, %v404_v1   ;;  %v416_v8 = vpop.eup %415  ;;  %v93_v9 = vadd.f32 1.0, %v414_v6  ;;  %v263_v1 = vld [vmem:[%s636_s2 + $0x48] sm:$0xff]  ;;  %v346_v6 = vunpack.c.h.bf16 %v359_v62 }
  0x29   :  { %190 = vperm.xlu0 %363, %v406_v2   ;;  %423 = vrcp.f32 %v90_v7  ;;  %v92_v10 = vadd.f32 1.0, %v416_v8  ;;  %v418_v11 = vpop.eup %417  ;;  %v345_v8 = vunpack.c.l.bf16 %v359_v62 }
  0x2a   :  { %425 = vrcp.f32 %v93_v9  ;;  %v420_v12 = vpop.eup %419  ;;  %v360_v9 = vld [vmem:[%s635_s0 + $0x30] sm:$0xff]  }
  0x2b   :  { %427 = vrcp.f32 %v92_v10  ;;  %v350_v17 = vunpack.c.h.bf16 %v360_v9 }
  0x2c   :  { %205 = vperm.xlu1 %364, %v408_v3   ;;  %v422_v13 = vpop.eup %421 }
  0x2d   :  { %200 = vperm.xlu0 %363, %v410_v4   ;;  %v262_v4 = vld [vmem:[%s636_s2 + $0x40] sm:$0xff] }
  0x30   :  { %215 = vperm.xlu1 %364, %v418_v11  }
  0x31   :  { %210 = vperm.xlu0 %363, %v420_v12   ;;  %v265_v12 = vld [vmem:[%s636_s2 + $0x58] sm:$0xff] }
  0x33   :  { %v424_v14 = vpop.eup %423 }
  0x34   :  { %225 = vperm.xlu1 %364, %v422_v13   ;;  %v426_v15 = vpop.eup %425 }
  0x35   :  { %220 = vperm.xlu0 %363, %v424_v14   ;;  %v428_v16 = vpop.eup %427 }
  0x38   :  { %235 = vperm.xlu1 %364, %v426_v15   ;;  %v264_v15 = vld [vmem:[%s636_s2 + $0x50] sm:$0xff] }
  0x39   :  { %230 = vperm.xlu0 %363, %v428_v16  }
  0x9b   :  { %v171_v22 = vpop.permute.xlu1 %170 }
  0x9c   :  { %v240_v23 = vmul.f32 %v329_v19, %v171_v22  ;;  %v161_v25 = vpop.permute.xlu0 %160  ;;  %v361_v19 = vld [vmem:[%s635_s0 + $0x38] sm:$0xff]  }
  0x9d   :  { %v238_v27 = vmul.f32 %v325_v20, %v161_v25 }
  0x9e   :  { %v272_v30 = vadd.f32 %v256_v21, %v240_v23  ;;  %v349_v21 = vunpack.c.l.bf16 %v360_v9  ;;  %v267_v23 = vld [vmem:[%s636_s2 + $0x68] sm:$0xff] }
  0x9f   :  { %v270_v31 = vadd.f32 %v254_v24, %v238_v27  ;;  %v176_v33 = vpop.permute.xlu1 %175  ;;  %v266_v27 = vld [vmem:[%s636_s2 + $0x60] sm:$0xff] }
  0xa0   :  { %289 = vst.msk [vmem:[%s637_s3 + $0x10] sm:$0xff] %vm286_vm0, %v272_v30  ;;  %v241_v34 = vmul.f32 %v330_v26, %v176_v33  ;;  %v166_v36 = vpop.permute.xlu0 %165  ;;  %v354_v26 = vunpack.c.h.bf16 %v361_v19 }
  0xa1   :  { %287 = vst.msk [vmem:[%s637_s3] sm:$0xff] %vm286_vm0, %v270_v31  ;;  %v239_v38 = vmul.f32 %v326_v28, %v166_v36  ;;  %v353_v31 = vunpack.c.l.bf16 %v361_v19  ;;  %v268_v36 = vld [vmem:[%s636_s2 + $0x70] sm:$0xff] }
  0xa2   :  { %v273_v41 = vadd.f32 %v257_v32, %v241_v34  ;;  %v269_v32 = vld [vmem:[%s636_s2 + $0x78] sm:$0xff] }
  0xa3   :  { %v271_v42 = vadd.f32 %v255_v35, %v239_v38  ;;  %v186_v44 = vpop.permute.xlu1 %185 }
  0xa4   :  { %290 = vst.msk [vmem:[%s637_s3 + $0x18] sm:$0xff] %vm286_vm0, %v273_v41  ;;  %v243_v45 = vmul.f32 %v334_v37, %v186_v44  ;;  %v181_v47 = vpop.permute.xlu0 %180 }
  0xa5   :  { %288 = vst.msk [vmem:[%s637_s3 + $0x8] sm:$0xff] %vm286_vm0, %v271_v42  ;;  %v242_v49 = vmul.f32 %v333_v39, %v181_v47 }
  0xa6   :  { %v275_v52 = vadd.f32 %v259_v43, %v243_v45 }
  0xa7   :  { %v274_v53 = vadd.f32 %v258_v46, %v242_v49  ;;  %v196_v55 = vpop.permute.xlu1 %195 }
  0xa8   :  { %292 = vst.msk [vmem:[%s637_s3 + $0x28] sm:$0xff] %vm286_vm0, %v275_v52  ;;  %v245_v56 = vmul.f32 %v338_v48, %v196_v55  ;;  %v191_v58 = vpop.permute.xlu0 %190 }
  0xa9   :  { %291 = vst.msk [vmem:[%s637_s3 + $0x20] sm:$0xff] %vm286_vm0, %v274_v53  ;;  %v244_v60 = vmul.f32 %v337_v50, %v191_v58 }
  0xaa   :  { %v277_v63 = vadd.f32 %v261_v54, %v245_v56 }
  0xab   :  { %v276_v0 = vadd.f32 %v260_v57, %v244_v60  ;;  %v206_v2 = vpop.permute.xlu1 %205 }
  0xac   :  { %294 = vst.msk [vmem:[%s637_s3 + $0x38] sm:$0xff] %vm286_vm0, %v277_v63  ;;  %v247_v3 = vmul.f32 %v342_v59, %v206_v2  ;;  %v201_v5 = vpop.permute.xlu0 %200 }
  0xad   :  { %293 = vst.msk [vmem:[%s637_s3 + $0x30] sm:$0xff] %vm286_vm0, %v276_v0  ;;  %v246_v7 = vmul.f32 %v341_v61, %v201_v5 }
  0xae   :  { %v279_v10 = vadd.f32 %v263_v1, %v247_v3 }
  0xaf   :  { %v278_v11 = vadd.f32 %v262_v4, %v246_v7  ;;  %v216_v13 = vpop.permute.xlu1 %215 }
  0xb0   :  { %296 = vst.msk [vmem:[%s637_s3 + $0x48] sm:$0xff] %vm286_vm0, %v279_v10  ;;  %v249_v14 = vmul.f32 %v346_v6, %v216_v13  ;;  %v211_v16 = vpop.permute.xlu0 %210 }
  0xb1   :  { %295 = vst.msk [vmem:[%s637_s3 + $0x40] sm:$0xff] %vm286_vm0, %v278_v11  ;;  %v248_v18 = vmul.f32 %v345_v8, %v211_v16 }
  0xb2   :  { %v281_v20 = vadd.f32 %v265_v12, %v249_v14 }
  0xb3   :  { %v280_v22 = vadd.f32 %v264_v15, %v248_v18  ;;  %v226_v24 = vpop.permute.xlu1 %225 }
  0xb4   :  { %298 = vst.msk [vmem:[%s637_s3 + $0x58] sm:$0xff] %vm286_vm0, %v281_v20  ;;  %v251_v25 = vmul.f32 %v350_v17, %v226_v24  ;;  %v221_v28 = vpop.permute.xlu0 %220 }
  0xb5   :  { %297 = vst.msk [vmem:[%s637_s3 + $0x50] sm:$0xff] %vm286_vm0, %v280_v22  ;;  %v250_v30 = vmul.f32 %v349_v21, %v221_v28 }
  0xb6   :  { %v283_v29 = vadd.f32 %v267_v23, %v251_v25 }
  0xb7   :  { %v236_v33 = vpop.permute.xlu1 %235  ;;  %v282_v34 = vadd.f32 %v266_v27, %v250_v30 }
  0xb8   :  { %300 = vst.msk [vmem:[%s637_s3 + $0x68] sm:$0xff] %vm286_vm0, %v283_v29  ;;  %v253_v35 = vmul.f32 %v354_v26, %v236_v33  ;;  %v231_v37 = vpop.permute.xlu0 %230 }
  0xb9   :  { %299 = vst.msk [vmem:[%s637_s3 + $0x60] sm:$0xff] %vm286_vm0, %v282_v34  ;;  %v252_v39 = vmul.f32 %v353_v31, %v231_v37 }
  0xba   :  { %v285_v38 = vadd.f32 %v269_v32, %v253_v35 }
  0xbb   :  { %v284_v40 = vadd.f32 %v268_v36, %v252_v39 }
  0xbc   :  { %302 = vst.msk [vmem:[%s637_s3 + $0x78] sm:$0xff] %vm286_vm0, %v285_v38 }
  0xbd   :  { %301 = vst.msk [vmem:[%s637_s3 + $0x70] sm:$0xff] %vm286_vm0, %v284_v40 }

// kernel: preact_block_forward.8
= control target key start
LH: loop header
LB: loop body
LE: loop exit
PB: predicated region body
PF: predicated region fallthrough
CT: control target
= control target key end

     0   :  { %s1676_s18 = smov 0   ;;  %s2283_s0 = inlined_call_operand.vmem [shape: bf16[2,9,9,16], index: 0, kind: input, shape index: {}]   ;;  %s2284_s1 = inlined_call_operand.vmem [shape: f32[1,1,4], index: 1, kind: input, shape index: {}]   ;;  %s2285_s2 = inlined_call_operand.vmem [shape: f32[1,1,4], index: 2, kind: input, shape index: {}]   ;;  %s2286_s3 = inlined_call_operand.vmem [shape: bf16[36,8], index: 3, kind: input, shape index: {}]   ;;  %s2287_s4 = inlined_call_operand.vmem [shape: bf16[2,8,8,8], index: 4, kind: output, shape index: {0}]   ;;  %s2288_s5 = inlined_call_operand.vmem [shape: f32[2,2,8], index: 5, kind: output, shape index: {1}]  }
   0x1 LB: > { %s1440_s19 = sadd.s32 4294967295, %s1638_s18   ;;  %p1444_p0 = scmp.ge.s32.totalorder %s1638_s18, 1  ;;  %s1638_s18 = sphi %s1676_s18, %s16_s18  }
   0x2   : > { %p190_p1 = scmp.lt.s32.totalorder %s1638_s18, 3 }
   0x4   : > { %p191_p2 = pnand %p1444_p0, %p190_p1 }
   0x5   : > { %v1687_v0 = vld [vmem:[%s2284_s1] ss:$0 sm:$0xff] (!%p191_p2)  ;;  %s1640_s22 = smov (!%p191_p2), 12   ;;  %s1641_s23 = smov (!%p191_p2), 8   ;;  %v341_v2 = vlaneseq (!%p191_p2)  ;;  %v1643_v12 = vmov (!%p191_p2), 0.0|0.0   ;;  %vm650_vm4 = vcmask (!%p191_p2), 31744  }
   0x6   : > { %194 = sbr.rel (%p191_p2) target bundleno = 549 (0x225), region = 36  ;;  %548 = vrot.lane.b32.xlu1 (!%p191_p2), %v1687_v0, %s1640_s22  ;;  %470 = vrot.lane.b32.xlu0 (!%p191_p2), %v1687_v0, %s1641_s23  ;;  %p222_p3 = scmp.lt.s32.totalorder (!%p191_p2), %s1440_s19, 1  ;;  %v1696_v1 = vld [vmem:[%s2285_s2] ss:$0 sm:$0xff] (!%p191_p2)  ;;  %v1459_v13 = vcombine.low (!%p191_p2), %v1643_v12, %v1643_v12  ;;  %v1460_v21 = vcombine.high (!%p191_p2), %v1643_v12, %v1643_v12  ;;  %vm708_vm1 = vsmask.f32 (!%p191_p2), 3328 }
   0x7   : > { %v1710_v3 = vshrl.u32 (!%p191_p2), %v341_v2, 7  ;;  %s1642_s30 = smov (!%p191_p2), 4   ;;  %s1644_s6 = smov (!%p191_p2), 24   ;;  %vm709_vm2 = vsmask.f32 (!%p191_p2), 7440  ;;  %vm679_vm6 = vcmask (!%p191_p2), 64544  }
   0x8   : > { %v712_v31 = vshrl.u32 (!%p191_p2), %v1459_v13, 16  ;;  %v715_v32 = vshll.u32 (!%p191_p2), %v1459_v13, 16  ;;  %v721_v44 = vshll.u32 (!%p191_p2), %v1460_v21, 16  ;;  %vm1880_vm3 = vmor (!%p191_p2), %vm708_vm1, %vm709_vm2  ;;  %s1645_s7 = smov (!%p191_p2), 32   ;;  %vm847_vm7 = vcmask (!%p191_p2), 97344  }
   0x9   : > { %vm344_vm0 = vcmp.eq.s32.totalorder (!%p191_p2), %v1710_v3, 0  ;;  %vm1213_vm8 = vcmask (!%p191_p2), 1041408   ;;  %vm884_vm9 = vcmask (!%p191_p2), 130144   ;;  %vm921_vm10 = vcmask (!%p191_p2), 162944  }
   0xa   : > { %567 = vrot.lane.b32.xlu1 (!%p191_p2), %v1696_v1, %s1640_s22  ;;  %489 = vrot.lane.b32.xlu0 (!%p191_p2), %v1696_v1, %s1641_s23  ;;  %v1803_v59 = vrot.slane (!%p191_p2), %v712_v31, 4  ;;  %v1805_v60 = vrot.slane (!%p191_p2), %v715_v32, 5  ;;  %vm1086_vm11 = vcmask (!%p191_p2), 195744   ;;  %vm1109_vm12 = vcmask (!%p191_p2), 228544  }
   0xb   : > { %vm1132_vm13 = vcmask (!%p191_p2), 261344   ;;  %vm1171_vm14 = vcmask (!%p191_p2), 294144   ;;  %vm1200_vm15 = vcmask (!%p191_p2), 293888   ;;  %vm1299_vm1 = vcmask (!%p191_p2), 64512  }
   0xc   : > { %vm1350_vm2 = vcmask (!%p191_p2), 1040384  }
   0xd   : > { %s2292_s19 = smov (!%p222_p3, %s1440_s19), 1 }
   0xe   : > { %s1614_s26 = smul.u32 72, %s2292_s19  ;;  %377 = vrot.lane.b32.xlu0 %v1687_v0, %s1642_s30  ;;  %398 = vrot.lane.b32.xlu1 %v1696_v1, %s1642_s30  ;;  %s1530_s14 = sshll.u32 %s2292_s19, 5 }
   0xf   : > { %s2242_s17 = scalar_lea.vmem %s2287_s4, %s1530_s14  ;;  %s1448_s20 = sshll.u32 %s2292_s19, 1 }
  0x10   : > { %s1708_s29 = scalar_lea.vmem %s2283_s0, %s1614_s26 }
  0x11   : > { %v243_v4 = vld [vmem:[%s1708_s29 + $0x18] ss:$8 sps:$4 sm:$0xff]   ;;  %v239_v5 = vld [vmem:[%s1708_s29 + $0x8] ss:$8 sps:$4 sm:$0xff]   ;;  %v240_v6 = vld [vmem:[%s1708_s29 + $0xc] sm:$0x1] }
  0x12   : > { %v1719_v7 = vunpack.c.l.bf16 %v243_v4  ;;  %v1721_v8 = vunpack.c.h.bf16 %v243_v4  ;;  %v1723_v9 = vunpack.c.l.bf16 %v239_v5  ;;  %v1726_v10 = vld [vmem:[%s1708_s29 + $0x38] ss:$8 sps:$4 sm:$0xff]   ;;  %v247_v11 = vld [vmem:[%s1708_s29 + $0x28] ss:$8 sps:$4 sm:$0xff]   ;;  %v1731_v14 = vunpack.c.l.bf16 %v240_v6  ;;  %v1810_v2 = vld [vmem:[%s1708_s29 + $0x14] sm:$0x1] }
  0x13   : > { %v1733_v15 = vunpack.c.h.bf16 %v239_v5  ;;  %v1736_v16 = vunpack.c.l.bf16 %v1726_v10  ;;  %v271_v17 = vunpack.c.h.bf16 %v1726_v10  ;;  %v1754_v25 = vunpack.c.l.bf16 %v247_v11 }
  0x14   : > { %v286_v18 = vmul.f32 %v1687_v0, %v1719_v7  ;;  %v288_v19 = vmul.f32 %v1687_v0, %v1721_v8  ;;  %v282_v20 = vmul.f32 %v1687_v0, %v1723_v9  ;;  %v283_v29 = vmul.f32 %v1687_v0, %v1731_v14 }
  0x15   : > { %v284_v22 = vmul.f32 %v1687_v0, %v1733_v15  ;;  %v294_v23 = vmul.f32 %v1687_v0, %v1736_v16  ;;  %v296_v24 = vmul.f32 %v1687_v0, %v271_v17  ;;  %v1763_v36 = vunpack.c.h.bf16 %v247_v11 }
  0x16   : > { %v311_v26 = vadd.f32 %v1696_v1, %v286_v18  ;;  %v313_v27 = vadd.f32 %v1696_v1, %v288_v19  ;;  %v307_v28 = vadd.f32 %v1696_v1, %v282_v20  ;;  %v290_v40 = vmul.f32 %v1687_v0, %v1754_v25  ;;  %v1815_v18 = vld [vmem:[%s1708_s29 + $0x1c] sm:$0x1] }
  0x17   : > { %v309_v30 = vadd.f32 %v1696_v1, %v284_v22  ;;  %v319_v38 = vadd.f32 %v1696_v1, %v294_v23  ;;  %v321_v39 = vadd.f32 %v1696_v1, %v296_v24  ;;  %v308_v47 = vadd.f32 %v1696_v1, %v283_v29 }
  0x18   : > { %v329_v33 = vmax.f32 %v311_v26, 0.0  ;;  %v331_v34 = vmax.f32 %v313_v27, 0.0  ;;  %v325_v35 = vmax.f32 %v307_v28, 0.0  ;;  %v292_v55 = vmul.f32 %v1687_v0, %v1763_v36 }
  0x19   : > { %v327_v37 = vmax.f32 %v309_v30, 0.0  ;;  %v337_v53 = vmax.f32 %v319_v38, 0.0  ;;  %v339_v54 = vmax.f32 %v321_v39, 0.0  ;;  %v315_v56 = vadd.f32 %v1696_v1, %v290_v40 }
  0x1a   : > { %v1771_v41 = vsel %vm344_vm0, 0.0, %v329_v33  ;;  %v1775_v42 = vsel %vm344_vm0, 0.0, %v331_v34  ;;  %v1779_v43 = vsel %vm344_vm0, 0.0, %v325_v35  ;;  %v1807_v63 = vmax.f32 %v308_v47, 0.0 }
  0x1b   : > { %v1543_v45 = vpack.c.bf16 %v1775_v42, %v1775_v42  ;;  %v1576_v46 = vpack.c.bf16 %v1775_v42, %v1771_v41  ;;  %v1788_v48 = vsel %vm344_vm0, 0.0, %v327_v37  ;;  %v1541_v49 = vpack.c.bf16 %v1771_v41, %v1771_v41 }
  0x1c   : > { %v1539_v50 = vpack.c.bf16 %v1788_v48, %v1788_v48  ;;  %v1575_v51 = vpack.c.bf16 %v1788_v48, %v1779_v43  ;;  %v1537_v52 = vpack.c.bf16 %v1779_v43, %v1779_v43  ;;  %v1812_v4 = vrot.slane %v721_v44, 5 }
  0x1d   : > { %1099 = vrot.lane.b32.xlu1 %v1576_v46, %s1644_s6  ;;  %v768_v61 = vshrl.u32 %v1543_v45, 16  ;;  %v771_v62 = vshll.u32 %v1543_v45, 16  ;;  %v754_v5 = vshrl.u32 %v1541_v49, 16  ;;  %v757_v6 = vshll.u32 %v1541_v49, 16 }
  0x1e   : > { %v740_v57 = vshrl.u32 %v1539_v50, 16  ;;  %v743_v58 = vshll.u32 %v1539_v50, 16  ;;  %1097 = vrot.lane.b32.xlu0 %v1575_v51, %s1644_s6  ;;  %v726_v13 = vshrl.u32 %v1537_v52, 16  ;;  %v1819_v19 = vsel %vm344_vm0, 0.0, %v337_v53 }
  0x1f   : > { %v1823_v20 = vsel %vm344_vm0, 0.0, %v339_v54  ;;  %v317_v21 = vadd.f32 %v1696_v1, %v292_v55  ;;  %v333_v22 = vmax.f32 %v315_v56, 0.0  ;;  %v1549_v24 = vpack.c.bf16 %v1819_v19, %v1819_v19 }
  0x20   : > { %v742_v11 = vrot.slane %v740_v57, 4  ;;  %v745_v23 = vrot.slane %v743_v58, 5  ;;  %v1578_v26 = vpack.c.bf16 %v1823_v20, %v1819_v19  ;;  %v260_v27 = vunpack.c.l.bf16 %v1810_v2 }
  0x21   : > { %v729_v28 = vshll.u32 %v1537_v52, 16  ;;  %v335_v29 = vmax.f32 %v317_v21, 0.0  ;;  %v1833_v30 = vsel %vm344_vm0, 0.0, %v333_v22  ;;  %v262_v31 = vunpack.c.l.bf16 %v1815_v18  ;;  %v1874_v22 = vld [vmem:[%s1708_s29 + $0x34] sm:$0x1] }
  0x22   : > { %v756_v32 = vrot.slane %v754_v5, 4  ;;  %v759_v33 = vrot.slane %v757_v6, 5  ;;  %v810_v34 = vshrl.u32 %v1549_v24, 16  ;;  %v813_v35 = vshll.u32 %v1549_v24, 16  ;;  %1103 = vrot.lane.b32.xlu1 %v1578_v26, %s1644_s6  ;;  %v1869_v5 = vld [vmem:[%s1708_s29 + $0x24] sm:$0x1] }
  0x23   : > { %v1839_v37 = vsel %vm344_vm0, 0.0, %v335_v29  ;;  %v1843_v38 = vpack.c.bf16 %v1833_v30, %v1833_v30  ;;  %v285_v39 = vmul.f32 %v1687_v0, %v260_v27  ;;  %v287_v40 = vmul.f32 %v1687_v0, %v262_v31 }
  0x24   : > { %v1851_v44 = vrot.slane %v768_v61, 4  ;;  %v1853_v45 = vrot.slane %v771_v62, 5  ;;  %v728_v46 = vrot.slane %v726_v13, 4  ;;  %v746_v47 = vor.u32 %v745_v23, %v742_v11 }
  0x25   : > { %v731_v49 = vrot.slane %v729_v28, 5  ;;  %v1855_v50 = vrot.slane %v810_v34, 4  ;;  %v1547_v51 = vpack.c.bf16 %v1839_v37, %v1839_v37  ;;  %v1577_v52 = vpack.c.bf16 %v1839_v37, %v1833_v30 }
  0x26   : > { %v1861_v53 = vrot.slane %v813_v35, 5  ;;  %v310_v54 = vadd.f32 %v1696_v1, %v285_v39  ;;  %v312_v55 = vadd.f32 %v1696_v1, %v287_v40  ;;  %v760_v56 = vor.u32 %v759_v33, %v756_v32 }
  0x27   : > { %v782_v57 = vshrl.u32 %v1843_v38, 16  ;;  %v785_v58 = vshll.u32 %v1843_v38, 16  ;;  %v796_v61 = vshrl.u32 %v1547_v51, 16  ;;  %v799_v62 = vshll.u32 %v1547_v51, 16  ;;  %1101 = vrot.lane.b32.xlu0 %v1577_v52, %s1644_s6  ;;  %v1886_v38 = vld [vmem:[%s1708_s29 + $0x3c] sm:$0x1] }
  0x28   : > { %v328_v6 = vmax.f32 %v310_v54, 0.0  ;;  %v330_v11 = vmax.f32 %v312_v55, 0.0  ;;  %v747_v13 = vrot.slane %v746_v47, 4  ;;  %v1538_v21 = vpack.c.bf16 %v1807_v63, %v1807_v63 }
  0x29   : > { %v798_v23 = vrot.slane %v796_v61, 4  ;;  %v761_v24 = vrot.slane %v760_v56, 4  ;;  %v718_v26 = vor.u32 %v1805_v60, %v1803_v59  ;;  %v732_v28 = vor.u32 %v731_v49, %v728_v46 }
  0x2a   : > { %v1540_v29 = vpack.c.bf16 %v328_v6, %v328_v6  ;;  %v1542_v32 = vpack.c.bf16 %v330_v11, %v330_v11  ;;  %v735_v34 = vshll.u32 %v1538_v21, 16  ;;  %v264_v35 = vunpack.c.l.bf16 %v1869_v5 }
  0x2b   : > { %v801_v39 = vrot.slane %v799_v62, 5  ;;  %v719_v40 = vrot.slane %v718_v26, 4  ;;  %v733_v47 = vrot.slane %v732_v28, 4  ;;  %v268_v51 = vunpack.c.l.bf16 %v1874_v22  ;;  %v1911_v28 = vld [vmem:[%s1708_s29 + $0x2c] sm:$0x1] }
  0x2c   : > { %v749_v59 = vshll.u32 %v1540_v29, 16  ;;  %v763_v60 = vshll.u32 %v1542_v32, 16  ;;  %v737_v46 = vrot.slane %v735_v34, 5  ;;  %v289_v49 = vmul.f32 %v1687_v0, %v264_v35 }
  0x2d   : > { %v1892_v52 = vrot.slane %v782_v57, 4  ;;  %v724_v54 = vsel %vm1880_vm3, %v719_v40, %v1812_v4  ;;  %v270_v55 = vunpack.c.l.bf16 %v1886_v38  ;;  %v293_v56 = vmul.f32 %v1687_v0, %v268_v51 }
  0x2e   : > { %v751_v61 = vrot.slane %v749_v59, 5  ;;  %v765_v62 = vrot.slane %v763_v60, 5  ;;  %v738_v6 = vsel %vm1880_vm3, %v733_v47, %v737_v46  ;;  %v314_v11 = vadd.f32 %v1696_v1, %v289_v49 }
  0x2f   : > { %v1475_v21 = vcombine.low %v724_v54, %v738_v6  ;;  %v774_v57 = vor.u32 %v1853_v45, %v1851_v44  ;;  %v295_v4 = vmul.f32 %v1687_v0, %v270_v55  ;;  %v318_v26 = vadd.f32 %v1696_v1, %v293_v56 }
  0x30   : > { %v752_v29 = vsel %vm1880_vm3, %v747_v13, %v751_v61  ;;  %v766_v32 = vsel %vm1880_vm3, %v761_v24, %v765_v62  ;;  %v332_v34 = vmax.f32 %v314_v11, 0.0  ;;  %v802_v40 = vor.u32 %v801_v39, %v798_v23 }
  0x31   : > { %v1476_v47 = vcombine.low %v752_v29, %v766_v32  ;;  %835 = vrot.lane.b32.xlu0 %v1475_v21, %s1641_s23  ;;  %v1517_v44 = vcombine.low %v738_v6, %v752_v29  ;;  %v320_v45 = vadd.f32 %v1696_v1, %v295_v4  ;;  %v336_v59 = vmax.f32 %v318_v26, 0.0 }
  0x32   : > { %v787_v60 = vrot.slane %v785_v58, 5  ;;  %v1544_v46 = vpack.c.bf16 %v332_v34, %v332_v34  ;;  %v816_v49 = vor.u32 %v1861_v53, %v1855_v50  ;;  %v266_v54 = vunpack.c.l.bf16 %v1911_v28 }
  0x33   : > { %837 = vrot.lane.b32.xlu1 %v1476_v47, %s1641_s23  ;;  %v338_v13 = vmax.f32 %v320_v45, 0.0  ;;  %v1548_v24 = vpack.c.bf16 %v336_v59, %v336_v59  ;;  %v369_v23 = vpack.c.bf16 %v1807_v63, %v1779_v43  ;;  %v775_v39 = vrot.slane %v774_v57, 4  ;;  %v254_v45 = vld [vmem:[%s1708_s29 + $0x44] sm:$0x1] }
  0x34   : > { %v777_v56 = vshll.u32 %v1544_v46, 16  ;;  %v291_v61 = vmul.f32 %v1687_v0, %v266_v54  ;;  %v1583_v58 = vpack.c.bf16 %v1823_v20, %v1823_v20  ;;  %v803_v53 = vrot.slane %v802_v40, 4 }
  0x35   : > { %1159 = vrot.lane.b32.xlu0 %v1517_v44, %s1645_s7  ;;  %v1550_v50 = vpack.c.bf16 %v338_v13, %v338_v13  ;;  %v805_v62 = vshll.u32 %v1548_v24, 16  ;;  %v817_v11 = vrot.slane %v816_v49, 4  ;;  %v788_v43 = vor.u32 %v787_v60, %v1892_v52 }
  0x36   : > { %v779_v6 = vrot.slane %v777_v56, 5  ;;  %v316_v21 = vadd.f32 %v1696_v1, %v291_v61  ;;  %v1531_v4 = vpack.c.bf16 %v1771_v41, %v1788_v48  ;;  %v1533_v20 = vpack.c.bf16 %v1819_v19, %v1839_v37 }
  0x37   : > { %v807_v63 = vrot.slane %v805_v62, 5  ;;  %v819_v57 = vshll.u32 %v1550_v50, 16  ;;  %v1532_v34 = vpack.c.bf16 %v1833_v30, %v1775_v42  ;;  %v1451_v48 = vcombine.low %v1643_v12, %v369_v23 }
  0x38   : > { %v780_v26 = vsel %vm1880_vm3, %v775_v39, %v779_v6  ;;  %v334_v29 = vmax.f32 %v316_v21, 0.0  ;;  %652 = vst.msk [vmem:[#allocation2 + $0x8] sm:$0xff] %vm650_vm4, %v1531_v4  ;;  %654 = vst.msk [vmem:[#allocation2 + $0x18] sm:$0xff] %vm650_vm4, %v1533_v20  ;;  %v1141_v19 = vshrl.u32 %v1583_v58, 16  ;;  %v1144_v30 = vshll.u32 %v1583_v58, 16 }
  0x39   : > { %v1518_v40 = vcombine.low %v766_v32, %v780_v26  ;;  %v1943_v52 = vsel %vm1880_vm3, %v803_v53, %v807_v63  ;;  %v821_v47 = vrot.slane %v819_v57, 5  ;;  %653 = vst.msk [vmem:[#allocation2 + $0x10] sm:$0xff] %vm650_vm4, %v1532_v34  ;;  %v789_v32 = vrot.slane %v788_v43, 4  ;;  %651 = vst.msk [vmem:[#allocation2] sm:$0xff] %vm650_vm4, %v1451_v48  ;;  %v237_v21 = vld [vmem:[%s1708_s29] sm:$0xf] }
  0x3a   : > { %v1546_v41 = vpack.c.bf16 %v334_v29, %v334_v29  ;;  %v272_v60 = vunpack.c.l.bf16 %v254_v45  ;;  %v1143_v46 = vrot.slane %v1141_v19, 4  ;;  %v1146_v49 = vrot.slane %v1144_v30, 5  ;;  %v1977_v4 = vld [vmem:[%s1708_s29 + $0x4] sm:$0x1] }
  0x3b   : > { %1161 = vrot.lane.b32.xlu1 %v1518_v40, %s1645_s7  ;;  %v822_v42 = vsel %vm1880_vm3, %v817_v11, %v821_v47  ;;  %v255_v43 = vunpack.c.l.bf16 %v237_v21 }
  0x3c   : > { %v1478_v37 = vcombine.low %v1943_v52, %v822_v42  ;;  %v791_v44 = vshll.u32 %v1546_v41, 16  ;;  %v297_v24 = vmul.f32 %v1687_v0, %v272_v60  ;;  %v1147_v58 = vor.u32 %v1146_v49, %v1143_v46 }
  0x3e   : > { %v793_v59 = vrot.slane %v791_v44, 5  ;;  %v322_v56 = vadd.f32 %v1696_v1, %v297_v24  ;;  %v1148_v53 = vrot.slane %v1147_v58, 4  ;;  %v1974_v1 = vadd.s32 8, %v1710_v3 }
  0x3f   : > { %841 = vrot.lane.b32.xlu1 %v1478_v37, %s1641_s23 }
  0x40   : > { %v1958_v13 = vsel %vm1880_vm3, %v789_v32, %v793_v59  ;;  %v340_v61 = vmax.f32 %v322_v56, 0.0  ;;  %vm438_vm5 = vcmp.eq.s32.totalorder %v1974_v1, 8 }
  0x41   : > { %v1477_v23 = vcombine.low %v780_v26, %v1958_v13  ;;  %v1519_v39 = vcombine.low %v1958_v13, %v1943_v52 }
  0x42   : > { %v1584_v50 = vpack.c.bf16 %v340_v61, %v340_v61 }
  0x43   : > { %839 = vrot.lane.b32.xlu0 %v1477_v23, %s1641_s23  ;;  %s235_s23 = scalar_lea.vmem %s2288_s5, %s1448_s20 }
  0x44   : > { %v1150_v62 = vshll.u32 %v1584_v50, 16 }
  0x46   : > { %v1152_v6 = vrot.slane %v1150_v62, 5 }
  0x48   : > { %v1153_v11 = vsel %vm1880_vm3, %v1148_v53, %v1152_v6 }
  0x49   : > { %v1968_v0 = vcombine.low %v822_v42, %v1153_v11  ;;  %v256_v42 = vunpack.c.l.bf16 %v1977_v4 }
  0x78   : > { %v549_v63 = vpop.permute.xlu1 %548  ;;  %v1971_v57 = vpop.permute.xlu0 %470 }
  0x79   : > { %v555_v20 = vmul.f32 %v549_v63, %v1733_v15  ;;  %v557_v26 = vmul.f32 %v549_v63, %v1719_v7  ;;  %v551_v29 = vmul.f32 %v549_v63, %v255_v43  ;;  %v553_v34 = vmul.f32 %v549_v63, %v1723_v9 }
  0x7a   : > { %v563_v40 = vmul.f32 %v549_v63, %v1763_v36  ;;  %v565_v47 = vmul.f32 %v549_v63, %v1736_v16  ;;  %v559_v41 = vmul.f32 %v549_v63, %v1721_v8  ;;  %v561_v48 = vmul.f32 %v549_v63, %v1754_v25 }
  0x7b   : > { %v477_v19 = vmul.f32 %v1971_v57, %v1733_v15  ;;  %v479_v32 = vmul.f32 %v1971_v57, %v1719_v7  ;;  %v473_v44 = vmul.f32 %v1971_v57, %v255_v43  ;;  %v475_v45 = vmul.f32 %v1971_v57, %v1723_v9 }
  0x7c   : > { %v568_v30 = vpop.permute.xlu1 %567  ;;  %v1989_v37 = vpop.permute.xlu0 %489  ;;  %v1998_v59 = vmul.f32 %v1971_v57, %v1763_v36  ;;  %v2007_v63 = vmul.f32 %v1971_v57, %v1736_v16 }
  0x7d   : > { %v574_v60 = vadd.f32 %v568_v30, %v555_v20  ;;  %v576_v46 = vadd.f32 %v568_v30, %v557_v26  ;;  %v570_v49 = vadd.f32 %v568_v30, %v551_v29  ;;  %v572_v24 = vadd.f32 %v568_v30, %v553_v34 }
  0x7e   : > { %v582_v23 = vadd.f32 %v568_v30, %v563_v40  ;;  %v584_v56 = vadd.f32 %v568_v30, %v565_v47  ;;  %v578_v61 = vadd.f32 %v568_v30, %v559_v41  ;;  %v580_v58 = vadd.f32 %v568_v30, %v561_v48 }
  0x7f   : > { %v590_v50 = vmax.f32 %v574_v60, 0.0  ;;  %v592_v53 = vmax.f32 %v576_v46, 0.0  ;;  %v586_v62 = vmax.f32 %v570_v49, 0.0  ;;  %v588_v6 = vmax.f32 %v572_v24, 0.0 }
  0x80   : > { %v2001_v11 = vpop.permute.xlu0 %377  ;;  %v2003_v21 = vpop.permute.xlu1 %398  ;;  %v598_v43 = vmax.f32 %v582_v23, 0.0  ;;  %v2011_v20 = vmul.f32 %v1971_v57, %v1721_v8  ;;  %v2015_v26 = vmul.f32 %v1971_v57, %v1754_v25  ;;  %v600_v60 = vmax.f32 %v584_v56, 0.0 }
  0x81   : > { %v1556_v29 = vpack.c.bf16 %v592_v53, %v590_v50  ;;  %v1555_v34 = vpack.c.bf16 %v588_v6, %v586_v62  ;;  %v386_v40 = vmul.f32 %v2001_v11, %v1719_v7  ;;  %v388_v47 = vmul.f32 %v2001_v11, %v1721_v8 }
  0x82   : > { %v382_v41 = vmul.f32 %v2001_v11, %v1723_v9  ;;  %v383_v48 = vmul.f32 %v2001_v11, %v1731_v14  ;;  %v384_v30 = vmul.f32 %v2001_v11, %v1733_v15  ;;  %v594_v8 = vmax.f32 %v578_v61, 0.0 }
  0x83   : > { %911 = vrot.lane.b32.xlu1 %v1556_v29, %s1642_s30  ;;  %909 = vrot.lane.b32.xlu0 %v1555_v34, %s1642_s30  ;;  %v407_v46 = vadd.f32 %v2003_v21, %v386_v40  ;;  %v2031_v7 = vadd.f32 %v2003_v21, %v388_v47  ;;  %v596_v49 = vmax.f32 %v580_v58, 0.0  ;;  %v496_v15 = vadd.f32 %v1989_v37, %v477_v19 }
  0x84   : > { %v403_v9 = vadd.f32 %v2003_v21, %v382_v41  ;;  %v404_v24 = vadd.f32 %v2003_v21, %v383_v48  ;;  %v405_v23 = vadd.f32 %v2003_v21, %v384_v30  ;;  %v498_v53 = vadd.f32 %v1989_v37, %v479_v32 }
  0x85   : > { %v425_v56 = vmax.f32 %v407_v46, 0.0  ;;  %v427_v50 = vmax.f32 %v2031_v7, 0.0  ;;  %v492_v62 = vadd.f32 %v1989_v37, %v473_v44  ;;  %v512_v61 = vmax.f32 %v496_v15, 0.0 }
  0x86   : > { %v421_v6 = vmax.f32 %v403_v9, 0.0  ;;  %v422_v29 = vmax.f32 %v404_v24, 0.0  ;;  %v423_v34 = vmax.f32 %v405_v23, 0.0  ;;  %v514_v40 = vmax.f32 %v498_v53, 0.0 }
  0x87   : > { %v1580_v58 = vpack.c.bf16 %v427_v50, %v425_v56  ;;  %v494_v47 = vadd.f32 %v1989_v37, %v475_v45  ;;  %v508_v41 = vmax.f32 %v492_v62, 0.0  ;;  %v1558_v30 = vpack.c.bf16 %v600_v60, %v598_v43 }
  0x88   : > { %v1534_v48 = vpack.c.bf16 %v425_v56, %v423_v34  ;;  %v1579_v19 = vpack.c.bf16 %v423_v34, %v421_v6  ;;  %v528_v46 = vsel %vm344_vm0, 0.0, %v512_v61  ;;  %v446_v32 = vsel %vm438_vm5, 0.0, %v422_v29 }
  0x89   : > { %1122 = vrot.lane.b32.xlu1 %v1580_v58, %s1644_s6  ;;  %v530_v44 = vsel %vm344_vm0, 0.0, %v514_v40  ;;  %v1563_v9 = vpack.c.bf16 %v528_v46, %v528_v46  ;;  %v510_v24 = vmax.f32 %v494_v47, 0.0  ;;  %v1557_v45 = vpack.c.bf16 %v596_v49, %v594_v8 }
  0x8a   : > { %1120 = vrot.lane.b32.xlu0 %v1579_v19, %s1644_s6  ;;  %v1565_v23 = vpack.c.bf16 %v530_v44, %v530_v44  ;;  %v524_v43 = vsel %vm344_vm0, 0.0, %v508_v41  ;;  %v504_v60 = vadd.f32 %v1989_v37, %v1998_v59  ;;  %681 = vst.msk [vmem:[#allocation2 + $0x8] sm:$0xff] %vm679_vm6, %v1534_v48  ;;  %v2058_v62 = vpack.c.bf16 %v446_v32, %v421_v6 }
  0x8b   : > { %v979_v15 = vshrl.u32 %v1563_v9, 16  ;;  %v982_v1 = vshll.u32 %v1563_v9, 16  ;;  %v526_v56 = vsel %vm344_vm0, 0.0, %v510_v24  ;;  %v1559_v53 = vpack.c.bf16 %v524_v43, %v524_v43 }
  0x8c   : > { %v993_v29 = vshrl.u32 %v1565_v23, 16  ;;  %v996_v34 = vshll.u32 %v1565_v23, 16  ;;  %v1561_v8 = vpack.c.bf16 %v526_v56, %v526_v56  ;;  %v1552_v49 = vpack.c.bf16 %v530_v44, %v528_v46 }
  0x8d   : > { %915 = vrot.lane.b32.xlu1 %v1558_v30, %s1642_s30  ;;  %v1551_v61 = vpack.c.bf16 %v526_v56, %v524_v43  ;;  %v951_v58 = vshrl.u32 %v1559_v53, 16  ;;  %v954_v40 = vshll.u32 %v1559_v53, 16  ;;  %v981_v59 = vrot.slane %v979_v15, 4 }
  0x8e   : > { %913 = vrot.lane.b32.xlu0 %v1557_v45, %s1642_s30  ;;  %v984_v47 = vrot.slane %v982_v1, 5  ;;  %v995_v41 = vrot.slane %v993_v29, 4  ;;  %v965_v48 = vshrl.u32 %v1561_v8, 16  ;;  %v998_v19 = vrot.slane %v996_v34, 5 }
  0x8f   : > { %v968_v9 = vshll.u32 %v1561_v8, 16  ;;  %v506_v6 = vadd.f32 %v1989_v37, %v2007_v63  ;;  %v520_v32 = vmax.f32 %v504_v60, 0.0  ;;  %v2064_v24 = vrot.slane %v951_v58, 4 }
  0x90   : > { %v2066_v23 = vrot.slane %v954_v40, 5  ;;  %v500_v30 = vadd.f32 %v1989_v37, %v2011_v20  ;;  %v502_v46 = vadd.f32 %v1989_v37, %v2015_v26  ;;  %v478_v63 = vmul.f32 %v1971_v57, %v260_v27 }
  0x91   : > { %874 = vrot.lane.b32.xlu1 %v1552_v49, %s1642_s30  ;;  %v522_v44 = vmax.f32 %v506_v6, 0.0  ;;  %v536_v45 = vsel %vm344_vm0, 0.0, %v520_v32  ;;  %v480_v43 = vmul.f32 %v1971_v57, %v262_v31  ;;  %v967_v60 = vrot.slane %v965_v48, 4 }
  0x92   : > { %872 = vrot.lane.b32.xlu0 %v1551_v61, %s1642_s30  ;;  %v1571_v20 = vpack.c.bf16 %v536_v45, %v536_v45  ;;  %v516_v15 = vmax.f32 %v500_v30, 0.0  ;;  %v518_v26 = vmax.f32 %v502_v46, 0.0  ;;  %v497_v56 = vadd.f32 %v1989_v37, %v478_v63  ;;  %v2093_v46 = vpop.permute.xlu1 %1099 }
  0x93   : > { %v538_v1 = vsel %vm344_vm0, 0.0, %v522_v44  ;;  %v499_v53 = vadd.f32 %v1989_v37, %v480_v43  ;;  %v985_v2 = vor.u32 %v984_v47, %v981_v59  ;;  %v970_v58 = vrot.slane %v968_v9, 5 }
  0x94   : > { %v1554_v29 = vpack.c.bf16 %v538_v1, %v536_v45  ;;  %v1573_v27 = vpack.c.bf16 %v538_v1, %v538_v1  ;;  %v1035_v34 = vshrl.u32 %v1571_v20, 16  ;;  %v1038_v18 = vshll.u32 %v1571_v20, 16 }
  0x95   : > { %v532_v31 = vsel %vm344_vm0, 0.0, %v516_v15  ;;  %v534_v8 = vsel %vm344_vm0, 0.0, %v518_v26  ;;  %v513_v49 = vmax.f32 %v497_v56, 0.0  ;;  %v515_v61 = vmax.f32 %v499_v53, 0.0 }
  0x96   : > { %v1049_v40 = vshrl.u32 %v1573_v27, 16  ;;  %v1052_v48 = vshll.u32 %v1573_v27, 16  ;;  %878 = vrot.lane.b32.xlu1 %v1554_v29, %s1642_s30  ;;  %v999_v6 = vor.u32 %v998_v19, %v995_v41  ;;  %v1553_v32 = vpack.c.bf16 %v534_v8, %v532_v31 }
  0x97   : > { %v1567_v59 = vpack.c.bf16 %v532_v31, %v532_v31  ;;  %v2091_v47 = vpack.c.bf16 %v534_v8, %v534_v8  ;;  %v1564_v30 = vpack.c.bf16 %v513_v49, %v513_v49  ;;  %v2095_v44 = vrot.slane %v1035_v34, 4  ;;  %v2113_v34 = vpop.permute.xlu0 %1097 }
  0x98   : > { %v2097_v45 = vrot.slane %v1038_v18, 5  ;;  %v2099_v3 = vrot.slane %v1049_v40, 4  ;;  %v1566_v63 = vpack.c.bf16 %v515_v61, %v515_v61  ;;  %v2101_v9 = vrot.slane %v1052_v48, 5  ;;  %876 = vrot.lane.b32.xlu0 %v1553_v32, %s1642_s30  ;;  %v2125_v40 = vpop.permute.xlu1 %1103 }
  0x99   : > { %v1007_v43 = vshrl.u32 %v1567_v59, 16  ;;  %v1010_v20 = vshll.u32 %v1567_v59, 16  ;;  %v986_v41 = vrot.slane %v985_v2, 4  ;;  %v988_v19 = vshll.u32 %v1564_v30, 16 }
  0x9a   : > { %v1000_v15 = vrot.slane %v999_v6, 4  ;;  %v1002_v26 = vshll.u32 %v1566_v63, 16  ;;  %v474_v1 = vmul.f32 %v1971_v57, %v256_v42  ;;  %v1021_v29 = vshrl.u32 %v2091_v47, 16 }
  0x9b   : > { %v2107_v56 = vrot.slane %v1007_v43, 4  ;;  %v2109_v53 = vrot.slane %v1010_v20, 5  ;;  %v1024_v27 = vshll.u32 %v2091_v47, 16  ;;  %v990_v18 = vrot.slane %v988_v19, 5  ;;  %v2145_v20 = vpop.permute.xlu0 %1101 }
  0x9c   : > { %v1004_v2 = vrot.slane %v1002_v26, 5  ;;  %v476_v31 = vmul.f32 %v1971_v57, %v1731_v14  ;;  %v493_v8 = vadd.f32 %v1989_v37, %v474_v1  ;;  %v957_v4 = vor.u32 %v2066_v23, %v2064_v24 }
  0x9d   : > { %v971_v42 = vor.u32 %v970_v58, %v967_v60  ;;  %v394_v49 = vmul.f32 %v2001_v11, %v1736_v16  ;;  %v396_v61 = vmul.f32 %v2001_v11, %v271_v17  ;;  %v991_v48 = vsel %vm1880_vm3, %v986_v41, %v990_v18  ;;  %v1630_v41 = vld [vmem:[%s2286_s3 + $0x8] sm:$0xff]  }
  0x9e   : > { %v1005_v14 = vsel %vm1880_vm3, %v1000_v15, %v1004_v2  ;;  %v495_v6 = vadd.f32 %v1989_v37, %v476_v31  ;;  %v509_v32 = vmax.f32 %v493_v8, 0.0  ;;  %v958_v23 = vrot.slane %v957_v4, 4 }
  0x9f   : > { %v1504_v24 = vcombine.low %v991_v48, %v1005_v14  ;;  %v972_v60 = vrot.slane %v971_v42, 4  ;;  %v415_v16 = vadd.f32 %v2003_v21, %v394_v49  ;;  %v417_v17 = vadd.f32 %v2003_v21, %v396_v61 }
  0xa0   : > { %v511_v58 = vmax.f32 %v495_v6, 0.0  ;;  %v1560_v10 = vpack.c.bf16 %v509_v32, %v509_v32  ;;  %v390_v59 = vmul.f32 %v2001_v11, %v1754_v25  ;;  %v392_v30 = vmul.f32 %v2001_v11, %v1763_v36  ;;  %v1629_v25 = vld [vmem:[%s2286_s3] sm:$0xff]  }
  0xa1   : > { %1076 = vrot.lane.b32.xlu1 %v1504_v24, %s1640_s22  ;;  %v433_v47 = vmax.f32 %v415_v16, 0.0  ;;  %v486_v63 = vmul.f32 %v1971_v57, %v268_v51  ;;  %v488_v43 = vmul.f32 %v1971_v57, %v270_v55  ;;  %v435_v11 = vmax.f32 %v417_v17, 0.0  ;;  %1592 = vmatprep.subr.bf16.mxu0 %v1629_v25 }
  0xa2   : > { %v1562_v19 = vpack.c.bf16 %v511_v58, %v511_v58  ;;  %v960_v36 = vshll.u32 %v1560_v10, 16  ;;  %v411_v22 = vadd.f32 %v2003_v21, %v390_v59  ;;  %v413_v51 = vadd.f32 %v2003_v21, %v392_v30  ;;  %1593 = vmatpush3.bf16.msra.mxu0 %v1629_v25  ;;  %1606 = vmatprep.subr.bf16.mxu1 %v1629_v25 }
  0xa3   : > { %v505_v38 = vadd.f32 %v1989_v37, %v486_v63  ;;  %v507_v55 = vadd.f32 %v1989_v37, %v488_v43  ;;  %v1041_v15 = vor.u32 %v2097_v45, %v2095_v44  ;;  %v1582_v2 = vpack.c.bf16 %v435_v11, %v433_v47  ;;  %1594 = vmatprep.subr.bf16.mxu0 %v1630_v41  ;;  %v836_v32 = vpop.permute.xlu0 %835 }
  0xa4   : > { %v962_v1 = vrot.slane %v960_v36, 5  ;;  %v974_v18 = vshll.u32 %v1562_v19, 16  ;;  %v429_v31 = vmax.f32 %v411_v22, 0.0  ;;  %v1023_v8 = vrot.slane %v1021_v29, 4  ;;  %1609 = vmatpush3.bf16.msra.mxu1 %v1629_v25 }
  0xa5   : > { %v838_v26 = vpop.permute.xlu1 %837  ;;  %v431_v4 = vmax.f32 %v413_v51, 0.0  ;;  %v521_v21 = vmax.f32 %v505_v38, 0.0  ;;  %v523_v42 = vmax.f32 %v507_v55, 0.0  ;;  %1126 = vrot.lane.b32.xlu1 %v1582_v2, %s1644_s6  ;;  %v1055_v61 = vor.u32 %v2101_v9, %v2099_v3  ;;  %1607 = vmatprep.subr.bf16.mxu1 %v1630_v41 }
  0xa6   : > { %849 = vst.msk [vmem:[#allocation2 + $0x8] sm:$0xff] %vm847_vm7, %v838_v26  ;;  %v963_v49 = vsel %vm1880_vm3, %v958_v23, %v962_v1  ;;  %v976_v44 = vrot.slane %v974_v18, 5  ;;  %v1535_v45 = vpack.c.bf16 %v429_v31, %v427_v50  ;;  %v1026_v48 = vrot.slane %v1024_v27, 5  ;;  %1595 = vmatpush3.bf16.msra.mxu0 %v1630_v41 }
  0xa7   : > { %v1536_v29 = vpack.c.bf16 %v433_v47, %v431_v4  ;;  %v1572_v14 = vpack.c.bf16 %v521_v21, %v521_v21  ;;  %v1574_v6 = vpack.c.bf16 %v523_v42, %v523_v42  ;;  %v1042_v16 = vrot.slane %v1041_v15, 4 }
  0xa8   : > { %v977_v24 = vsel %vm1880_vm3, %v972_v60, %v976_v44  ;;  %v482_v23 = vmul.f32 %v1971_v57, %v264_v35  ;;  %v484_v7 = vmul.f32 %v1971_v57, %v266_v54  ;;  %682 = vst.msk [vmem:[#allocation2 + $0x10] sm:$0xff] %vm679_vm6, %v1535_v45  ;;  %v1056_v9 = vrot.slane %v1055_v61, 4  ;;  %1610 = vmatpush3.bf16.msra.mxu1 %v1630_v41 }
  0xa9   : > { %v1503_v50 = vcombine.low %v963_v49, %v977_v24  ;;  %v1044_v3 = vshll.u32 %v1572_v14, 16  ;;  %v1058_v27 = vshll.u32 %v1574_v6, 16  ;;  %683 = vst.msk [vmem:[#allocation2 + $0x18] sm:$0xff] %vm679_vm6, %v1536_v29  ;;  %v1455_v35 = vcombine.low %v1643_v12, %v2058_v62  ;;  %v2192_v62 = vpop.permute.xlu0 %1159 }
  0xaa   : > { %v501_v60 = vadd.f32 %v1989_v37, %v482_v23  ;;  %v503_v5 = vadd.f32 %v1989_v37, %v484_v7  ;;  %v1013_v57 = vor.u32 %v2109_v53, %v2107_v56  ;;  %v1027_v59 = vor.u32 %v1026_v48, %v1023_v8  ;;  %v1631_v56 = vld [vmem:[%s2286_s3 + $0x10] ss:$0 sps:$4 sm:$0x33]  }
  0xab   : > { %1074 = vrot.lane.b32.xlu0 %v1503_v50, %s1640_s22  ;;  %v1046_v28 = vrot.slane %v1044_v3, 5  ;;  %v1060_v54 = vrot.slane %v1058_v27, 5  ;;  %680 = vst.msk [vmem:[#allocation2] sm:$0xff] %vm679_vm6, %v1455_v35  ;;  %v1581_v47 = vpack.c.bf16 %v431_v4, %v429_v31  ;;  %1612 = vmatprep.subr.msk.bf16.mxu0 %vm1213_vm8, %v1631_v56  ;;  %v1215_v11 = vsel %vm1213_vm8, %v1631_v56, 0 }
  0xac   : > { %v517_v10 = vmax.f32 %v501_v60, 0.0  ;;  %v519_v17 = vmax.f32 %v503_v5, 0.0  ;;  %848 = vst.msk [vmem:[#allocation2] sm:$0xff] %vm847_vm7, %v836_v32  ;;  %v1014_v43 = vrot.slane %v1013_v57, 4  ;;  %v1028_v19 = vrot.slane %v1027_v59, 4  ;;  %1597 = vmatpush3.bf16.msra.mxu0 %v1215_v11  ;;  %1613 = vmatprep.subr.msk.bf16.mxu1 %vm1213_vm8, %v1631_v56 }
  0xad   : > { %v2184_v58 = vpop.permute.xlu1 %1161  ;;  %v1047_v37 = vsel %vm1880_vm3, %v1042_v16, %v1046_v28  ;;  %v1061_v12 = vsel %vm1880_vm3, %v1056_v9, %v1060_v54  ;;  %1611 = vmatpush3.bf16.msra.mxu1 %v1215_v11  ;;  %vm1290_vm0 = vcmask 60416  }
  0xae   : > { %v1506_v53 = vcombine.low %v1047_v37, %v1061_v12  ;;  %v1568_v30 = vpack.c.bf16 %v517_v10, %v517_v10  ;;  %v1570_v63 = vpack.c.bf16 %v519_v17, %v519_v17 }
  0xaf   : > { %1124 = vrot.lane.b32.xlu0 %v1581_v47, %s1644_s6 }
  0xb0   : > { %1080 = vrot.lane.b32.xlu1 %v1506_v53, %s1640_s22  ;;  %v1016_v41 = vshll.u32 %v1568_v30, 16  ;;  %v1030_v36 = vshll.u32 %v1570_v63, 16 }
  0xb1   : > { %v842_v25 = vpop.permute.xlu1 %841 }
  0xb2   : > { %851 = vst.msk [vmem:[#allocation2 + $0x18] sm:$0xff] %vm847_vm7, %v842_v25  ;;  %v1018_v22 = vrot.slane %v1016_v41, 5  ;;  %v1032_v51 = vrot.slane %v1030_v36, 5 }
  0xb4   : > { %v1019_v55 = vsel %vm1880_vm3, %v1014_v43, %v1018_v22  ;;  %v1033_v15 = vsel %vm1880_vm3, %v1028_v19, %v1032_v51  ;;  %1165 = vrot.lane.b32.xlu1 %v1968_v0, %s1645_s7  ;;  %vm1352_vm3 = vcmask 58368  }
  0xb5   : > { %v840_v38 = vpop.permute.xlu0 %839  ;;  %v1505_v26 = vcombine.low %v1019_v55, %v1033_v15 }
  0xb6   : > { %850 = vst.msk [vmem:[#allocation2 + $0x10] sm:$0xff] %vm847_vm7, %v840_v38 }
  0xb7   : > { %1078 = vrot.lane.b32.xlu0 %v1505_v26, %s1640_s22 }
  0xbb   : > { %1163 = vrot.lane.b32.xlu0 %v1519_v39, %s1645_s7 }
  0xf5   : > { %v912_v1 = vpop.permute.xlu1 %911  ;;  %v910_v18 = vpop.permute.xlu0 %909 }
  0xfb   : > { %v1123_v2 = vpop.permute.xlu1 %1122 }
  0xfc   : > { %v1121_v31 = vpop.permute.xlu0 %1120 }
  0xff   : > { %v916_v8 = vpop.permute.xlu1 %915 }
 0x100   : > { %v914_v33 = vpop.permute.xlu0 %913 }
 0x103   : > { %v875_v4 = vpop.permute.xlu1 %874 }
 0x104   : > { %886 = vst.msk [vmem:[#allocation2 + $0x8] sm:$0xff] %vm884_vm9, %v875_v4  ;;  %v873_v0 = vpop.permute.xlu0 %872 }
 0x105   : > { %885 = vst.msk [vmem:[#allocation2] sm:$0xff] %vm884_vm9, %v873_v0 }
 0x106   : > { %923 = vst.msk [vmem:[#allocation2 + $0x8] sm:$0xff] %vm921_vm10, %v912_v1  ;;  %922 = vst.msk [vmem:[#allocation2] sm:$0xff] %vm921_vm10, %v910_v18 }
 0x108   : > { %v879_v21 = vpop.permute.xlu1 %878 }
 0x109   : > { %888 = vst.msk [vmem:[#allocation2 + $0x18] sm:$0xff] %vm884_vm9, %v879_v21 }
 0x10a   : > { %925 = vst.msk [vmem:[#allocation2 + $0x18] sm:$0xff] %vm921_vm10, %v916_v8  ;;  %v877_v42 = vpop.permute.xlu0 %876 }
 0x10b   : > { %887 = vst.msk [vmem:[#allocation2 + $0x10] sm:$0xff] %vm884_vm9, %v877_v42 }
 0x10c   : > { %924 = vst.msk [vmem:[#allocation2 + $0x10] sm:$0xff] %vm921_vm10, %v914_v33 }
 0x113   : > { %v1077_v52 = vpop.permute.xlu1 %1076 }
 0x114   : > { %1088 = vst.msk [vmem:[#allocation2 + $0x8] sm:$0xff] %vm1086_vm11, %v1077_v52 }
 0x115   : > { %1111 = vst.msk [vmem:[#allocation2 + $0x8] sm:$0xff] %vm1109_vm12, %v2093_v46 }
 0x116   : > { %1134 = vst.msk [vmem:[#allocation2 + $0x8] sm:$0xff] %vm1132_vm13, %v1123_v2 }
 0x117   : > { %1173 = vst.msk [vmem:[#allocation2 + $0x8] sm:$0xff] %vm1171_vm14, %v2184_v58  ;;  %v1127_v13 = vpop.permute.xlu1 %1126 }
 0x11d   : > { %v1075_v39 = vpop.permute.xlu0 %1074 }
 0x11e   : > { %1087 = vst.msk [vmem:[#allocation2] sm:$0xff] %vm1086_vm11, %v1075_v39 }
 0x11f   : > { %1110 = vst.msk [vmem:[#allocation2] sm:$0xff] %vm1109_vm12, %v2113_v34  ;;  %v1177_v34 = vld [vmem:[#allocation2 + $0x8] sm:$0xff] }
 0x120   : > { %1133 = vst.msk [vmem:[#allocation2] sm:$0xff] %vm1132_vm13, %v1121_v31 }
 0x121   : > { %1172 = vst.msk [vmem:[#allocation2] sm:$0xff] %vm1171_vm14, %v2192_v62  ;;  %v1125_v44 = vpop.permute.xlu0 %1124 }
 0x122   : > { %v1081_v49 = vpop.permute.xlu1 %1080 }
 0x123   : > { %1090 = vst.msk [vmem:[#allocation2 + $0x18] sm:$0xff] %vm1086_vm11, %v1081_v49 }
 0x124   : > { %1113 = vst.msk [vmem:[#allocation2 + $0x18] sm:$0xff] %vm1109_vm12, %v2125_v40 }
 0x125   : > { %1136 = vst.msk [vmem:[#allocation2 + $0x18] sm:$0xff] %vm1132_vm13, %v1127_v13 }
 0x126   : > { %v1166_v46 = vpop.permute.xlu1 %1165 }
 0x127   : > { %1175 = vst.msk [vmem:[#allocation2 + $0x18] sm:$0xff] %vm1171_vm14, %v1166_v46 }
 0x128   : > { %v1176_v45 = vld [vmem:[#allocation2] sm:$0xff] }
 0x129   : > { %v1079_v61 = vpop.permute.xlu0 %1078  ;;  %1598 = vmatprep.mubr.msk.bf16.mxu0 %vm1200_vm15, %v1176_v45 }
 0x12a   : > { %1089 = vst.msk [vmem:[#allocation2 + $0x10] sm:$0xff] %vm1086_vm11, %v1079_v61  ;;  %1599 = vmatmul.mubr.msk.bf16.vlgmr.msra.gmra.mrb[0].mxu0 %vm1200_vm15, %v1177_v34 }
 0x12b   : > { %1112 = vst.msk [vmem:[#allocation2 + $0x10] sm:$0xff] %vm1109_vm12, %v2145_v20 }
 0x12c   : > { %1135 = vst.msk [vmem:[#allocation2 + $0x10] sm:$0xff] %vm1132_vm13, %v1125_v44 }
 0x12d   : > { %v1164_v40 = vpop.permute.xlu0 %1163 }
 0x12e   : > { %1174 = vst.msk [vmem:[#allocation2 + $0x10] sm:$0xff] %vm1171_vm14, %v1164_v40  ;;  %v1179_v48 = vld [vmem:[#allocation2 + $0x18] sm:$0xff] }
 0x135   : > { %v1178_v29 = vld [vmem:[#allocation2 + $0x10] sm:$0xff] }
 0x136   : > { %1602 = vmatprep.mubr.msk.bf16.mxu1 %vm1200_vm15, %v1178_v29 }
 0x137   : > { %1603 = vmatmul.mubr.msk.bf16.vlgmr.msra.gmra.mrb[0].mxu1 %vm1200_vm15, %v1179_v48 }
 0x1fd   : > { %v1600_v20 = vpop.f32.mrb[0].mxu0 }
 0x1fe   : > { %v1284_v14 = vpack.c.bf16 %v1600_v20, %v1600_v20  ;;  %v1251_v6 = vpop.f32.mrb[1].mxu0  ;;  %v1323_v23 = vmul.f32 %v1600_v20, %v1600_v20  ;;  %v1303_v35 = vsel %vm1299_vm1, %v1600_v20, 0.0 }
 0x1ff   : > { %v1282_v32 = vpack.c.bf16 %v1251_v6, %v1251_v6  ;;  %v1321_v24 = vmul.f32 %v1251_v6, %v1251_v6  ;;  %v1601_v16 = vpop.f32.mrb[2].mxu0  ;;  %v1300_v3 = vsel %vm1299_vm1, %v1251_v6, 0.0 }
 0x200   : > { %1293 = vst.msk [vmem:[%s2242_s17 + $0x8] sm:$0xf] %vm1290_vm0, %v1284_v14  ;;  %v1285_v7 = vpack.c.bf16 %v1601_v16, %v1601_v16  ;;  %v1254_v50 = vpop.f32.mrb[3].mxu0  ;;  %v1324_v54 = vmul.f32 %v1601_v16, %v1601_v16  ;;  %v1332_v17 = vsel %vm1299_vm1, %v1323_v23, 0.0  ;;  %v1305_v59 = vsel %vm1299_vm1, %v1601_v16, 0.0 }
 0x201   : > { %1291 = vst.msk [vmem:[%s2242_s17] sm:$0xf] %vm1290_vm0, %v1282_v32  ;;  %v1283_v9 = vpack.c.bf16 %v1254_v50, %v1254_v50  ;;  %v1301_v27 = vsel %vm1299_vm1, %v1254_v50, 0.0  ;;  %v1322_v60 = vmul.f32 %v1254_v50, %v1254_v50  ;;  %v1329_v28 = vsel %vm1299_vm1, %v1321_v24, 0.0 }
 0x202   : > { %1294 = vst.msk [vmem:[%s2242_s17 + $0xc] sm:$0xf] %vm1290_vm0, %v1285_v7  ;;  %v1302_v5 = vadd.f32 %v1301_v27, %v1300_v3  ;;  %v1334_v12 = vsel %vm1299_vm1, %v1324_v54, 0.0 }
 0x203   : > { %1292 = vst.msk [vmem:[%s2242_s17 + $0x4] sm:$0xf] %vm1290_vm0, %v1283_v9  ;;  %v1330_v57 = vsel %vm1299_vm1, %v1322_v60, 0.0 }
 0x204   : > { %v1304_v58 = vadd.f32 %v1303_v35, %v1302_v5  ;;  %v1331_v10 = vadd.f32 %v1330_v57, %v1329_v28 }
 0x206   : > { %v1333_v47 = vadd.f32 %v1332_v17, %v1331_v10  ;;  %v1306_v37 = vadd.f32 %v1305_v59, %v1304_v58 }
 0x208   : > { %v1335_v62 = vadd.f32 %v1334_v12, %v1333_v47 }
 0x20a   : > { %v1604_v56 = vpop.f32.mrb[0].mxu1 }
 0x20b   : > { %v1288_v53 = vpack.c.bf16 %v1604_v56, %v1604_v56  ;;  %v1267_v30 = vpop.f32.mrb[1].mxu1  ;;  %v1327_v55 = vmul.f32 %v1604_v56, %v1604_v56  ;;  %v1311_v18 = vsel %vm1299_vm1, %v1604_v56, 0.0 }
 0x20c   : > { %v1286_v63 = vpack.c.bf16 %v1267_v30, %v1267_v30  ;;  %v1307_v43 = vsel %vm1299_vm1, %v1267_v30, 0.0  ;;  %v1325_v25 = vmul.f32 %v1267_v30, %v1267_v30  ;;  %v1605_v41 = vpop.f32.mrb[2].mxu1 }
 0x20d   : > { %1297 = vst.msk [vmem:[%s2242_s17 + $0x18] sm:$0xf] %vm1290_vm0, %v1288_v53  ;;  %v1308_v19 = vadd.f32 %v1307_v43, %v1306_v37  ;;  %v1289_v36 = vpack.c.bf16 %v1605_v41, %v1605_v41  ;;  %v1270_v11 = vpop.f32.mrb[3].mxu1  ;;  %v1328_v2 = vmul.f32 %v1605_v41, %v1605_v41  ;;  %v1313_v33 = vsel %vm1299_vm1, %v1605_v41, 0.0 }
 0x20e   : > { %1295 = vst.msk [vmem:[%s2242_s17 + $0x10] sm:$0xf] %vm1290_vm0, %v1286_v63  ;;  %v1336_v22 = vsel %vm1299_vm1, %v1325_v25, 0.0  ;;  %v1287_v51 = vpack.c.bf16 %v1270_v11, %v1270_v11  ;;  %v1309_v38 = vsel %vm1299_vm1, %v1270_v11, 0.0  ;;  %v1326_v1 = vmul.f32 %v1270_v11, %v1270_v11 }
 0x20f   : > { %v1337_v15 = vadd.f32 %v1336_v22, %v1335_v62  ;;  %1298 = vst.msk [vmem:[%s2242_s17 + $0x1c] sm:$0xf] %vm1290_vm0, %v1289_v36  ;;  %v1310_v26 = vadd.f32 %v1309_v38, %v1308_v19  ;;  %v1340_v0 = vsel %vm1299_vm1, %v1327_v55, 0.0  ;;  %v1342_v52 = vsel %vm1299_vm1, %v1328_v2, 0.0 }
 0x210   : > { %1296 = vst.msk [vmem:[%s2242_s17 + $0x14] sm:$0xf] %vm1290_vm0, %v1287_v51  ;;  %v1338_v8 = vsel %vm1299_vm1, %v1326_v1, 0.0 }
 0x211   : > { %v1312_v31 = vadd.f32 %v1311_v18, %v1310_v26  ;;  %v1339_v4 = vadd.f32 %v1338_v8, %v1337_v15 }
 0x213   : > { %v1314_v21 = vadd.f32 %v1313_v33, %v1312_v31  ;;  %v1341_v42 = vadd.f32 %v1340_v0, %v1339_v4 }
 0x215   : > { %v1315_v13 = vrot.slane %v1314_v21, 4  ;;  %v1343_v39 = vadd.f32 %v1342_v52, %v1341_v42 }
 0x217   : > { %v1316_v49 = vadd.f32 %v1315_v13, %v1314_v21  ;;  %v1344_v44 = vrot.slane %v1343_v39, 4 }
 0x219   : > { %v1317_v46 = vrot.slane %v1316_v49, 2  ;;  %v1345_v34 = vadd.f32 %v1344_v44, %v1343_v39 }
 0x21b   : > { %v1318_v45 = vadd.f32 %v1317_v46, %v1316_v49  ;;  %v1346_v61 = vrot.slane %v1345_v34, 2 }
 0x21d   : > { %v1319_v40 = vrot.slane %v1318_v45, 1  ;;  %v1347_v48 = vadd.f32 %v1346_v61, %v1345_v34 }
 0x21f   : > { %v1348_v29 = vrot.slane %v1347_v48, 1  ;;  %v1320_v20 = vadd.f32 %v1319_v40, %v1318_v45 }
 0x221   : > { %v1349_v14 = vadd.f32 %v1348_v29, %v1347_v48 }
 0x223   : > { %v1351_v6 = vsel %vm1350_vm2, %v1320_v20, %v1349_v14 }
 0x224   : > { %1353 = vst.msk [vmem:[%s235_s23] sm:$0x3] %vm1352_vm3, %v1351_v6 }
 0x225 PF: > { %s16_s18 = sadd.s32 1, %s1638_s18  }
 0x226   : > { %p13_p4 = scmp.ge.s32.totalorder %s16_s18, 4  }
 0x228   :  { %15 = sbr.rel (!%p13_p4) target bundleno = 1 (0x1), region = 78 }

// kernel: preact_block_forward.10
= control target key start
LH: loop header
LB: loop body
LE: loop exit
PB: predicated region body
PF: predicated region fallthrough
CT: control target
= control target key end

     0   :  { %8 = vsyncpa [#allocation6], 0  ;;  %s928_s12 = smov 0   ;;  %s1077_s0 = inlined_call_operand.vmem [shape: f32[2,8,8], index: 0, kind: input, shape index: {}]   ;;  %s1078_s1 = inlined_call_operand.vmem [shape: f32[2,4,9,9], index: 1, kind: input, shape index: {}]   ;;  %s1079_s2 = inlined_call_operand.vmem [shape: f32[56], index: 2, kind: input, shape index: {}]   ;;  %s1080_s3 = inlined_call_operand.vmem [shape: f32[2,8,8], index: 3, kind: output, shape index: {}]  }
   0x1 LB: > { %s934_s13 = sadd.s32 4294967295, %s898_s12   ;;  %p776_p0 = scmp.ge.s32.totalorder %s898_s12, 1  ;;  %s898_s12 = sphi %s928_s12, %s14_s12  }
   0x2   : > { %p118_p1 = scmp.lt.s32.totalorder %s898_s12, 3  ;;  %s131_s16 = sshll.u32 %s1079_s2, 4  ;;  %s132_s16 = int_to_ptr.vmem [resolvable:$true] %s131_s16 }
   0x3   : > { %p855_p3 = scmp.eq.s32.totalorder %s934_s13, 0  ;;  %s873_s18 = scalar_lea.vmem %s132_s16, 16 }
   0x4   : > { %p941_p2 = pnand %p776_p0, %p118_p1  ;;  %p874_p6 = scmp.ne.s32.totalorder %s132_s16, %s873_s18 }
   0x5   : > { %p881_p10 = scmp.lt.s32.totalorder %s132_s16, %s132_s16  ;;  %p882_p11 = scmp.lt.s32.totalorder %s873_s18, %s873_s18 }
   0x6   : > { %p851_p4 = pneg %p941_p2 }
   0x7   : > { %p883_p12 = por %p882_p11, %p881_p10 }
   0x8   : > { %p852_p5 = pnand %p855_p3, %p851_p4 }
   0xa   : > { %p875_p7 = pneg %p852_p5 }
   0xc   : > { %p876_p8 = pnand %p875_p7, %p874_p6 }
   0xe   : > { %p877_p9 = pneg %p876_p8 }
  0x10   : > { %p884_p13 = pnand %p883_p12, %p877_p9 }
  0x12   : > { %887 = shalt.err (!%p884_p13)
}
  0x13   : > { %s900_s19 = smov [#allocation5]   ;;  %159 = sbr.rel (%p941_p2) target bundleno = 974 (0x3ce), region = 32 }
  0x14   : > { %854 = dma.vmem_to_smem (!%p852_p5), %s132_s16, 16, %s900_s19, [#allocation6]  }
  0x1a   : > { %893 = dma.done.wait (%p855_p3), [#allocation6], 16  }
  0x1b   : > { %895 = vsyncadd (%p855_p3), [#allocation6], 4294967280 }
  0x1c   : > { %165 = sfence }
  0x1d   : > { %p187_p0 = scmp.lt.s32.totalorder %s934_s13, 1  ;;  %vm200_vm0 = vcmask 97280   ;;  %vm202_vm1 = vcmask 93184   ;;  %v901_v0 = vmov 0.0   ;;  %s902_s24 = smov 2   ;;  %vm209_vm2 = vcmask 80912  }
  0x1e   : > { %201 = vst.msk [vmem:[#allocation2] sm:$0xff] %vm200_vm0, %v901_v0  ;;  %400 = vst.msk [vmem:[#allocation3] sm:$0xff] %vm200_vm0, %v901_v0  ;;  %s786_s25 = sld [smem:[#allocation5 + $0x2]]  ;;  %s785_s26 = sld [smem:[#allocation5 + $0x1]]  ;;  %vm558_vm3 = vcmask 80896   ;;  %vm560_vm4 = vcmask 74752  }
  0x1f   : > { %203 = vst.msk [vmem:[#allocation2 + $0x8] sm:$0xf] %vm202_vm1, %v901_v0  ;;  %401 = vst.msk [vmem:[#allocation3 + $0x8] sm:$0xf] %vm202_vm1, %v901_v0  ;;  %s1083_s13 = smov (!%p187_p0, %s934_s13), 1  ;;  %s787_s27 = sld [smem:[#allocation5 + $0x3]] }
  0x20   : > { %s781_s20 = sshll.u32 %s1083_s13, 3  ;;  %s788_s28 = sld [smem:[#allocation5 + $0x4]]  ;;  %559 = vst.msk [vmem:[#allocation4] sm:$0xff] %vm558_vm3, %v901_v0  ;;  %vm566_vm7 = vcmask 72712   ;;  %vm695_vm8 = vcmask 64512  }
  0x21   : > { %s190_s23 = scalar_lea.vmem %s1077_s0, %s781_s20  ;;  %s790_s29 = sld [smem:[#allocation5 + $0x6]]  ;;  %561 = vst.msk [vmem:[#allocation4 + $0x8] sm:$0x3] %vm560_vm4, %v901_v0 }
  0x22   : > { %v204_v1 = vld [vmem:[%s190_s23] sm:$0xff]  ;;  %s791_s30 = sld [smem:[#allocation5 + $0x7]]  ;;  %s792_s4 = sld [smem:[#allocation5 + $0x8]] }
  0x23   : > { %206 = vrot.lane.b32.xlu0 %v204_v1, %s902_s24  ;;  %s793_s5 = sld [smem:[#allocation5 + $0x9]]  ;;  %s903_s6 = smov 126  }
  0x24   : > { %v225_v3 = vstv %s786_s25  ;;  %v217_v4 = vstv %s785_s26  ;;  %s904_s7 = smov 127   ;;  %s795_s8 = sld [smem:[#allocation5 + $0xb]] }
  0x25   : > { %v233_v8 = vstv %s787_s27  ;;  %s796_s9 = sld [smem:[#allocation5 + $0xc]]  ;;  %s905_s10 = smov 125  }
  0x26   : > { %v241_v9 = vstv %s788_s28  ;;  %s906_s11 = smov 124   ;;  %s797_s14 = sld [smem:[#allocation5 + $0xd]] }
  0x27   : > { %v254_v13 = vstv %s790_s29  ;;  %s798_s15 = sld [smem:[#allocation5 + $0xe]]  ;;  %s800_s16 = sld [smem:[#allocation5 + $0x10]] }
  0x28   : > { %v262_v14 = vstv %s791_s30  ;;  %v270_v17 = vstv %s792_s4  ;;  %s801_s17 = sld [smem:[#allocation5 + $0x11]]  ;;  %s802_s18 = sld [smem:[#allocation5 + $0x12]] }
  0x29   : > { %v278_v18 = vstv %s793_s5  ;;  %s803_s19 = sld [smem:[#allocation5 + $0x13]]  ;;  %s805_s21 = sld [smem:[#allocation5 + $0x15]] }
  0x2a   : > { %v291_v22 = vstv %s795_s8  ;;  %s806_s22 = sld [smem:[#allocation5 + $0x16]]  ;;  %s807_s23 = sld [smem:[#allocation5 + $0x17]] }
  0x2b   : > { %v299_v23 = vstv %s796_s9  ;;  %s808_s25 = sld [smem:[#allocation5 + $0x18]]  ;;  %s789_s27 = sld [smem:[#allocation5 + $0x5]] }
  0x2c   : > { %v307_v26 = vstv %s797_s14  ;;  %s211_s26 = sld [smem:[#allocation5]]  ;;  %s794_s28 = sld [smem:[#allocation5 + $0xa]] }
  0x2d   : > { %v315_v27 = vstv %s798_s15  ;;  %v328_v31 = vstv %s800_s16  ;;  %s799_s29 = sld [smem:[#allocation5 + $0xf]]  ;;  %s804_s30 = sld [smem:[#allocation5 + $0x14]] }
  0x2e   : > { %v336_v32 = vstv %s801_s17  ;;  %v344_v35 = vstv %s802_s18  ;;  %s809_s4 = sld [smem:[#allocation5 + $0x2b]]  ;;  %s811_s5 = sld [smem:[#allocation5 + $0x1a]] }
  0x2f   : > { %v352_v36 = vstv %s803_s19  ;;  %v365_v40 = vstv %s805_s21  ;;  %s812_s8 = sld [smem:[#allocation5 + $0x1b]]  ;;  %s814_s9 = sld [smem:[#allocation5 + $0x1d]] }
  0x30   : > { %v373_v41 = vstv %s806_s22  ;;  %v381_v44 = vstv %s807_s23  ;;  %s810_s14 = sld [smem:[#allocation5 + $0x19]]  ;;  %s813_s15 = sld [smem:[#allocation5 + $0x1c]] }
  0x31   : > { %v389_v45 = vstv %s808_s25  ;;  %v250_v56 = vstv %s789_s27  ;;  %s816_s16 = sld [smem:[#allocation5 + $0x1f]]  ;;  %s819_s17 = sld [smem:[#allocation5 + $0x2c]] }
  0x32   : > { %v213_v48 = vstv %s211_s26  ;;  %s907_s18 = smov 1   ;;  %s822_s19 = sld [smem:[#allocation5 + $0x24]] }
  0x33   : > { %s821_s21 = sld [smem:[#allocation5 + $0x23]]  ;;  %s833_s22 = sld [smem:[#allocation5 + $0x30]] }
  0x34   : > { %s846_s23 = sshll.u32 %s1083_s13, 6  ;;  %s824_s25 = sld [smem:[#allocation5 + $0x26]] }
  0x35   : > { %s838_s26 = sld [smem:[#allocation5 + $0x33]] }
  0x95   : > { %v207_v2 = vpop.permute.xlu0 %206 }
  0x96   : > { %210 = vst.msk [vmem:[#allocation2 + $0x2] sm:$0xff] %vm209_vm2, %v207_v2 }
  0x9d   : > { %v972_v5 = vld [vmem:[#allocation2] sm:$0xff] }
  0x9e   : > { %v226_v6 = vmul.f32 %v225_v3, %v972_v5  ;;  %v218_v7 = vmul.f32 %v217_v4, %v972_v5  ;;  %v234_v10 = vmul.f32 %v233_v8, %v972_v5  ;;  %v242_v11 = vmul.f32 %v241_v9, %v972_v5  ;;  %v980_v12 = vld [vmem:[#allocation2 + $0x1] sm:$0xff] }
  0x9f   : > { %v255_v15 = vmul.f32 %v254_v13, %v980_v12  ;;  %v263_v16 = vmul.f32 %v262_v14, %v980_v12  ;;  %v271_v19 = vmul.f32 %v270_v17, %v980_v12  ;;  %v279_v20 = vmul.f32 %v278_v18, %v980_v12  ;;  %v990_v21 = vld [vmem:[#allocation2 + $0x2] sm:$0xff] }
  0xa0   : > { %228 = vrot.lane.b32.xlu1 %v226_v6, %s903_s6  ;;  %220 = vrot.lane.b32.xlu0 %v218_v7, %s904_s7  ;;  %v292_v24 = vmul.f32 %v291_v22, %v990_v21  ;;  %v300_v25 = vmul.f32 %v299_v23, %v990_v21  ;;  %v308_v28 = vmul.f32 %v307_v26, %v990_v21  ;;  %v1000_v30 = vld [vmem:[#allocation2 + $0x3] sm:$0xff]  ;;  %v287_v4 = vstv %s794_s28 }
  0xa1   : > { %v316_v29 = vmul.f32 %v315_v27, %v990_v21  ;;  %v329_v33 = vmul.f32 %v328_v31, %v1000_v30  ;;  %v337_v34 = vmul.f32 %v336_v32, %v1000_v30  ;;  %v345_v37 = vmul.f32 %v344_v35, %v1000_v30  ;;  %v1010_v39 = vld [vmem:[#allocation2 + $0x4] sm:$0xff] }
  0xa2   : > { %v353_v38 = vmul.f32 %v352_v36, %v1000_v30  ;;  %v366_v42 = vmul.f32 %v365_v40, %v1010_v39  ;;  %v374_v43 = vmul.f32 %v373_v41, %v1010_v39  ;;  %v382_v46 = vmul.f32 %v381_v44, %v1010_v39 }
  0xa3   : > { %v390_v47 = vmul.f32 %v389_v45, %v1010_v39  ;;  %v214_v49 = vmul.f32 %v213_v48, %v972_v5  ;;  %v251_v59 = vmul.f32 %v250_v56, %v980_v12  ;;  %v288_v9 = vmul.f32 %v287_v4, %v990_v21 }
  0xa4   : > { %236 = vrot.lane.b32.xlu1 %v234_v10, %s905_s10  ;;  %244 = vrot.lane.b32.xlu0 %v242_v11, %s906_s11  ;;  %v361_v27 = vstv %s804_s30  ;;  %v421_v48 = vstv %s812_s8  ;;  %s825_s30 = sld [smem:[#allocation5 + $0x27]]  ;;  %s842_s8 = sld [smem:[#allocation5 + $0x36]] }
  0xa8   : > { %257 = vrot.lane.b32.xlu1 %v255_v15, %s904_s7  ;;  %265 = vrot.lane.b32.xlu0 %v263_v16, %s903_s6  ;;  %v324_v15 = vstv %s799_s29  ;;  %s1049_s29 = scalar_lea.vmem %s1078_s1, %s846_s23 }
  0xac   : > { %273 = vrot.lane.b32.xlu1 %v271_v19, %s905_s10  ;;  %281 = vrot.lane.b32.xlu0 %v279_v20, %s906_s11  ;;  %v325_v19 = vmul.f32 %v324_v15, %v1000_v30  ;;  %v397_v30 = vstv %s809_s4  ;;  %s828_s4 = sld [smem:[#allocation5 + $0x2a]] }
  0xb0   : > { %294 = vrot.lane.b32.xlu1 %v292_v24, %s904_s7  ;;  %302 = vrot.lane.b32.xlu0 %v300_v25, %s903_s6 }
  0xb4   : > { %310 = vrot.lane.b32.xlu1 %v308_v28, %s905_s10  ;;  %318 = vrot.lane.b32.xlu0 %v316_v29, %s906_s11  ;;  %v362_v29 = vmul.f32 %v361_v27, %v1010_v39  ;;  %v413_v39 = vstv %s811_s5  ;;  %s827_s5 = sld [smem:[#allocation5 + $0x29]] }
  0xb8   : > { %331 = vrot.lane.b32.xlu1 %v329_v33, %s904_s7  ;;  %339 = vrot.lane.b32.xlu0 %v337_v34, %s903_s6 }
  0xbc   : > { %347 = vrot.lane.b32.xlu1 %v345_v37, %s905_s10  ;;  %355 = vrot.lane.b32.xlu0 %v353_v38, %s906_s11 }
  0xc0   : > { %368 = vrot.lane.b32.xlu1 %v366_v42, %s904_s7  ;;  %376 = vrot.lane.b32.xlu0 %v374_v43, %s903_s6 }
  0xc4   : > { %384 = vrot.lane.b32.xlu1 %v382_v46, %s905_s10  ;;  %392 = vrot.lane.b32.xlu0 %v390_v47, %s906_s11  ;;  %s815_s10 = sld [smem:[#allocation5 + $0x1e]]  ;;  %s818_s11 = sld [smem:[#allocation5 + $0x21]] }
 0x112   : > { %v229_v50 = vpop.permute.xlu1 %228  ;;  %v221_v51 = vpop.permute.xlu0 %220 }
 0x113   : > { %v223_v52 = vadd.f32 %v221_v51, %v214_v49  ;;  %v434_v51 = vstv %s814_s9  ;;  %s830_s9 = sld [smem:[#allocation5 + $0x2e]] }
 0x115   : > { %v231_v53 = vadd.f32 %v229_v50, %v223_v52 }
 0x116   : > { %v237_v54 = vpop.permute.xlu1 %236  ;;  %v245_v55 = vpop.permute.xlu0 %244 }
 0x117   : > { %v239_v57 = vadd.f32 %v237_v54, %v231_v53 }
 0x119   : > { %v247_v58 = vadd.f32 %v245_v55, %v239_v57  ;;  %v442_v55 = vstv %s815_s10  ;;  %s831_s10 = sld [smem:[#allocation5 + $0x2f]] }
 0x11a   : > { %v258_v60 = vpop.permute.xlu1 %257  ;;  %v266_v61 = vpop.permute.xlu0 %265 }
 0x11b   : > { %v252_v62 = vadd.f32 %v251_v59, %v247_v58 }
 0x11d   : > { %v260_v63 = vadd.f32 %v258_v60, %v252_v62  ;;  %v463_v62 = vstv %s818_s11  ;;  %s823_s11 = sld [smem:[#allocation5 + $0x25]] }
 0x11e   : > { %v274_v1 = vpop.permute.xlu1 %273  ;;  %v282_v2 = vpop.permute.xlu0 %281 }
 0x11f   : > { %v268_v3 = vadd.f32 %v266_v61, %v260_v63 }
 0x121   : > { %v276_v5 = vadd.f32 %v274_v1, %v268_v3 }
 0x122   : > { %v295_v6 = vpop.permute.xlu1 %294  ;;  %v303_v7 = vpop.permute.xlu0 %302 }
 0x123   : > { %v284_v8 = vadd.f32 %v282_v2, %v276_v5  ;;  %v409_v2 = vstv %s810_s14  ;;  %s834_s14 = sld [smem:[#allocation5 + $0x31]] }
 0x125   : > { %v289_v10 = vadd.f32 %v288_v9, %v284_v8 }
 0x126   : > { %v311_v11 = vpop.permute.xlu1 %310  ;;  %v319_v14 = vpop.permute.xlu0 %318 }
 0x127   : > { %v297_v13 = vadd.f32 %v295_v6, %v289_v10 }
 0x129   : > { %v305_v12 = vadd.f32 %v303_v7, %v297_v13  ;;  %v430_v7 = vstv %s813_s15  ;;  %s836_s15 = sld [smem:[#allocation5 + $0x32]] }
 0x12a   : > { %v332_v17 = vpop.permute.xlu1 %331  ;;  %v340_v20 = vpop.permute.xlu0 %339 }
 0x12b   : > { %v313_v16 = vadd.f32 %v311_v11, %v305_v12 }
 0x12d   : > { %v321_v18 = vadd.f32 %v319_v14, %v313_v16 }
 0x12e   : > { %v348_v24 = vpop.permute.xlu1 %347  ;;  %v356_v26 = vpop.permute.xlu0 %355 }
 0x12f   : > { %v326_v22 = vadd.f32 %v325_v19, %v321_v18 }
 0x131   : > { %v334_v23 = vadd.f32 %v332_v17, %v326_v22 }
 0x132   : > { %v369_v31 = vpop.permute.xlu1 %368  ;;  %v377_v33 = vpop.permute.xlu0 %376 }
 0x133   : > { %v342_v25 = vadd.f32 %v340_v20, %v334_v23  ;;  %v451_v20 = vstv %s816_s16  ;;  %s839_s16 = sld [smem:[#allocation5 + $0x34]] }
 0x135   : > { %v350_v21 = vadd.f32 %v348_v24, %v342_v25 }
 0x136   : > { %v385_v36 = vpop.permute.xlu1 %384  ;;  %v393_v38 = vpop.permute.xlu0 %392 }
 0x137   : > { %v358_v28 = vadd.f32 %v356_v26, %v350_v21 }
 0x139   : > { %v363_v32 = vadd.f32 %v362_v29, %v358_v28 }
 0x13b   : > { %v371_v34 = vadd.f32 %v369_v31, %v363_v32 }
 0x13d   : > { %v379_v35 = vadd.f32 %v377_v33, %v371_v34 }
 0x13f   : > { %v387_v37 = vadd.f32 %v385_v36, %v379_v35 }
 0x141   : > { %v395_v40 = vadd.f32 %v393_v38, %v387_v37 }
 0x143   : > { %v398_v41 = vadd.f32 %v397_v30, %v395_v40  ;;  %v513_v40 = vlaneseq }
 0x145   : > { %v399_v42 = vmax.f32 %v398_v41, 0.0  ;;  %v528_v41 = vand.u32 127, %v513_v40 }
 0x147   : > { %403 = vrot.lane.b32.xlu1 %v399_v42, %s902_s24  ;;  %s817_s24 = sld [smem:[#allocation5 + $0x20]]  ;;  %v514_v42 = vshrl.u32 %v513_v40, 7 }
 0x14d   : > { %v455_v58 = vstv %s817_s24  ;;  %s820_s24 = sld [smem:[#allocation5 + $0x22]] }
 0x1b9   : > { %v404_v43 = vpop.permute.xlu1 %403 }
 0x1ba   : > { %406 = vst.msk [vmem:[#allocation3 + $0x2] sm:$0xff] %vm209_vm2, %v404_v43  ;;  %v533_v43 = vand.u32 1, %v528_v41 }
 0x1bc   : > { %vm542_vm5 = vcmp.eq.s32.totalorder %v533_v43, 0  ;;  %v841_v43 = vld [vmem:[%s1049_s29 + $0x11] sm:$0xff] }
 0x1c1   : > { %v470_v44 = vld [vmem:[#allocation3] sm:$0xff] }
 0x1c2   : > { %v408_v45 = vld [vmem:[#allocation3 + $0x1] sm:$0xff]  ;;  %v473_v46 = vmul.f32 %v470_v44, %v413_v39  ;;  %v479_v49 = vmul.f32 %v470_v44, %v421_v48  ;;  %v471_v5 = vmul.f32 %v470_v44, %v409_v2 }
 0x1c3   : > { %v414_v47 = vmul.f32 %v413_v39, %v408_v45  ;;  %v422_v50 = vmul.f32 %v421_v48, %v408_v45  ;;  %v429_v52 = vld [vmem:[#allocation3 + $0x2] sm:$0xff]  ;;  %v487_v53 = vmul.f32 %v434_v51, %v408_v45  ;;  %v493_v56 = vmul.f32 %v442_v55, %v408_v45 }
 0x1c4   : > { %475 = vrot.lane.b32.xlu1 %v473_v46, %s904_s7  ;;  %v435_v54 = vmul.f32 %v434_v51, %v429_v52  ;;  %v443_v57 = vmul.f32 %v442_v55, %v429_v52  ;;  %v450_v59 = vld [vmem:[#allocation3 + $0x3] sm:$0xff]  ;;  %v501_v60 = vmul.f32 %v455_v58, %v429_v52  ;;  %v507_v63 = vmul.f32 %v463_v62, %v429_v52  ;;  %v635_v55 = vld [vmem:[%s1049_s29] sm:$0xff] }
 0x1c5   : > { %416 = vrot.lane.b32.xlu0 %v414_v47, %s904_s7  ;;  %v456_v61 = vmul.f32 %v455_v58, %v450_v59  ;;  %v464_v1 = vmul.f32 %v463_v62, %v450_v59  ;;  %v410_v6 = vmul.f32 %v409_v2, %v408_v45  ;;  %v485_v12 = vmul.f32 %v430_v7, %v408_v45  ;;  %v835_v62 = vld [vmem:[%s1049_s29 + $0x20] sm:$0xff] }
 0x1c6   : > { %v431_v15 = vmul.f32 %v430_v7, %v429_v52  ;;  %v499_v21 = vmul.f32 %v451_v20, %v429_v52  ;;  %v452_v28 = vmul.f32 %v451_v20, %v450_v59  ;;  %v519_v39 = vand.u32 1, %v514_v42 }
 0x1c7   : > { %v555_v45 = vstv %s819_s17  ;;  %v582_v52 = vstv %s822_s19  ;;  %v603_v2 = vstv %s825_s30  ;;  %v616_v7 = vstv %s827_s5  ;;  %s829_s17 = sld [smem:[#allocation5 + $0x2d]] }
 0x1c8   : > { %481 = vrot.lane.b32.xlu1 %v479_v49, %s903_s6  ;;  %vm541_vm6 = vcmp.eq.s32.totalorder %v519_v39, 0 }
 0x1c9   : > { %424 = vrot.lane.b32.xlu0 %v422_v50, %s903_s6 }
 0x1cc   : > { %489 = vrot.lane.b32.xlu1 %v487_v53, %s904_s7  ;;  %v574_v53 = vstv %s821_s21 }
 0x1cd   : > { %437 = vrot.lane.b32.xlu0 %v435_v54, %s904_s7 }
 0x1d0   : > { %495 = vrot.lane.b32.xlu1 %v493_v56, %s903_s6  ;;  %v646_v56 = vstv %s833_s22  ;;  %s199_s22 = scalar_lea.vmem %s1080_s3, %s781_s20 }
 0x1d1   : > { %445 = vrot.lane.b32.xlu0 %v443_v57, %s903_s6 }
 0x1d4   : > { %503 = vrot.lane.b32.xlu1 %v501_v60, %s904_s7  ;;  %v595_v60 = vstv %s824_s25 }
 0x1d5   : > { %458 = vrot.lane.b32.xlu0 %v456_v61, %s904_s7  ;;  %v647_v61 = vmul.f32 %v646_v56, %v635_v55  ;;  %v632_v56 = vstv %s829_s17 }
 0x1d8   : > { %509 = vrot.lane.b32.xlu1 %v507_v63, %s903_s6  ;;  %v666_v63 = vstv %s838_s26 }
 0x1d9   : > { %466 = vrot.lane.b32.xlu0 %v464_v1, %s903_s6 }
 0x236   : > { %v476_v3 = vpop.permute.xlu1 %475 }
 0x237   : > { %v417_v4 = vpop.permute.xlu0 %416  ;;  %v478_v8 = vadd.f32 %v476_v3, %v471_v5  ;;  %v667_v3 = vmul.f32 %v835_v62, %v666_v63 }
 0x238   : > { %v419_v9 = vadd.f32 %v417_v4, %v410_v6  ;;  %v624_v6 = vstv %s828_s4 }
 0x23a   : > { %v482_v10 = vpop.permute.xlu1 %481 }
 0x23b   : > { %v425_v11 = vpop.permute.xlu0 %424  ;;  %v484_v13 = vadd.f32 %v482_v10, %v478_v8  ;;  %v674_v8 = vld [vmem:[%s1049_s29 + $0x1] sm:$0xff] }
 0x23c   : > { %v427_v14 = vadd.f32 %v425_v11, %v419_v9  ;;  %v684_v9 = vstv %s842_s8 }
 0x23d   : > { %v486_v16 = vadd.f32 %v485_v12, %v484_v13  ;;  %v685_v13 = vmul.f32 %v684_v9, %v674_v8  ;;  %v832_v12 = vld [vmem:[%s1049_s29 + $0x10] sm:$0xff] }
 0x23e   : > { %v432_v17 = vadd.f32 %v431_v15, %v427_v14  ;;  %v490_v18 = vpop.permute.xlu1 %489  ;;  %v636_v14 = vstv %s830_s9  ;;  %v642_v15 = vstv %s831_s10 }
 0x23f   : > { %v438_v19 = vpop.permute.xlu0 %437  ;;  %v492_v22 = vadd.f32 %v490_v18, %v486_v16  ;;  %v570_v16 = vstv %s820_s24  ;;  %v643_v18 = vmul.f32 %v832_v12, %v642_v15 }
 0x240   : > { %v440_v23 = vadd.f32 %v438_v19, %v432_v17  ;;  %v637_v17 = vmul.f32 %v636_v14, %v635_v55 }
 0x242   : > { %v496_v24 = vpop.permute.xlu1 %495 }
 0x243   : > { %v446_v25 = vpop.permute.xlu0 %445  ;;  %v498_v26 = vadd.f32 %v496_v24, %v492_v22  ;;  %v656_v24 = vstv %s834_s14 }
 0x244   : > { %v448_v27 = vadd.f32 %v446_v25, %v440_v23  ;;  %v591_v23 = vstv %s823_s11 }
 0x245   : > { %v500_v29 = vadd.f32 %v499_v21, %v498_v26  ;;  %v644_v26 = vadd.f32 %v643_v18, %v637_v17  ;;  %v662_v21 = vstv %s836_s15 }
 0x246   : > { %v453_v31 = vadd.f32 %v452_v28, %v448_v27  ;;  %v504_v32 = vpop.permute.xlu1 %503  ;;  %v837_v27 = vld [vmem:[%s1049_s29 + $0x30] sm:$0xff] }
 0x247   : > { %v459_v33 = vpop.permute.xlu0 %458  ;;  %v506_v34 = vadd.f32 %v504_v32, %v500_v29 }
 0x248   : > { %v461_v35 = vadd.f32 %v459_v33, %v453_v31  ;;  %v657_v31 = vmul.f32 %v835_v62, %v656_v24 }
 0x24a   : > { %v510_v36 = vpop.permute.xlu1 %509 }
 0x24b   : > { %v467_v37 = vpop.permute.xlu0 %466  ;;  %v512_v30 = vadd.f32 %v510_v36, %v506_v34  ;;  %v663_v36 = vmul.f32 %v837_v27, %v662_v21 }
 0x24c   : > { %v469_v38 = vadd.f32 %v467_v37, %v461_v35  ;;  %v675_v37 = vstv %s839_s16 }
 0x24d   : > { %549 = vrot.lane.b32.xlu1 %v512_v30, %s904_s7 }
 0x24e   : > { %544 = vrot.lane.b32.xlu0 %v469_v38, %s904_s7 }
 0x2bf   : > { %v550_v44 = vpop.permute.xlu1 %549 }
 0x2c0   : > { %v545_v0 = vpop.permute.xlu0 %544  ;;  %v552_v46 = vsel %vm542_vm5, %v550_v44, %v512_v30  ;;  %v676_v44 = vmul.f32 %v675_v37, %v674_v8 }
 0x2c1   : > { %v547_v47 = vsel %vm542_vm5, %v545_v0, %v469_v38 }
 0x2c2   : > { %v553_v48 = vsel %vm541_vm6, %v547_v47, %v552_v46 }
 0x2c3   : > { %v556_v49 = vadd.f32 %v555_v45, %v553_v48 }
 0x2c5   : > { %v557_v50 = vmax.f32 %v556_v49, 0.0 }
 0x2c7   : > { %563 = vrot.lane.b32.xlu0 %v557_v50, %s907_s18  ;;  %s843_s18 = sld [smem:[#allocation5 + $0x37]] }
 0x339   : > { %v564_v51 = vpop.permute.xlu0 %563 }
 0x33a   : > { %567 = vst.msk [vmem:[#allocation4 + $0x1] sm:$0xff] %vm566_vm7, %v564_v51 }
 0x341   : > { %v569_v54 = vld [vmem:[#allocation4] sm:$0xff] }
 0x342   : > { %v583_v57 = vmul.f32 %v582_v52, %v569_v54  ;;  %v575_v58 = vmul.f32 %v574_v53, %v569_v54  ;;  %v590_v59 = vld [vmem:[#allocation4 + $0x1] sm:$0xff]  ;;  %v571_v19 = vmul.f32 %v570_v16, %v569_v54 }
 0x343   : > { %v596_v1 = vmul.f32 %v595_v60, %v590_v59  ;;  %v604_v4 = vmul.f32 %v603_v2, %v590_v59  ;;  %v611_v5 = vld [vmem:[#allocation4 + $0x2] sm:$0xff]  ;;  %v592_v29 = vmul.f32 %v591_v23, %v590_v59 }
 0x344   : > { %585 = vrot.lane.b32.xlu0 %v583_v57, %s903_s6  ;;  %577 = vrot.lane.b32.xlu1 %v575_v58, %s904_s7  ;;  %v625_v10 = vmul.f32 %v624_v6, %v611_v5  ;;  %v617_v11 = vmul.f32 %v616_v7, %v611_v5  ;;  %v692_v57 = vstv %s843_s18 }
 0x348   : > { %598 = vrot.lane.b32.xlu0 %v596_v1, %s904_s7  ;;  %649 = vrot.lane.b32.xlu1 %v647_v61, %s904_s7 }
 0x34c   : > { %669 = vrot.lane.b32.xlu0 %v667_v3, %s904_s7  ;;  %606 = vrot.lane.b32.xlu1 %v604_v4, %s903_s6 }
 0x350   : > { %627 = vrot.lane.b32.xlu0 %v625_v10, %s903_s6  ;;  %619 = vrot.lane.b32.xlu1 %v617_v11, %s904_s7  ;;  %s1064_s6 = sld [smem:[#allocation5 + $0x28]] }
 0x354   : > { %687 = vrot.lane.b32.xlu1 %v685_v13, %s904_s7  ;;  %s840_s7 = sld [smem:[#allocation5 + $0x35]] }
 0x356   : > { %v612_v30 = vstv %s1064_s6 }
 0x357   : > { %v613_v46 = vmul.f32 %v612_v30, %v611_v5 }
 0x35a   : > { %v680_v39 = vstv %s840_s7 }
 0x35b   : > { %v681_v49 = vmul.f32 %v841_v43, %v680_v39 }
 0x3b6   : > { %v586_v20 = vpop.permute.xlu0 %585  ;;  %v578_v22 = vpop.permute.xlu1 %577 }
 0x3b7   : > { %v580_v25 = vadd.f32 %v578_v22, %v571_v19 }
 0x3b9   : > { %v588_v28 = vadd.f32 %v586_v20, %v580_v25 }
 0x3ba   : > { %v599_v32 = vpop.permute.xlu0 %598  ;;  %v650_v33 = vpop.permute.xlu1 %649 }
 0x3bb   : > { %v593_v34 = vadd.f32 %v592_v29, %v588_v28  ;;  %v652_v35 = vadd.f32 %v650_v33, %v644_v26 }
 0x3bd   : > { %v601_v38 = vadd.f32 %v599_v32, %v593_v34  ;;  %v658_v40 = vadd.f32 %v657_v31, %v652_v35 }
 0x3be   : > { %v670_v41 = vpop.permute.xlu0 %669  ;;  %v607_v42 = vpop.permute.xlu1 %606 }
 0x3bf   : > { %v664_v0 = vadd.f32 %v663_v36, %v658_v40  ;;  %v609_v45 = vadd.f32 %v607_v42, %v601_v38 }
 0x3c1   : > { %v672_v47 = vadd.f32 %v670_v41, %v664_v0  ;;  %v614_v48 = vadd.f32 %v613_v46, %v609_v45 }
 0x3c2   : > { %v620_v50 = vpop.permute.xlu1 %619  ;;  %v628_v53 = vpop.permute.xlu0 %627 }
 0x3c3   : > { %v677_v51 = vadd.f32 %v676_v44, %v672_v47  ;;  %v622_v52 = vadd.f32 %v620_v50, %v614_v48 }
 0x3c5   : > { %v630_v54 = vadd.f32 %v628_v53, %v622_v52  ;;  %v682_v55 = vadd.f32 %v681_v49, %v677_v51 }
 0x3c6   : > { %v688_v58 = vpop.permute.xlu1 %687 }
 0x3c7   : > { %v690_v59 = vadd.f32 %v688_v58, %v682_v55  ;;  %v633_v60 = vadd.f32 %v632_v56, %v630_v54 }
 0x3c9   : > { %v693_v61 = vadd.f32 %v692_v57, %v690_v59 }
 0x3cb   : > { %v694_v62 = vadd.f32 %v693_v61, %v633_v60 }
 0x3cd   : > { %696 = vst.msk [vmem:[%s199_s22] sm:$0xff] %vm695_vm8, %v694_v62 }
 0x3ce PF: > { %s14_s12 = sadd.s32 1, %s898_s12  }
 0x3cf   : > { %p11_p1 = scmp.ge.s32.totalorder %s14_s12, 4  }
 0x3d1   :  { %13 = sbr.rel (!%p11_p1) target bundleno = 1 (0x1), region = 73 }
 0x3d8   :  { %716 = vsyncpa [#allocation6], 1 }
 0x3d9   :  { %718 = vsyncpa [#allocation6 + $0x1], 1 }

// kernel: preact_block_forward.9
= control target key start
LH: loop header
LB: loop body
LE: loop exit
PB: predicated region body
PF: predicated region fallthrough
CT: control target
= control target key end

     0   :  { %s1876_s18 = smov 0   ;;  %s2207_s0 = inlined_call_operand.vmem [shape: bf16[2,8,8,8], index: 0, kind: input, shape index: {}]   ;;  %s2208_s1 = inlined_call_operand.vmem [shape: f32[1,1,8], index: 1, kind: input, shape index: {}]   ;;  %s2209_s2 = inlined_call_operand.vmem [shape: f32[1,1,8], index: 2, kind: input, shape index: {}]   ;;  %s2210_s3 = inlined_call_operand.vmem [shape: bf16[72,8], index: 3, kind: input, shape index: {}]   ;;  %s2211_s4 = inlined_call_operand.vmem [shape: bf16[2,8,8,8], index: 4, kind: output, shape index: {0}]   ;;  %s2212_s5 = inlined_call_operand.vmem [shape: f32[2,64,1], index: 5, kind: output, shape index: {1}]  }
   0x1 LB: > { %s1634_s19 = sadd.s32 4294967295, %s1835_s18   ;;  %p1638_p0 = scmp.ge.s32.totalorder %s1835_s18, 1  ;;  %s1835_s18 = sphi %s1876_s18, %s16_s18  }
   0x2   : > { %p190_p1 = scmp.lt.s32.totalorder %s1835_s18, 3 }
   0x4   : > { %p191_p2 = pnand %p1638_p0, %p190_p1 }
   0x5   : > { %p223_p3 = scmp.lt.s32.totalorder (!%p191_p2), %s1634_s19, 1  ;;  %vm293_vm0 = vcmask (!%p191_p2), 60416   ;;  %vm295_vm1 = vcmask (!%p191_p2), 57344   ;;  %v1837_v0 = vmov (!%p191_p2), 0   ;;  %v1645_v1 = vld [vmem:[%s2208_s1] ss:$0 sm:$0xff] (!%p191_p2) }
   0x6   : > { %194 = sbr.rel (%p191_p2) target bundleno = 631 (0x277), region = 36  ;;  %305 = vst.msk [vmem:[#allocation2 + $0x28] sm:$0xf] (!%p191_p2), %vm293_vm0, %v1837_v0  ;;  %307 = vst.msk [vmem:[#allocation2 + $0x30] sm:$0xf] (!%p191_p2), %vm293_vm0, %v1837_v0  ;;  %vm711_vm6 = vcmask (!%p191_p2), 1042432  }
   0x7   : > { %294 = vst.msk [vmem:[#allocation2] sm:$0xf] (!%p191_p2), %vm293_vm0, %v1837_v0  ;;  %297 = vst.msk [vmem:[#allocation2 + $0x8] sm:$0xf] (!%p191_p2), %vm293_vm0, %v1837_v0  ;;  %v1646_v3 = vld [vmem:[%s2209_s2] ss:$0 sm:$0xff] (!%p191_p2) }
   0x8   : > { %299 = vst.msk [vmem:[#allocation2 + $0x10] sm:$0xf] (!%p191_p2), %vm293_vm0, %v1837_v0  ;;  %301 = vst.msk [vmem:[#allocation2 + $0x18] sm:$0xf] (!%p191_p2), %vm293_vm0, %v1837_v0  ;;  %vm429_vm2 = vsmask.f32 (!%p191_p2), 7938 }
   0x9   : > { %303 = vst.msk [vmem:[#allocation2 + $0x20] sm:$0xf] (!%p191_p2), %vm293_vm0, %v1837_v0  ;;  %309 = vst.msk [vmem:[#allocation2 + $0x38] sm:$0xf] (!%p191_p2), %vm293_vm0, %v1837_v0  ;;  %vm435_vm3 = vsmask.f32 (!%p191_p2), 256 }
   0xa   : > { %311 = vst.msk [vmem:[#allocation2 + $0x40] sm:$0xf] (!%p191_p2), %vm293_vm0, %v1837_v0  ;;  %313 = vst.msk [vmem:[#allocation2 + $0x48] sm:$0xf] (!%p191_p2), %vm293_vm0, %v1837_v0  ;;  %vm712_vm7 = vcmask (!%p191_p2), 1046532   ;;  %s1838_s28 = smov (!%p191_p2), 24  }
   0xb   : > { %304 = vst.msk [vmem:[#allocation2 + $0x24] sm:$0x1] (!%p191_p2), %vm295_vm1, %v1837_v0  ;;  %306 = vst.msk [vmem:[#allocation2 + $0x2c] sm:$0x1] (!%p191_p2), %vm295_vm1, %v1837_v0  ;;  %s1839_s29 = smov (!%p191_p2), 48   ;;  %s1840_s30 = smov (!%p191_p2), 16  }
   0xc   : > { %296 = vst.msk [vmem:[#allocation2 + $0x4] sm:$0x1] (!%p191_p2), %vm295_vm1, %v1837_v0  ;;  %298 = vst.msk [vmem:[#allocation2 + $0xc] sm:$0x1] (!%p191_p2), %vm295_vm1, %v1837_v0  ;;  %vm535_vm9 = vsmask.f32 (!%p191_p2), 3328 }
   0xd   : > { %s2222_s19 = smov (!%p223_p3, %s1634_s19), 1  ;;  %300 = vst.msk [vmem:[#allocation2 + $0x14] sm:$0x1] %vm295_vm1, %v1837_v0  ;;  %302 = vst.msk [vmem:[#allocation2 + $0x1c] sm:$0x1] %vm295_vm1, %v1837_v0  ;;  %s1841_s6 = smov 40  }
   0xe   : > { %308 = vst.msk [vmem:[#allocation2 + $0x34] sm:$0x1] %vm295_vm1, %v1837_v0  ;;  %310 = vst.msk [vmem:[#allocation2 + $0x3c] sm:$0x1] %vm295_vm1, %v1837_v0  ;;  %s1726_s20 = sshll.u32 %s2222_s19, 5  ;;  %s1842_s7 = smov 8  }
   0xf   : > { %312 = vst.msk [vmem:[#allocation2 + $0x44] sm:$0x1] %vm295_vm1, %v1837_v0  ;;  %314 = vst.msk [vmem:[#allocation2 + $0x4c] sm:$0x1] %vm295_vm1, %v1837_v0  ;;  %s227_s23 = scalar_lea.vmem %s2207_s0, %s1726_s20  ;;  %v458_v51 = vld [vmem:[#allocation2 + $0x28] sm:$0xf]  ;;  %s232_s26 = scalar_lea.vmem %s2211_s4, %s1726_s20 }
  0x10   : > { %v1754_v2 = vld [vmem:[%s227_s23 + $0x10] sm:$0xff]   ;;  %v1738_v4 = vld [vmem:[%s227_s23] sm:$0xff]   ;;  %v1755_v5 = vld [vmem:[%s227_s23 + $0x18] sm:$0xff]   ;;  %vm536_vm10 = vsmask.f32 7440  ;;  %s1843_s8 = smov 32  }
  0x11   : > { %v1747_v6 = vunpack.c.l.bf16 %v1754_v2  ;;  %v1748_v7 = vunpack.c.h.bf16 %v1754_v2  ;;  %v1739_v8 = vunpack.c.l.bf16 %v1738_v4  ;;  %v1740_v9 = vunpack.c.h.bf16 %v1738_v4  ;;  %v1753_v10 = vld [vmem:[%s227_s23 + $0x8] sm:$0xff]   ;;  %v464_v58 = vld [vmem:[#allocation2 + $0x30] sm:$0xf]  ;;  %vm1926_vm4 = vmand %vm293_vm0, %vm429_vm2  ;;  %s1844_s11 = smov 56   ;;  %s1845_s23 = smov 64  }
  0x12   : > { %v1751_v11 = vunpack.c.l.bf16 %v1755_v5  ;;  %v1752_v12 = vunpack.c.h.bf16 %v1755_v5  ;;  %v1743_v13 = vunpack.c.l.bf16 %v1753_v10  ;;  %v1744_v14 = vunpack.c.h.bf16 %v1753_v10  ;;  %v431_v0 = vld [vmem:[#allocation2 + $0x8] sm:$0xf]  ;;  %vm1938_vm5 = vmand %vm295_vm1, %vm435_vm3  ;;  %s1728_s20 = sshll.u32 %s2222_s19, 6 }
  0x13   : > { %v266_v15 = vmul.f32 %v1747_v6, %v1645_v1  ;;  %v267_v16 = vmul.f32 %v1748_v7, %v1645_v1  ;;  %v262_v17 = vmul.f32 %v1739_v8, %v1645_v1  ;;  %v263_v18 = vmul.f32 %v1740_v9, %v1645_v1  ;;  %v440_v7 = vld [vmem:[#allocation2 + $0x10] sm:$0xf]  ;;  %vm1981_vm8 = vmor %vm711_vm6, %vm712_vm7 }
  0x14   : > { %v268_v19 = vmul.f32 %v1751_v11, %v1645_v1  ;;  %v269_v20 = vmul.f32 %v1752_v12, %v1645_v1  ;;  %v264_v21 = vmul.f32 %v1743_v13, %v1645_v1  ;;  %v265_v22 = vmul.f32 %v1744_v14, %v1645_v1  ;;  %v470_v12 = vld [vmem:[#allocation2 + $0x38] sm:$0xf]  ;;  %vm2033_vm11 = vmor %vm535_vm9, %vm536_vm10 }
  0x15   : > { %v281_v23 = vadd.f32 %v1646_v3, %v266_v15  ;;  %v282_v24 = vadd.f32 %v1646_v3, %v267_v16  ;;  %v277_v25 = vadd.f32 %v1646_v3, %v262_v17  ;;  %v278_v26 = vadd.f32 %v1646_v3, %v263_v18  ;;  %v476_v17 = vld [vmem:[#allocation2 + $0x40] sm:$0xf] }
  0x16   : > { %v283_v27 = vadd.f32 %v1646_v3, %v268_v19  ;;  %v284_v28 = vadd.f32 %v1646_v3, %v269_v20  ;;  %v279_v29 = vadd.f32 %v1646_v3, %v264_v21  ;;  %v280_v30 = vadd.f32 %v1646_v3, %v265_v22  ;;  %v461_v19 = vld [vmem:[#allocation2 + $0x2c] sm:$0x1] }
  0x17   : > { %v289_v31 = vmax.f32 %v281_v23, 0.0  ;;  %v290_v32 = vmax.f32 %v282_v24, 0.0  ;;  %v285_v33 = vmax.f32 %v277_v25, 0.0  ;;  %v286_v34 = vmax.f32 %v278_v26, 0.0  ;;  %v437_v24 = vld [vmem:[#allocation2 + $0xc] sm:$0x1] }
  0x18   : > { %v291_v35 = vmax.f32 %v283_v27, 0.0  ;;  %v292_v36 = vmax.f32 %v284_v28, 0.0  ;;  %v287_v37 = vmax.f32 %v279_v29, 0.0  ;;  %v288_v38 = vmax.f32 %v280_v30, 0.0  ;;  %v467_v25 = vld [vmem:[#allocation2 + $0x34] sm:$0x1] }
  0x19   : > { %v1733_v39 = vpack.c.bf16 %v289_v31, %v289_v31  ;;  %v1734_v40 = vpack.c.bf16 %v290_v32, %v290_v32  ;;  %v1729_v41 = vpack.c.bf16 %v285_v33, %v285_v33  ;;  %v1730_v42 = vpack.c.bf16 %v286_v34, %v286_v34  ;;  %v473_v30 = vld [vmem:[#allocation2 + $0x3c] sm:$0x1]  ;;  %v443_v31 = vld [vmem:[#allocation2 + $0x14] sm:$0x1] }
  0x1a   : > { %v1735_v43 = vpack.c.bf16 %v291_v35, %v291_v35  ;;  %v1736_v44 = vpack.c.bf16 %v292_v36, %v292_v36  ;;  %v1918_v45 = vpack.c.bf16 %v287_v37, %v287_v37  ;;  %v1920_v46 = vpack.c.bf16 %v288_v38, %v288_v38  ;;  %v479_v36 = vld [vmem:[#allocation2 + $0x44] sm:$0x1] }
  0x1b   : > { %v380_v47 = vshrl.u32 %v1733_v39, 16  ;;  %v383_v48 = vshll.u32 %v1733_v39, 16  ;;  %v388_v49 = vshrl.u32 %v1734_v40, 16  ;;  %v391_v50 = vshll.u32 %v1734_v40, 16  ;;  %v446_v39 = vld [vmem:[#allocation2 + $0x18] sm:$0xf] }
  0x1c   : > { %v348_v52 = vshrl.u32 %v1729_v41, 16  ;;  %v351_v53 = vshll.u32 %v1729_v41, 16  ;;  %v356_v54 = vshrl.u32 %v1730_v42, 16  ;;  %v359_v55 = vshll.u32 %v1730_v42, 16 }
  0x1d   : > { %v382_v56 = vrot.slane %v380_v47, 7  ;;  %v1922_v57 = vrot.slane %v388_v49, 7  ;;  %v396_v59 = vshrl.u32 %v1735_v43, 16  ;;  %v399_v60 = vshll.u32 %v1735_v43, 16 }
  0x1e   : > { %v350_v62 = vrot.slane %v348_v52, 7  ;;  %v358_v63 = vrot.slane %v356_v54, 7  ;;  %v404_v1 = vshrl.u32 %v1736_v44, 16  ;;  %v407_v2 = vshll.u32 %v1736_v44, 16  ;;  %v449_v44 = vld [vmem:[#allocation2 + $0x1c] sm:$0x1] }
  0x1f   : > { %v385_v3 = vor.u32 %v383_v48, %v382_v56  ;;  %v386_v4 = vrot.slane %v382_v56, 4  ;;  %v393_v5 = vor.u32 %v391_v50, %v1922_v57  ;;  %v394_v6 = vrot.slane %v1922_v57, 4  ;;  %v679_v54 = vld [vmem:[#allocation2] sm:$0xe]  ;;  %v680_v56 = vld [vmem:[#allocation2 + $0x4] sm:$0x1] }
  0x20   : > { %v353_v8 = vor.u32 %v351_v53, %v350_v62  ;;  %v354_v9 = vrot.slane %v350_v62, 4  ;;  %v361_v10 = vor.u32 %v359_v55, %v358_v63  ;;  %v362_v11 = vrot.slane %v358_v63, 4 }
  0x21   : > { %v459_v13 = vsel %vm1926_vm4, %v385_v3, %v458_v51  ;;  %v465_v14 = vsel %vm1926_vm4, %v393_v5, %v464_v58  ;;  %v398_v15 = vrot.slane %v396_v59, 7  ;;  %v406_v16 = vrot.slane %v404_v1, 7  ;;  %v1976_v5 = vld [vmem:[#allocation2] sm:$0xf] }
  0x22   : > { %460 = vst [vmem:[#allocation2 + $0x28] sm:$0xf] %v459_v13  ;;  %466 = vst [vmem:[#allocation2 + $0x30] sm:$0xf] %v465_v14  ;;  %v432_v20 = vsel %vm1926_vm4, %v353_v8, %v431_v0  ;;  %v441_v21 = vsel %vm1926_vm4, %v361_v10, %v440_v7  ;;  %v364_v22 = vshrl.u32 %v1918_v45, 16  ;;  %v367_v23 = vshll.u32 %v1918_v45, 16 }
  0x23   : > { %433 = vst [vmem:[#allocation2 + $0x8] sm:$0xf] %v432_v20  ;;  %442 = vst [vmem:[#allocation2 + $0x10] sm:$0xf] %v441_v21  ;;  %v401_v26 = vor.u32 %v399_v60, %v398_v15  ;;  %v402_v27 = vrot.slane %v398_v15, 4  ;;  %v409_v28 = vor.u32 %v407_v2, %v406_v16  ;;  %v410_v29 = vrot.slane %v406_v16, 4 }
  0x24   : > { %v366_v32 = vrot.slane %v364_v22, 7  ;;  %v372_v33 = vshrl.u32 %v1920_v46, 16  ;;  %v375_v34 = vshll.u32 %v1920_v46, 16  ;;  %v462_v35 = vsel %vm1938_vm5, %v386_v4, %v461_v19  ;;  %v452_v45 = vld [vmem:[#allocation2 + $0x20] sm:$0xf] }
  0x25   : > { %v471_v37 = vsel %vm1926_vm4, %v401_v26, %v470_v12  ;;  %v477_v38 = vsel %vm1926_vm4, %v409_v28, %v476_v17  ;;  %463 = vst [vmem:[#allocation2 + $0x2c] sm:$0x1] %v462_v35  ;;  %v438_v40 = vsel %vm1938_vm5, %v354_v9, %v437_v24  ;;  %v455_v46 = vld [vmem:[#allocation2 + $0x24] sm:$0x1]  ;;  %v468_v47 = vsel %vm1938_vm5, %v394_v6, %v467_v25 }
  0x26   : > { %472 = vst [vmem:[#allocation2 + $0x38] sm:$0xf] %v471_v37  ;;  %478 = vst [vmem:[#allocation2 + $0x40] sm:$0xf] %v477_v38  ;;  %v369_v41 = vor.u32 %v367_v23, %v366_v32  ;;  %v370_v42 = vrot.slane %v366_v32, 4  ;;  %v374_v43 = vrot.slane %v372_v33, 7  ;;  %v474_v48 = vsel %vm1938_vm5, %v402_v27, %v473_v30 }
  0x27   : > { %439 = vst [vmem:[#allocation2 + $0xc] sm:$0x1] %v438_v40  ;;  %v444_v49 = vsel %vm1938_vm5, %v362_v11, %v443_v31  ;;  %v480_v50 = vsel %vm1938_vm5, %v410_v29, %v479_v36  ;;  %469 = vst [vmem:[#allocation2 + $0x34] sm:$0x1] %v468_v47  ;;  %v1663_v1 = vrot.slane %v679_v54, 9  ;;  %v716_v61 = vrot.slane %v680_v56, 5 }
  0x28   : > { %v377_v51 = vor.u32 %v375_v34, %v374_v43  ;;  %v378_v52 = vrot.slane %v374_v43, 4  ;;  %v447_v53 = vsel %vm1926_vm4, %v369_v41, %v446_v39  ;;  %475 = vst [vmem:[#allocation2 + $0x3c] sm:$0x1] %v474_v48  ;;  %445 = vst [vmem:[#allocation2 + $0x14] sm:$0x1] %v444_v49  ;;  %v450_v57 = vsel %vm1938_vm5, %v370_v42, %v449_v44 }
  0x29   : > { %481 = vst [vmem:[#allocation2 + $0x44] sm:$0x1] %v480_v50  ;;  %v1812_v55 = vld [vmem:[#allocation2 + $0x28] ss:$8 sps:$4 sm:$0xff]   ;;  %448 = vst [vmem:[#allocation2 + $0x18] sm:$0xf] %v447_v53  ;;  %v717_v19 = vsel %vm1981_vm8, %v1663_v1, %v716_v61 }
  0x2a   : > { %v1813_v58 = vld [vmem:[#allocation2 + $0x8] ss:$8 sps:$4 sm:$0xff]   ;;  %v453_v59 = vsel %vm1926_vm4, %v377_v51, %v452_v45  ;;  %v456_v60 = vsel %vm1938_vm5, %v378_v52, %v455_v46  ;;  %451 = vst [vmem:[#allocation2 + $0x1c] sm:$0x1] %v450_v57  ;;  %807 = vrot.lane.b32.xlu1 %v1812_v55, %s1838_s28  ;;  %v539_v24 = vshrl.u32 %v1976_v5, 16  ;;  %vm514_vm12 = vcmask 64512  }
  0x2b   : > { %454 = vst [vmem:[#allocation2 + $0x20] sm:$0xf] %v453_v59  ;;  %457 = vst [vmem:[#allocation2 + $0x24] sm:$0x1] %v456_v60  ;;  %v689_v62 = vld [vmem:[#allocation2 + $0x28] sm:$0xe]  ;;  %803 = vrot.lane.b32.xlu0 %v1813_v58, %s1838_s28 }
  0x2c   : > { %v690_v63 = vld [vmem:[#allocation2 + $0x2c] sm:$0x1]  ;;  %v681_v0 = vld [vmem:[#allocation2 + $0x8] sm:$0xe]  ;;  %v1668_v4 = vrot.slane %v689_v62, 9  ;;  %vm1419_vm13 = vcmask 1043456  }
  0x2d   : > { %v1814_v2 = vld [vmem:[#allocation2 + $0x38] ss:$8 sps:$4 sm:$0xff]   ;;  %v736_v7 = vrot.slane %v690_v63, 5  ;;  %v1664_v9 = vrot.slane %v681_v0, 9  ;;  %v691_v10 = vld [vmem:[#allocation2 + $0x30] sm:$0xe] }
  0x2e   : > { %v1816_v3 = vld [vmem:[#allocation2 + $0x30] ss:$8 sps:$4 sm:$0xff]   ;;  %809 = vrot.lane.b32.xlu1 %v1814_v2, %s1838_s28  ;;  %v682_v8 = vld [vmem:[#allocation2 + $0xc] sm:$0x1]  ;;  %v692_v11 = vld [vmem:[#allocation2 + $0x34] sm:$0x1] }
  0x2f   : > { %v720_v12 = vrot.slane %v682_v8, 5  ;;  %v693_v13 = vld [vmem:[#allocation2 + $0x38] sm:$0xe]  ;;  %v694_v14 = vld [vmem:[#allocation2 + $0x3c] sm:$0x1]  ;;  %v1669_v15 = vrot.slane %v691_v10, 9  ;;  %v737_v26 = vsel %vm1981_vm8, %v1668_v4, %v736_v7 }
  0x30   : > { %v1817_v17 = vld [vmem:[#allocation2 + $0x10] ss:$8 sps:$4 sm:$0xff]   ;;  %v740_v22 = vrot.slane %v692_v11, 5  ;;  %v1670_v23 = vrot.slane %v693_v13, 9  ;;  %v744_v28 = vrot.slane %v694_v14, 5  ;;  %vm674_vm14 = vcmask 130112  }
  0x31   : > { %v721_v27 = vsel %vm1981_vm8, %v1664_v9, %v720_v12  ;;  %v683_v29 = vld [vmem:[#allocation2 + $0x10] sm:$0xe]  ;;  %v684_v30 = vld [vmem:[#allocation2 + $0x14] sm:$0x1]  ;;  %v685_v32 = vld [vmem:[#allocation2 + $0x18] sm:$0xe] }
  0x32   : > { %v1815_v16 = vld [vmem:[#allocation2 + $0x18] ss:$8 sps:$4 sm:$0xff]   ;;  %1103 = vrot.lane.b32.xlu1 %v1816_v3, %s1839_s29  ;;  %v688_v20 = vld [vmem:[#allocation2 + $0x24] sm:$0x1]  ;;  %v741_v31 = vsel %vm1981_vm8, %v1669_v15, %v740_v22  ;;  %v686_v33 = vld [vmem:[#allocation2 + $0x1c] sm:$0x1]  ;;  %v745_v37 = vsel %vm1981_vm8, %v1670_v23, %v744_v28  ;;  %v1671_v43 = vcombine.low %v717_v19, %v721_v27 }
  0x33   : > { %v687_v18 = vld [vmem:[#allocation2 + $0x20] sm:$0xe]  ;;  %805 = vrot.lane.b32.xlu0 %v1815_v16, %s1838_s28  ;;  %v732_v25 = vrot.slane %v688_v20, 5  ;;  %v1665_v34 = vrot.slane %v683_v29, 9  ;;  %v724_v35 = vrot.slane %v684_v30, 5  ;;  %v1666_v38 = vrot.slane %v685_v32, 9 }
  0x34   : > { %v1667_v21 = vrot.slane %v687_v18, 9  ;;  %v728_v39 = vrot.slane %v686_v33, 5  ;;  %v985_v40 = vld [vmem:[#allocation2 + $0x28] sm:$0xe]  ;;  %v986_v41 = vld [vmem:[#allocation2 + $0x2c] sm:$0x1]  ;;  %v1674_v53 = vcombine.low %v741_v31, %v745_v37 }
  0x35   : > { %v725_v44 = vsel %vm1981_vm8, %v1665_v34, %v724_v35  ;;  %v987_v45 = vld [vmem:[#allocation2 + $0x30] sm:$0xe]  ;;  %v988_v46 = vld [vmem:[#allocation2 + $0x34] sm:$0x1]  ;;  %v1687_v47 = vrot.slane %v985_v40, 9  ;;  %v1027_v49 = vrot.slane %v986_v41, 5 }
  0x36   : > { %v733_v36 = vsel %vm1981_vm8, %v1667_v21, %v732_v25  ;;  %v729_v48 = vsel %vm1981_vm8, %v1666_v38, %v728_v39  ;;  %v1688_v50 = vrot.slane %v987_v45, 9  ;;  %v1031_v51 = vrot.slane %v988_v46, 5  ;;  %v977_v52 = vld [vmem:[#allocation2 + $0x8] sm:$0xe]  ;;  %v978_v54 = vld [vmem:[#allocation2 + $0xc] sm:$0x1] }
  0x37   : > { %v1673_v42 = vcombine.low %v733_v36, %v737_v26  ;;  %1099 = vrot.lane.b32.xlu0 %v1817_v17, %s1839_s29  ;;  %v979_v55 = vld [vmem:[#allocation2 + $0x10] sm:$0xe]  ;;  %v980_v56 = vld [vmem:[#allocation2 + $0x14] sm:$0x1]  ;;  %v1028_v57 = vsel %vm1981_vm8, %v1687_v47, %v1027_v49  ;;  %v1683_v59 = vrot.slane %v977_v52, 9  ;;  %v1011_v60 = vrot.slane %v978_v54, 5 }
  0x38   : > { %v1032_v58 = vsel %vm1981_vm8, %v1688_v50, %v1031_v51  ;;  %v989_v62 = vld [vmem:[#allocation2 + $0x38] sm:$0xe]  ;;  %v990_v63 = vld [vmem:[#allocation2 + $0x3c] sm:$0x1]  ;;  %v1672_v0 = vcombine.low %v725_v44, %v729_v48  ;;  %v1684_v1 = vrot.slane %v979_v55, 9  ;;  %v1015_v2 = vrot.slane %v980_v56, 5 }
  0x39   : > { %762 = vrot.lane.b32.xlu1 %v1673_v42, %s1840_s30  ;;  %v991_v3 = vld [vmem:[#allocation2 + $0x40] sm:$0xe]  ;;  %v992_v4 = vld [vmem:[#allocation2 + $0x44] sm:$0x1]  ;;  %v1012_v61 = vsel %vm1981_vm8, %v1683_v59, %v1011_v60  ;;  %v1689_v7 = vrot.slane %v989_v62, 9  ;;  %v1035_v8 = vrot.slane %v990_v63, 5  ;;  %v1693_v11 = vcombine.low %v1028_v57, %v1032_v58 }
  0x3a   : > { %v1690_v9 = vrot.slane %v991_v3, 9  ;;  %v981_v10 = vld [vmem:[#allocation2 + $0x18] sm:$0xe]  ;;  %v1016_v12 = vsel %vm1981_vm8, %v1684_v1, %v1015_v2  ;;  %v1039_v13 = vrot.slane %v992_v4, 5  ;;  %v982_v14 = vld [vmem:[#allocation2 + $0x1c] sm:$0x1] }
  0x3b   : > { %758 = vrot.lane.b32.xlu0 %v1671_v43, %s1840_s30  ;;  %v983_v15 = vld [vmem:[#allocation2 + $0x20] sm:$0xe]  ;;  %v1685_v16 = vrot.slane %v981_v10, 9  ;;  %v1036_v17 = vsel %vm1981_vm8, %v1689_v7, %v1035_v8  ;;  %v984_v18 = vld [vmem:[#allocation2 + $0x24] sm:$0x1]  ;;  %v1019_v19 = vrot.slane %v982_v14, 5  ;;  %v1691_v22 = vcombine.low %v1012_v61, %v1016_v12 }
  0x3c   : > { %v1686_v20 = vrot.slane %v983_v15, 9  ;;  %v523_v21 = vld [vmem:[#allocation2 + $0x10] sm:$0xf]  ;;  %v1040_v23 = vsel %vm1981_vm8, %v1690_v9, %v1039_v13  ;;  %v1023_v25 = vrot.slane %v984_v18, 5  ;;  %v524_v26 = vld [vmem:[#allocation2 + $0x14] sm:$0x1] }
  0x3d   : > { %764 = vrot.lane.b32.xlu1 %v1674_v53, %s1840_s30  ;;  %v525_v27 = vld [vmem:[#allocation2 + $0x18] sm:$0xf]  ;;  %v567_v28 = vshrl.u32 %v523_v21, 16  ;;  %v1694_v29 = vcombine.low %v1036_v17, %v1040_v23  ;;  %v1020_v30 = vsel %vm1981_vm8, %v1685_v16, %v1019_v19  ;;  %v526_v31 = vld [vmem:[#allocation2 + $0x1c] sm:$0x1]  ;;  %v570_v32 = vshll.u32 %v523_v21, 16 }
  0x3e   : > { %v576_v33 = vshll.u32 %v524_v26, 16  ;;  %v520_v34 = vld [vmem:[#allocation2 + $0x4] sm:$0x1]  ;;  %v1024_v35 = vsel %vm1981_vm8, %v1686_v20, %v1023_v25  ;;  %v581_v37 = vshrl.u32 %v525_v27, 16  ;;  %v584_v38 = vshll.u32 %v525_v27, 16 }
  0x3f   : > { %760 = vrot.lane.b32.xlu0 %v1672_v0, %s1840_s30  ;;  %v569_v36 = vrot.slane %v567_v28, 4  ;;  %v521_v39 = vld [vmem:[#allocation2 + $0x8] sm:$0xf]  ;;  %v1692_v40 = vcombine.low %v1020_v30, %v1024_v35  ;;  %v572_v41 = vrot.slane %v570_v32, 5  ;;  %v590_v43 = vshll.u32 %v526_v31, 16 }
  0x40   : > { %v578_v42 = vrot.slane %v576_v33, 5  ;;  %v522_v44 = vld [vmem:[#allocation2 + $0xc] sm:$0x1]  ;;  %v583_v45 = vrot.slane %v581_v37, 4  ;;  %v586_v46 = vrot.slane %v584_v38, 5  ;;  %v541_v47 = vrot.slane %v539_v24, 4 }
  0x41   : > { %1057 = vrot.lane.b32.xlu1 %v1693_v11, %s1841_s6  ;;  %v542_v48 = vshll.u32 %v1976_v5, 16  ;;  %v531_v49 = vld [vmem:[#allocation2 + $0x30] sm:$0xf]  ;;  %v573_v50 = vor.u32 %v572_v41, %v569_v36  ;;  %v592_v51 = vrot.slane %v590_v43, 5  ;;  %v548_v52 = vshll.u32 %v520_v34, 16 }
  0x42   : > { %v553_v53 = vshrl.u32 %v521_v39, 16  ;;  %v587_v55 = vor.u32 %v586_v46, %v583_v45  ;;  %v556_v24 = vshll.u32 %v521_v39, 16  ;;  %v562_v57 = vshll.u32 %v522_v44, 16  ;;  %v532_v5 = vld [vmem:[#allocation2 + $0x34] sm:$0x1] }
  0x43   : > { %1053 = vrot.lane.b32.xlu0 %v1691_v22, %s1841_s6  ;;  %v544_v56 = vrot.slane %v542_v48, 5  ;;  %v574_v58 = vrot.slane %v573_v50, 4  ;;  %v550_v59 = vrot.slane %v548_v52, 5  ;;  %v533_v62 = vld [vmem:[#allocation2 + $0x38] sm:$0xf]  ;;  %v623_v63 = vshrl.u32 %v531_v49, 16 }
  0x44   : > { %v555_v60 = vrot.slane %v553_v53, 4  ;;  %v588_v0 = vrot.slane %v587_v55, 4  ;;  %v558_v2 = vrot.slane %v556_v24, 5  ;;  %v564_v3 = vrot.slane %v562_v57, 5  ;;  %v534_v61 = vld [vmem:[#allocation2 + $0x3c] sm:$0x1] }
  0x45   : > { %1059 = vrot.lane.b32.xlu1 %v1694_v29, %s1841_s6  ;;  %v545_v1 = vor.u32 %v544_v56, %v541_v47  ;;  %v579_v4 = vsel %vm2033_vm11, %v574_v58, %v578_v42  ;;  %v625_v7 = vrot.slane %v623_v63, 4  ;;  %v626_v8 = vshll.u32 %v531_v49, 16  ;;  %v527_v14 = vld [vmem:[#allocation2 + $0x20] sm:$0xf]  ;;  %v528_v15 = vld [vmem:[#allocation2 + $0x24] sm:$0x1] }
  0x46   : > { %v632_v9 = vshll.u32 %v532_v5, 16  ;;  %v593_v10 = vsel %vm2033_vm11, %v588_v0, %v592_v51  ;;  %v559_v12 = vor.u32 %v558_v2, %v555_v60  ;;  %v637_v13 = vshrl.u32 %v533_v62, 16  ;;  %v529_v20 = vld [vmem:[#allocation2 + $0x28] sm:$0xf]  ;;  %v530_v28 = vld [vmem:[#allocation2 + $0x2c] sm:$0x1] }
  0x47   : > { %1055 = vrot.lane.b32.xlu0 %v1692_v40, %s1841_s6  ;;  %v546_v11 = vrot.slane %v545_v1, 4  ;;  %v1660_v16 = vcombine.low %v579_v4, %v593_v10  ;;  %v628_v17 = vrot.slane %v626_v8, 5  ;;  %v640_v19 = vshll.u32 %v533_v62, 16  ;;  %v828_v35 = vld [vmem:[#allocation2 + $0x28] sm:$0xf] }
  0x48   : > { %v634_v18 = vrot.slane %v632_v9, 5  ;;  %v560_v22 = vrot.slane %v559_v12, 4  ;;  %v639_v23 = vrot.slane %v637_v13, 4  ;;  %v646_v25 = vshll.u32 %v534_v61, 16  ;;  %v829_v40 = vld [vmem:[#allocation2 + $0x2c] sm:$0x1] }
  0x49   : > { %v551_v21 = vsel %vm2033_vm11, %v546_v11, %v550_v59  ;;  %664 = vrot.lane.b32.xlu1 %v1660_v16, %s1842_s7  ;;  %v629_v26 = vor.u32 %v628_v17, %v625_v7  ;;  %v642_v27 = vrot.slane %v640_v19, 5  ;;  %v595_v29 = vshrl.u32 %v527_v14, 16  ;;  %v830_v45 = vld [vmem:[#allocation2 + $0x30] sm:$0xf]  ;;  %v831_v52 = vld [vmem:[#allocation2 + $0x34] sm:$0x1] }
  0x4a   : > { %v598_v30 = vshll.u32 %v527_v14, 16  ;;  %v565_v31 = vsel %vm2033_vm11, %v560_v22, %v564_v3  ;;  %v648_v32 = vrot.slane %v646_v25, 5  ;;  %v604_v33 = vshll.u32 %v528_v15, 16  ;;  %v820_v58 = vld [vmem:[#allocation2 + $0x8] sm:$0xf] }
  0x4b   : > { %v609_v34 = vshrl.u32 %v529_v20, 16  ;;  %v1659_v36 = vcombine.low %v551_v21, %v565_v31  ;;  %v630_v37 = vrot.slane %v629_v26, 4  ;;  %v643_v38 = vor.u32 %v642_v27, %v639_v23  ;;  %v821_v0 = vld [vmem:[#allocation2 + $0xc] sm:$0x1]  ;;  %v822_v61 = vld [vmem:[#allocation2 + $0x10] sm:$0xf] }
  0x4c   : > { %v597_v39 = vrot.slane %v595_v29, 4  ;;  %v600_v41 = vrot.slane %v598_v30, 5  ;;  %v606_v42 = vrot.slane %v604_v33, 5  ;;  %v612_v44 = vshll.u32 %v529_v20, 16  ;;  %v823_v10 = vld [vmem:[#allocation2 + $0x14] sm:$0x1] }
  0x4d   : > { %v611_v43 = vrot.slane %v609_v34, 4  ;;  %662 = vrot.lane.b32.xlu0 %v1659_v36, %s1842_s7  ;;  %v635_v46 = vsel %vm2033_vm11, %v630_v37, %v634_v18  ;;  %v644_v47 = vrot.slane %v643_v38, 4  ;;  %v618_v48 = vshll.u32 %v530_v28, 16  ;;  %v832_v12 = vld [vmem:[#allocation2 + $0x38] sm:$0xf] }
  0x4e   : > { %v893_v49 = vshrl.u32 %v828_v35, 16  ;;  %v601_v50 = vor.u32 %v600_v41, %v597_v39  ;;  %v614_v51 = vrot.slane %v612_v44, 5  ;;  %v896_v53 = vshll.u32 %v828_v35, 16  ;;  %v833_v17 = vld [vmem:[#allocation2 + $0x3c] sm:$0x1] }
  0x4f   : > { %v902_v55 = vshll.u32 %v829_v40, 16  ;;  %v649_v56 = vsel %vm2033_vm11, %v644_v47, %v648_v32  ;;  %v620_v24 = vrot.slane %v618_v48, 5  ;;  %v907_v5 = vshrl.u32 %v830_v45, 16  ;;  %v834_v22 = vld [vmem:[#allocation2 + $0x40] sm:$0xf] }
  0x50   : > { %v895_v57 = vrot.slane %v893_v49, 4  ;;  %v1662_v59 = vcombine.low %v635_v46, %v649_v56  ;;  %v602_v60 = vrot.slane %v601_v50, 4  ;;  %v615_v62 = vor.u32 %v614_v51, %v611_v43  ;;  %v835_v34 = vld [vmem:[#allocation2 + $0x44] sm:$0x1]  ;;  %v824_v41 = vld [vmem:[#allocation2 + $0x18] sm:$0xf] }
  0x51   : > { %v898_v63 = vrot.slane %v896_v53, 5  ;;  %v904_v1 = vrot.slane %v902_v55, 5  ;;  %v909_v2 = vrot.slane %v907_v5, 4  ;;  %v910_v3 = vshll.u32 %v830_v45, 16  ;;  %v825_v46 = vld [vmem:[#allocation2 + $0x1c] sm:$0x1] }
  0x52   : > { %v916_v4 = vshll.u32 %v831_v52, 16  ;;  %668 = vrot.lane.b32.xlu1 %v1662_v59, %s1842_s7  ;;  %v607_v7 = vsel %vm2033_vm11, %v602_v60, %v606_v42  ;;  %v616_v8 = vrot.slane %v615_v62, 4  ;;  %v837_v11 = vshrl.u32 %v820_v58, 16  ;;  %v826_v51 = vld [vmem:[#allocation2 + $0x20] sm:$0xf] }
  0x53   : > { %v899_v9 = vor.u32 %v898_v63, %v895_v57  ;;  %v912_v13 = vrot.slane %v910_v3, 5  ;;  %v840_v15 = vshll.u32 %v820_v58, 16  ;;  %v846_v16 = vshll.u32 %v821_v0, 16  ;;  %v1124_v60 = vld [vmem:[#allocation2 + $0x30] sm:$0xf] }
  0x54   : > { %v918_v14 = vrot.slane %v916_v4, 5  ;;  %v621_v18 = vsel %vm2033_vm11, %v616_v8, %v620_v24  ;;  %v839_v20 = vrot.slane %v837_v11, 4  ;;  %v851_v21 = vshrl.u32 %v822_v61, 16  ;;  %v827_v24 = vld [vmem:[#allocation2 + $0x24] sm:$0x1] }
  0x55   : > { %v900_v19 = vrot.slane %v899_v9, 4  ;;  %v1661_v23 = vcombine.low %v607_v7, %v621_v18  ;;  %v913_v25 = vor.u32 %v912_v13, %v909_v2  ;;  %v842_v26 = vrot.slane %v840_v15, 5  ;;  %v1125_v2 = vld [vmem:[#allocation2 + $0x34] sm:$0x1]  ;;  %v1126_v8 = vld [vmem:[#allocation2 + $0x38] sm:$0xf] }
  0x56   : > { %v848_v27 = vrot.slane %v846_v16, 5  ;;  %v853_v29 = vrot.slane %v851_v21, 4  ;;  %v854_v30 = vshll.u32 %v822_v61, 16  ;;  %v860_v31 = vshll.u32 %v823_v10, 16  ;;  %v1127_v16 = vld [vmem:[#allocation2 + $0x3c] sm:$0x1] }
  0x57   : > { %v905_v28 = vsel %vm2033_vm11, %v900_v19, %v904_v1  ;;  %666 = vrot.lane.b32.xlu0 %v1661_v23, %s1842_s7  ;;  %v914_v32 = vrot.slane %v913_v25, 4  ;;  %v843_v33 = vor.u32 %v842_v26, %v839_v20  ;;  %v921_v35 = vshrl.u32 %v832_v12, 16 }
  0x58   : > { %v924_v36 = vshll.u32 %v832_v12, 16  ;;  %v856_v37 = vrot.slane %v854_v30, 5  ;;  %v862_v38 = vrot.slane %v860_v31, 5  ;;  %v930_v39 = vshll.u32 %v833_v17, 16 }
  0x59   : > { %v935_v40 = vshrl.u32 %v834_v22, 16  ;;  %v919_v42 = vsel %vm2033_vm11, %v914_v32, %v918_v14  ;;  %v844_v43 = vrot.slane %v843_v33, 4  ;;  %v923_v44 = vrot.slane %v921_v35, 4  ;;  %v1118_v33 = vld [vmem:[#allocation2 + $0x18] sm:$0xf] }
  0x5a   : > { %v926_v45 = vrot.slane %v924_v36, 5  ;;  %v1681_v47 = vcombine.low %v905_v28, %v919_v42  ;;  %v857_v48 = vor.u32 %v856_v37, %v853_v29  ;;  %v932_v49 = vrot.slane %v930_v39, 5  ;;  %v1117_v28 = vld [vmem:[#allocation2 + $0x14] sm:$0x1] }
  0x5b   : > { %v937_v50 = vrot.slane %v935_v40, 4  ;;  %v849_v52 = vsel %vm2033_vm11, %v844_v43, %v848_v27  ;;  %v938_v55 = vshll.u32 %v834_v22, 16  ;;  %v944_v56 = vshll.u32 %v835_v34, 16  ;;  %v1116_v22 = vld [vmem:[#allocation2 + $0x10] sm:$0xf] }
  0x5c   : > { %v927_v53 = vor.u32 %v926_v45, %v923_v44  ;;  %964 = vrot.lane.b32.xlu1 %v1681_v47, %s1843_s8  ;;  %v858_v57 = vrot.slane %v857_v48, 4  ;;  %v865_v5 = vshrl.u32 %v824_v41, 16  ;;  %v868_v58 = vshll.u32 %v824_v41, 16  ;;  %v1119_v45 = vld [vmem:[#allocation2 + $0x1c] sm:$0x1] }
  0x5d   : > { %v874_v59 = vshll.u32 %v825_v46, 16  ;;  %v940_v63 = vrot.slane %v938_v55, 5  ;;  %v946_v0 = vrot.slane %v944_v56, 5  ;;  %v879_v1 = vshrl.u32 %v826_v51, 16 }
  0x5e   : > { %v928_v62 = vrot.slane %v927_v53, 4  ;;  %v863_v3 = vsel %vm2033_vm11, %v858_v57, %v862_v38  ;;  %v867_v4 = vrot.slane %v865_v5, 4  ;;  %v870_v61 = vrot.slane %v868_v58, 5  ;;  %v1818_v38 = vld [vmem:[#allocation2 + $0x40] ss:$8 sps:$4 sm:$0xff]  }
  0x5f   : > { %v876_v7 = vrot.slane %v874_v59, 5  ;;  %v1679_v9 = vcombine.low %v849_v52, %v863_v3  ;;  %v941_v11 = vor.u32 %v940_v63, %v937_v50  ;;  %v881_v12 = vrot.slane %v879_v1, 4  ;;  %v1128_v52 = vld [vmem:[#allocation2 + $0x40] sm:$0xf]  ;;  %v1129_v57 = vld [vmem:[#allocation2 + $0x44] sm:$0x1] }
  0x60   : > { %v933_v10 = vsel %vm2033_vm11, %v928_v62, %v932_v49  ;;  %v871_v13 = vor.u32 %v870_v61, %v867_v4  ;;  %v882_v14 = vshll.u32 %v826_v51, 16  ;;  %v888_v15 = vshll.u32 %v827_v24, 16  ;;  %v1130_v5 = vld [vmem:[#allocation2 + $0x48] sm:$0xf]  ;;  %v1824_v1 = vld [vmem:[%s2210_s3] sm:$0xff]  }
  0x61   : > { %v1189_v17 = vshrl.u32 %v1124_v60, 16  ;;  %960 = vrot.lane.b32.xlu0 %v1679_v9, %s1843_s8  ;;  %v942_v18 = vrot.slane %v941_v11, 4  ;;  %v1192_v19 = vshll.u32 %v1124_v60, 16  ;;  %v1198_v20 = vshll.u32 %v1125_v2, 16  ;;  %v1819_v59 = vld [vmem:[#allocation2 + $0x20] ss:$8 sps:$4 sm:$0xff]   ;;  %1765 = vmatprep.subr.bf16.mxu0 %v1824_v1 }
  0x62   : > { %v1203_v21 = vshrl.u32 %v1126_v8, 16  ;;  %v872_v23 = vrot.slane %v871_v13, 4  ;;  %v884_v25 = vrot.slane %v882_v14, 5  ;;  %v890_v26 = vrot.slane %v888_v15, 5  ;;  %1783 = vmatprep.subr.bf16.mxu1 %v1824_v1  ;;  %1766 = vmatpush3.bf16.msra.mxu0 %v1824_v1 }
  0x63   : > { %v1191_v27 = vrot.slane %v1189_v17, 4  ;;  %v947_v29 = vsel %vm2033_vm11, %v942_v18, %v946_v0  ;;  %v1194_v30 = vrot.slane %v1192_v19, 5  ;;  %v1200_v31 = vrot.slane %v1198_v20, 5  ;;  %v1131_v0 = vld [vmem:[#allocation2 + $0x4c] sm:$0x1]  ;;  %1788 = vmatpush3.bf16.msra.mxu1 %v1824_v1 }
  0x64   : > { %v1205_v32 = vrot.slane %v1203_v21, 4  ;;  %v1682_v34 = vcombine.low %v933_v10, %v947_v29  ;;  %v877_v35 = vsel %vm2033_vm11, %v872_v23, %v876_v7  ;;  %v885_v36 = vor.u32 %v884_v25, %v881_v12  ;;  %v1120_v7 = vld [vmem:[#allocation2 + $0x20] sm:$0xf]  ;;  %v1121_v12 = vld [vmem:[#allocation2 + $0x24] sm:$0x1] }
  0x65   : > { %v1206_v37 = vshll.u32 %v1126_v8, 16  ;;  %v1195_v39 = vor.u32 %v1194_v30, %v1191_v27  ;;  %v1212_v40 = vshll.u32 %v1127_v16, 16  ;;  %v1133_v41 = vshrl.u32 %v1116_v22, 16  ;;  %v1122_v17 = vld [vmem:[#allocation2 + $0x28] sm:$0xf] }
  0x66   : > { %v1136_v42 = vshll.u32 %v1116_v22, 16  ;;  %966 = vrot.lane.b32.xlu1 %v1682_v34, %s1843_s8  ;;  %v886_v43 = vrot.slane %v885_v36, 4  ;;  %v1142_v46 = vshll.u32 %v1117_v28, 16  ;;  %v1147_v47 = vshrl.u32 %v1118_v33, 16  ;;  %v1123_v27 = vld [vmem:[#allocation2 + $0x2c] sm:$0x1] }
  0x67   : > { %v1208_v44 = vrot.slane %v1206_v37, 5  ;;  %v1196_v48 = vrot.slane %v1195_v39, 4  ;;  %v1214_v49 = vrot.slane %v1212_v40, 5  ;;  %v1135_v50 = vrot.slane %v1133_v41, 4  ;;  %v1281_v28 = vld [vmem:[#allocation2 + $0x30] sm:$0xe] }
  0x68   : > { %v1138_v51 = vrot.slane %v1136_v42, 5  ;;  %v891_v53 = vsel %vm2033_vm11, %v886_v43, %v890_v26  ;;  %v2077_v56 = vrot.slane %v1142_v46, 5  ;;  %v1149_v24 = vrot.slane %v1147_v47, 4  ;;  %v1283_v34 = vld [vmem:[#allocation2 + $0x38] sm:$0xe] }
  0x69   : > { %v1209_v55 = vor.u32 %v1208_v44, %v1205_v32  ;;  %v1680_v58 = vcombine.low %v877_v35, %v891_v53  ;;  %v1201_v60 = vsel %vm2033_vm11, %v1196_v48, %v1200_v31  ;;  %v1150_v63 = vshll.u32 %v1118_v33, 16  ;;  %v1282_v33 = vld [vmem:[#allocation2 + $0x34] sm:$0x1]  ;;  %v1284_v35 = vld [vmem:[#allocation2 + $0x3c] sm:$0x1] }
  0x6a   : > { %v1139_v62 = vor.u32 %v1138_v51, %v1135_v50  ;;  %1105 = vrot.lane.b32.xlu1 %v1818_v38, %s1839_s29  ;;  %v1156_v3 = vshll.u32 %v1119_v45, 16  ;;  %v1217_v4 = vshrl.u32 %v1128_v52, 16  ;;  %v1220_v61 = vshll.u32 %v1128_v52, 16  ;;  %v2095_v40 = vld [vmem:[#allocation2 + $0x10] sm:$0xe]  ;;  %v1825_v45 = vld [vmem:[%s2210_s3 + $0x8] sm:$0xff]  }
  0x6b   : > { %v1210_v2 = vrot.slane %v1209_v55, 4  ;;  %962 = vrot.lane.b32.xlu0 %v1680_v58, %s1843_s8  ;;  %v1152_v9 = vrot.slane %v1150_v63, 5  ;;  %v1226_v10 = vshll.u32 %v1129_v57, 16  ;;  %v1231_v11 = vshrl.u32 %v1130_v5, 16  ;;  %v1274_v50 = vld [vmem:[#allocation2 + $0x14] sm:$0x1]  ;;  %1767 = vmatprep.subr.bf16.mxu0 %v1825_v45 }
  0x6c   : > { %v1140_v8 = vrot.slane %v1139_v62, 4  ;;  %v1158_v14 = vrot.slane %v1156_v3, 5  ;;  %v1219_v15 = vrot.slane %v1217_v4, 4  ;;  %v1222_v16 = vrot.slane %v1220_v61, 5  ;;  %v1285_v57 = vld [vmem:[#allocation2 + $0x40] sm:$0xe]  ;;  %1784 = vmatprep.subr.bf16.mxu1 %v1825_v45  ;;  %1768 = vmatpush3.bf16.msra.mxu0 %v1825_v45 }
  0x6d   : > { %v1215_v13 = vsel %vm2033_vm11, %v1210_v2, %v1214_v49  ;;  %v1153_v20 = vor.u32 %v1152_v9, %v1149_v24  ;;  %v2091_v21 = vrot.slane %v1226_v10, 5  ;;  %v1233_v23 = vrot.slane %v1231_v11, 4  ;;  %v1276_v24 = vld [vmem:[#allocation2 + $0x1c] sm:$0x1]  ;;  %v1287_v63 = vld [vmem:[#allocation2 + $0x48] sm:$0xe]  ;;  %1789 = vmatpush3.bf16.msra.mxu1 %v1825_v45 }
  0x6e   : > { %v1701_v18 = vcombine.low %v1201_v60, %v1215_v13  ;;  %v1145_v19 = vsel %vm2033_vm11, %v1140_v8, %v2077_v56  ;;  %v1223_v22 = vor.u32 %v1222_v16, %v1219_v15  ;;  %v1234_v25 = vshll.u32 %v1130_v5, 16  ;;  %v1275_v56 = vld [vmem:[#allocation2 + $0x18] sm:$0xe]  ;;  %v1826_v5 = vld [vmem:[%s2210_s3 + $0x10] sm:$0xff]   ;;  %v1286_v4 = vld [vmem:[#allocation2 + $0x44] sm:$0x1] }
  0x6f   : > { %v1240_v26 = vshll.u32 %v1131_v0, 16  ;;  %1101 = vrot.lane.b32.xlu0 %v1819_v59, %s1839_s29  ;;  %v1154_v29 = vrot.slane %v1153_v20, 4  ;;  %v1161_v30 = vshrl.u32 %v1120_v7, 16  ;;  %v1164_v31 = vshll.u32 %v1120_v7, 16  ;;  %v1288_v0 = vld [vmem:[#allocation2 + $0x4c] sm:$0x1]  ;;  %1769 = vmatprep.subr.bf16.mxu0 %v1826_v5  ;;  %s237_s29 = scalar_lea.vmem %s2212_s5, %s1728_s20 }
  0x70   : > { %1260 = vrot.lane.b32.xlu1 %v1701_v18, %s1844_s11  ;;  %v1170_v32 = vshll.u32 %v1121_v12, 16  ;;  %v1224_v36 = vrot.slane %v1223_v22, 4  ;;  %v1236_v37 = vrot.slane %v1234_v25, 5  ;;  %v1175_v39 = vshrl.u32 %v1122_v17, 16  ;;  %v1277_v10 = vld [vmem:[#allocation2 + $0x20] sm:$0xe]  ;;  %1785 = vmatprep.subr.bf16.mxu1 %v1826_v5 }
  0x71   : > { %v1242_v38 = vrot.slane %v1240_v26, 5  ;;  %v1159_v41 = vsel %vm2033_vm11, %v1154_v29, %v1158_v14  ;;  %v1163_v42 = vrot.slane %v1161_v30, 4  ;;  %v1166_v43 = vrot.slane %v1164_v31, 5  ;;  %v1278_v11 = vld [vmem:[#allocation2 + $0x24] sm:$0x1]  ;;  %v1827_v18 = vld [vmem:[%s2210_s3 + $0x18] sm:$0xff]   ;;  %1770 = vmatpush3.bf16.msra.mxu0 %v1826_v5  ;;  %1790 = vmatpush3.bf16.msra.mxu1 %v1826_v5 }
  0x72   : > { %v2099_v44 = vrot.slane %v1170_v32, 5  ;;  %v1699_v46 = vcombine.low %v1145_v19, %v1159_v41  ;;  %v1229_v47 = vsel %vm2033_vm11, %v1224_v36, %v2091_v21  ;;  %v1237_v48 = vor.u32 %v1236_v37, %v1233_v23  ;;  %v1279_v16 = vld [vmem:[#allocation2 + $0x28] sm:$0xe]  ;;  %v1820_v23 = vld [vmem:[#allocation2 + $0x10] ss:$8 sps:$4 sm:$0xff]   ;;  %1771 = vmatprep.subr.bf16.mxu0 %v1827_v18  ;;  %1786 = vmatprep.subr.bf16.mxu1 %v1827_v18 }
  0x73   : > { %v1177_v49 = vrot.slane %v1175_v39, 4  ;;  %v1167_v51 = vor.u32 %v1166_v43, %v1163_v42  ;;  %v1178_v52 = vshll.u32 %v1122_v17, 16  ;;  %v1184_v53 = vshll.u32 %v1123_v27, 16  ;;  %v1280_v17 = vld [vmem:[#allocation2 + $0x2c] sm:$0x1]  ;;  %516 = vst.msk [vmem:[#allocation3 + $0x8] sm:$0xff] %vm514_vm12, %v1820_v23 }
  0x74   : > { %v1707_v55 = vrot.slane %v1281_v28, 9  ;;  %1256 = vrot.lane.b32.xlu0 %v1699_v46, %s1844_s11  ;;  %v1238_v58 = vrot.slane %v1237_v48, 4  ;;  %v1323_v59 = vrot.slane %v1282_v33, 5  ;;  %v1708_v60 = vrot.slane %v1283_v34, 9  ;;  %v1821_v29 = vld [vmem:[#allocation2] ss:$8 sps:$4 sm:$0xff]  }
  0x75   : > { %v1327_v62 = vrot.slane %v1284_v35, 5  ;;  %v1168_v1 = vrot.slane %v1167_v51, 4  ;;  %v1180_v2 = vrot.slane %v1178_v52, 5  ;;  %v1703_v3 = vrot.slane %v2095_v40, 9  ;;  %v1822_v34 = vld [vmem:[#allocation2 + $0x30] ss:$8 sps:$4 sm:$0xff]   ;;  %1772 = vmatpush3.bf16.msra.mxu0 %v1827_v18  ;;  %1791 = vmatpush3.bf16.msra.mxu1 %v1827_v18 }
  0x76   : > { %v1243_v61 = vsel %vm2033_vm11, %v1238_v58, %v1242_v38  ;;  %v1324_v7 = vsel %vm1981_vm8, %v1707_v55, %v1323_v59  ;;  %v1307_v9 = vrot.slane %v1274_v50, 5  ;;  %v1186_v15 = vrot.slane %v1184_v53, 5  ;;  %v1823_v35 = vld [vmem:[#allocation2 + $0x20] ss:$8 sps:$4 sm:$0xff]   ;;  %515 = vst.msk [vmem:[#allocation3] sm:$0xff] %vm514_vm12, %v1821_v29  ;;  %518 = vst.msk [vmem:[#allocation3 + $0x18] sm:$0xff] %vm514_vm12, %v1822_v34 }
  0x77   : > { %v1328_v8 = vsel %vm1981_vm8, %v1708_v60, %v1327_v62  ;;  %v1702_v12 = vcombine.low %v1229_v47, %v1243_v61  ;;  %v1173_v13 = vsel %vm2033_vm11, %v1168_v1, %v2099_v44  ;;  %v1181_v14 = vor.u32 %v1180_v2, %v1177_v49  ;;  %v1828_v42 = vld [vmem:[%s2210_s3 + $0x20] ss:$0 sps:$4 sm:$0xff]   ;;  %517 = vst.msk [vmem:[#allocation3 + $0x10] sm:$0xff] %vm514_vm12, %v1823_v35 }
  0x78   : > { %v1713_v19 = vcombine.low %v1324_v7, %v1328_v8  ;;  %v1704_v20 = vrot.slane %v1275_v56, 9  ;;  %v1311_v21 = vrot.slane %v1276_v24, 5  ;;  %v1709_v22 = vrot.slane %v1285_v57, 9  ;;  %1793 = vmatprep.subr.msk.bf16.mxu0 %vm1419_vm13, %v1828_v42  ;;  %1794 = vmatprep.subr.msk.bf16.mxu1 %vm1419_vm13, %v1828_v42 }
  0x79   : > { %1262 = vrot.lane.b32.xlu1 %v1702_v12, %s1844_s11  ;;  %v1182_v25 = vrot.slane %v1181_v14, 4  ;;  %v1331_v26 = vrot.slane %v1286_v4, 5  ;;  %v1710_v27 = vrot.slane %v1287_v63, 9  ;;  %v1335_v28 = vrot.slane %v1288_v0, 5 }
  0x7a   : > { %v1308_v30 = vsel %vm1981_vm8, %v1703_v3, %v1307_v9  ;;  %v1312_v31 = vsel %vm1981_vm8, %v1704_v20, %v1311_v21  ;;  %v1705_v32 = vrot.slane %v1277_v10, 9  ;;  %v1315_v33 = vrot.slane %v1278_v11, 5 }
  0x7b   : > { %v1187_v36 = vsel %vm2033_vm11, %v1182_v25, %v1186_v15  ;;  %v1332_v37 = vsel %vm1981_vm8, %v1709_v22, %v1331_v26  ;;  %v1336_v38 = vsel %vm1981_vm8, %v1710_v27, %v1335_v28  ;;  %v1706_v39 = vrot.slane %v1279_v16, 9 }
  0x7c   : > { %v1700_v40 = vcombine.low %v1173_v13, %v1187_v36  ;;  %v1319_v41 = vrot.slane %v1280_v17, 5  ;;  %v1714_v43 = vcombine.low %v1332_v37, %v1336_v38  ;;  %v1711_v54 = vcombine.low %v1308_v30, %v1312_v31 }
  0x7d   : > { %1353 = vrot.lane.b32.xlu1 %v1713_v19, %s1845_s23  ;;  %v1316_v44 = vsel %vm1981_vm8, %v1705_v32, %v1315_v33  ;;  %v1421_v46 = vsel %vm1419_vm13, %v1828_v42, 0  ;;  %vm770_vm15 = vcmask 195712   ;;  %vm815_vm1 = vcmask 261312  }
  0x7e   : > { %1258 = vrot.lane.b32.xlu0 %v1700_v40, %s1844_s11  ;;  %v1320_v45 = vsel %vm1981_vm8, %v1706_v39, %v1319_v41  ;;  %1774 = vmatpush3.bf16.msra.mxu0 %v1421_v46  ;;  %vm972_vm2 = vcmask 326912   ;;  %vm1065_vm3 = vcmask 392512   ;;  %vm1111_vm4 = vcmask 458112  }
  0x7f   : > { %v1712_v47 = vcombine.low %v1316_v44, %v1320_v45  ;;  %1792 = vmatpush3.bf16.msra.mxu1 %v1421_v46  ;;  %vm1268_vm5 = vcmask 523712   ;;  %vm1361_vm6 = vcmask 589312   ;;  %vm1406_vm7 = vcmask 588800  }
  0x81   : > { %1355 = vrot.lane.b32.xlu1 %v1714_v43, %s1845_s23 }
  0x82   : > { %1349 = vrot.lane.b32.xlu0 %v1711_v54, %s1845_s23 }
  0x86   : > { %1351 = vrot.lane.b32.xlu0 %v1712_v47, %s1845_s23 }
  0x9c   : > { %v808_v48 = vpop.permute.xlu1 %807 }
  0x9d   : > { %v804_v49 = vpop.permute.xlu0 %803 }
  0xa0   : > { %v810_v50 = vpop.permute.xlu1 %809 }
  0xa4   : > { %v1104_v51 = vpop.permute.xlu1 %1103 }
  0xa5   : > { %v806_v52 = vpop.permute.xlu0 %805 }
  0xa9   : > { %v1100_v53 = vpop.permute.xlu0 %1099 }
  0xab   : > { %v763_v55 = vpop.permute.xlu1 %762 }
  0xad   : > { %v759_v56 = vpop.permute.xlu0 %758 }
  0xaf   : > { %v765_v6 = vpop.permute.xlu1 %764 }
  0xb1   : > { %v761_v24 = vpop.permute.xlu0 %760 }
  0xb3   : > { %v1058_v57 = vpop.permute.xlu1 %1057 }
  0xb5   : > { %v1054_v5 = vpop.permute.xlu0 %1053 }
  0xb7   : > { %v1060_v58 = vpop.permute.xlu1 %1059 }
  0xb9   : > { %v1056_v59 = vpop.permute.xlu0 %1055 }
  0xbb   : > { %v665_v60 = vpop.permute.xlu1 %664 }
  0xbc   : > { %676 = vst.msk [vmem:[#allocation3 + $0x8] sm:$0xff] %vm674_vm14, %v665_v60 }
  0xbd   : > { %772 = vst.msk [vmem:[#allocation3 + $0x8] sm:$0xff] %vm770_vm15, %v761_v24 }
  0xbe   : > { %817 = vst.msk [vmem:[#allocation3 + $0x8] sm:$0xff] %vm815_vm1, %v806_v52 }
  0xbf   : > { %v663_v62 = vpop.permute.xlu0 %662 }
  0xc0   : > { %675 = vst.msk [vmem:[#allocation3] sm:$0xff] %vm674_vm14, %v663_v62 }
  0xc1   : > { %771 = vst.msk [vmem:[#allocation3] sm:$0xff] %vm770_vm15, %v759_v56 }
  0xc2   : > { %816 = vst.msk [vmem:[#allocation3] sm:$0xff] %vm815_vm1, %v804_v49 }
  0xc4   : > { %v669_v63 = vpop.permute.xlu1 %668 }
  0xc5   : > { %678 = vst.msk [vmem:[#allocation3 + $0x18] sm:$0xff] %vm674_vm14, %v669_v63 }
  0xc6   : > { %774 = vst.msk [vmem:[#allocation3 + $0x18] sm:$0xff] %vm770_vm15, %v765_v6 }
  0xc7   : > { %819 = vst.msk [vmem:[#allocation3 + $0x18] sm:$0xff] %vm815_vm1, %v810_v50 }
  0xc9   : > { %v667_v0 = vpop.permute.xlu0 %666 }
  0xca   : > { %677 = vst.msk [vmem:[#allocation3 + $0x10] sm:$0xff] %vm674_vm14, %v667_v0 }
  0xcb   : > { %773 = vst.msk [vmem:[#allocation3 + $0x10] sm:$0xff] %vm770_vm15, %v763_v55 }
  0xcc   : > { %818 = vst.msk [vmem:[#allocation3 + $0x10] sm:$0xff] %vm815_vm1, %v808_v48 }
  0xce   : > { %v965_v1 = vpop.permute.xlu1 %964 }
  0xcf   : > { %975 = vst.msk [vmem:[#allocation3 + $0x10] sm:$0xff] %vm972_vm2, %v965_v1 }
  0xd0   : > { %1068 = vst.msk [vmem:[#allocation3 + $0x10] sm:$0xff] %vm1065_vm3, %v1058_v57 }
  0xd1   : > { %1114 = vst.msk [vmem:[#allocation3 + $0x10] sm:$0xff] %vm1111_vm4, %v1104_v51 }
  0xd3   : > { %v961_v2 = vpop.permute.xlu0 %960 }
  0xd4   : > { %973 = vst.msk [vmem:[#allocation3] sm:$0xff] %vm972_vm2, %v961_v2 }
  0xd5   : > { %1066 = vst.msk [vmem:[#allocation3] sm:$0xff] %vm1065_vm3, %v1054_v5 }
  0xd6   : > { %1112 = vst.msk [vmem:[#allocation3] sm:$0xff] %vm1111_vm4, %v1100_v53 }
  0xd8   : > { %v967_v3 = vpop.permute.xlu1 %966 }
  0xd9   : > { %976 = vst.msk [vmem:[#allocation3 + $0x18] sm:$0xff] %vm972_vm2, %v967_v3 }
  0xda   : > { %1069 = vst.msk [vmem:[#allocation3 + $0x18] sm:$0xff] %vm1065_vm3, %v1060_v58 }
  0xdc   : > { %v1106_v4 = vpop.permute.xlu1 %1105 }
  0xdd   : > { %v963_v61 = vpop.permute.xlu0 %962  ;;  %1115 = vst.msk [vmem:[#allocation3 + $0x18] sm:$0xff] %vm1111_vm4, %v1106_v4 }
  0xde   : > { %974 = vst.msk [vmem:[#allocation3 + $0x8] sm:$0xff] %vm972_vm2, %v963_v61 }
  0xdf   : > { %1067 = vst.msk [vmem:[#allocation3 + $0x8] sm:$0xff] %vm1065_vm3, %v1056_v59 }
  0xe1   : > { %v1102_v7 = vpop.permute.xlu0 %1101 }
  0xe2   : > { %v1261_v8 = vpop.permute.xlu1 %1260  ;;  %1113 = vst.msk [vmem:[#allocation3 + $0x8] sm:$0xff] %vm1111_vm4, %v1102_v7 }
  0xe3   : > { %1271 = vst.msk [vmem:[#allocation3 + $0x10] sm:$0xff] %vm1268_vm5, %v1261_v8 }
  0xe6   : > { %v1257_v9 = vpop.permute.xlu0 %1256 }
  0xe7   : > { %1269 = vst.msk [vmem:[#allocation3] sm:$0xff] %vm1268_vm5, %v1257_v9 }
  0xeb   : > { %v1263_v10 = vpop.permute.xlu1 %1262 }
  0xec   : > { %1272 = vst.msk [vmem:[#allocation3 + $0x18] sm:$0xff] %vm1268_vm5, %v1263_v10 }
  0xef   : > { %v1354_v11 = vpop.permute.xlu1 %1353 }
  0xf0   : > { %v1259_v12 = vpop.permute.xlu0 %1258  ;;  %1364 = vst.msk [vmem:[#allocation3 + $0x10] sm:$0xff] %vm1361_vm6, %v1354_v11 }
  0xf1   : > { %1270 = vst.msk [vmem:[#allocation3 + $0x8] sm:$0xff] %vm1268_vm5, %v1259_v12 }
  0xf3   : > { %v1356_v13 = vpop.permute.xlu1 %1355 }
  0xf4   : > { %v1350_v14 = vpop.permute.xlu0 %1349  ;;  %1365 = vst.msk [vmem:[#allocation3 + $0x18] sm:$0xff] %vm1361_vm6, %v1356_v13 }
  0xf5   : > { %1362 = vst.msk [vmem:[#allocation3] sm:$0xff] %vm1361_vm6, %v1350_v14 }
  0xf7   : > { %v1368_v15 = vld [vmem:[#allocation3 + $0x10] sm:$0xff] }
  0xf8   : > { %v1352_v16 = vpop.permute.xlu0 %1351  ;;  %1779 = vmatprep.mubr.msk.bf16.mxu1 %vm1406_vm7, %v1368_v15 }
  0xf9   : > { %1363 = vst.msk [vmem:[#allocation3 + $0x8] sm:$0xff] %vm1361_vm6, %v1352_v16 }
  0xfb   : > { %v1369_v17 = vld [vmem:[#allocation3 + $0x18] sm:$0xff] }
  0xfc   : > { %v1366_v18 = vld [vmem:[#allocation3] sm:$0xff]  ;;  %1780 = vmatmul.mubr.msk.bf16.vlgmr.msra.gmra.mrb[0].mxu1 %vm1406_vm7, %v1369_v17 }
  0xfd   : > { %1775 = vmatprep.mubr.msk.bf16.mxu0 %vm1406_vm7, %v1366_v18 }
 0x100   : > { %v1367_v19 = vld [vmem:[#allocation3 + $0x8] sm:$0xff] }
 0x101   : > { %1776 = vmatmul.mubr.msk.bf16.vlgmr.msra.gmra.mrb[0].mxu0 %vm1406_vm7, %v1367_v19 }
 0x1cf   : > { %v1781_v20 = vpop.f32.mrb[0].mxu1 }
 0x1d0   : > { %v1494_v21 = vpack.c.bf16 %v1781_v20, %v1781_v20  ;;  %v1473_v22 = vpop.f32.mrb[1].mxu1  ;;  %v1522_v41 = vsel %vm514_vm12, %v1781_v20, 0.0 }
 0x1d1   : > { %v1492_v23 = vpack.c.bf16 %v1473_v22, %v1473_v22  ;;  %v1516_v25 = vsel %vm514_vm12, %v1473_v22, 0.0  ;;  %v1782_v26 = vpop.f32.mrb[2].mxu1 }
 0x1d2   : > { %1502 = vst.msk [vmem:[%s232_s26 + $0x18] sm:$0xf] %vm293_vm0, %v1494_v21  ;;  %1517 = vadd.xlane.f32.xlu1 %v1516_v25  ;;  %v1495_v27 = vpack.c.bf16 %v1782_v26, %v1782_v26  ;;  %v1476_v28 = vpop.f32.mrb[3].mxu1  ;;  %v1525_v54 = vsel %vm514_vm12, %v1782_v26, 0.0 }
 0x1d3   : > { %1500 = vst.msk [vmem:[%s232_s26 + $0x10] sm:$0xf] %vm293_vm0, %v1492_v23  ;;  %v1493_v29 = vpack.c.bf16 %v1476_v28, %v1476_v28  ;;  %v1519_v43 = vsel %vm514_vm12, %v1476_v28, 0.0 }
 0x1d4   : > { %v1777_v30 = vpop.f32.mrb[0].mxu0  ;;  %1503 = vst.msk [vmem:[%s232_s26 + $0x1c] sm:$0xf] %vm293_vm0, %v1495_v27 }
 0x1d5   : > { %v1490_v31 = vpack.c.bf16 %v1777_v30, %v1777_v30  ;;  %v1457_v32 = vpop.f32.mrb[1].mxu0  ;;  %v1510_v33 = vsel %vm514_vm12, %v1777_v30, 0.0  ;;  %1501 = vst.msk [vmem:[%s232_s26 + $0x14] sm:$0xf] %vm293_vm0, %v1493_v29 }
 0x1d6   : > { %v1488_v34 = vpack.c.bf16 %v1457_v32, %v1457_v32  ;;  %1511 = vadd.xlane.f32.xlu0 %v1510_v33  ;;  %v1778_v35 = vpop.f32.mrb[2].mxu0  ;;  %v1504_v40 = vsel %vm514_vm12, %v1457_v32, 0.0 }
 0x1d7   : > { %1498 = vst.msk [vmem:[%s232_s26 + $0x8] sm:$0xf] %vm293_vm0, %v1490_v31  ;;  %v1491_v36 = vpack.c.bf16 %v1778_v35, %v1778_v35  ;;  %v1460_v37 = vpop.f32.mrb[3].mxu0  ;;  %v1513_v42 = vsel %vm514_vm12, %v1778_v35, 0.0 }
 0x1d8   : > { %1496 = vst.msk [vmem:[%s232_s26] sm:$0xf] %vm293_vm0, %v1488_v34  ;;  %v1489_v38 = vpack.c.bf16 %v1460_v37, %v1460_v37  ;;  %v1507_v39 = vsel %vm514_vm12, %v1460_v37, 0.0 }
 0x1d9   : > { %1499 = vst.msk [vmem:[%s232_s26 + $0xc] sm:$0xf] %vm293_vm0, %v1491_v36  ;;  %1508 = vadd.xlane.f32.xlu1 %v1507_v39 }
 0x1da   : > { %1497 = vst.msk [vmem:[%s232_s26 + $0x4] sm:$0xf] %vm293_vm0, %v1489_v38  ;;  %1505 = vadd.xlane.f32.xlu0 %v1504_v40  ;;  %vm1537_vm0 = vcmask 7168  }
 0x1dd   : > { %1523 = vadd.xlane.f32.xlu1 %v1522_v41 }
 0x1de   : > { %1514 = vadd.xlane.f32.xlu0 %v1513_v42 }
 0x1e2   : > { %1520 = vadd.xlane.f32.xlu0 %v1519_v43 }
 0x1e6   : > { %1526 = vadd.xlane.f32.xlu0 %v1525_v54 }
 0x25f   : > { %v1518_v44 = vpop.xlane.xlu1 %1517 }
 0x260   : > { %v1533_v45 = vmul.f32 0.125, %v1518_v44 }
 0x262   : > { %1542 = vst.msk [vmem:[%s237_s29 + $0x20] sm:$0xff] %vm1537_vm0, %v1533_v45 }
 0x263   : > { %v1512_v46 = vpop.xlane.xlu0 %1511 }
 0x264   : > { %v1531_v47 = vmul.f32 0.125, %v1512_v46 }
 0x266   : > { %1540 = vst.msk [vmem:[%s237_s29 + $0x10] sm:$0xff] %vm1537_vm0, %v1531_v47  ;;  %v1509_v48 = vpop.xlane.xlu1 %1508 }
 0x267   : > { %v1506_v49 = vpop.xlane.xlu0 %1505  ;;  %v1530_v50 = vmul.f32 0.125, %v1509_v48 }
 0x268   : > { %v1529_v51 = vmul.f32 0.125, %v1506_v49 }
 0x269   : > { %1539 = vst.msk [vmem:[%s237_s29 + $0x8] sm:$0xff] %vm1537_vm0, %v1530_v50 }
 0x26a   : > { %1538 = vst.msk [vmem:[%s237_s29] sm:$0xff] %vm1537_vm0, %v1529_v51  ;;  %v1524_v52 = vpop.xlane.xlu1 %1523 }
 0x26b   : > { %v1515_v53 = vpop.xlane.xlu0 %1514  ;;  %v1535_v55 = vmul.f32 0.125, %v1524_v52 }
 0x26c   : > { %v1532_v56 = vmul.f32 0.125, %v1515_v53 }
 0x26d   : > { %1544 = vst.msk [vmem:[%s237_s29 + $0x30] sm:$0xff] %vm1537_vm0, %v1535_v55 }
 0x26e   : > { %1541 = vst.msk [vmem:[%s237_s29 + $0x18] sm:$0xff] %vm1537_vm0, %v1532_v56 }
 0x26f   : > { %v1521_v6 = vpop.xlane.xlu0 %1520 }
 0x270   : > { %v1534_v24 = vmul.f32 0.125, %v1521_v6 }
 0x272   : > { %1543 = vst.msk [vmem:[%s237_s29 + $0x28] sm:$0xff] %vm1537_vm0, %v1534_v24 }
 0x273   : > { %v1527_v57 = vpop.xlane.xlu0 %1526 }
 0x274   : > { %v1536_v5 = vmul.f32 0.125, %v1527_v57 }
 0x276   : > { %1545 = vst.msk [vmem:[%s237_s29 + $0x38] sm:$0xff] %vm1537_vm0, %v1536_v5 }
 0x277 PF: > { %s16_s18 = sadd.s32 1, %s1835_s18  }
 0x278   : > { %p13_p4 = scmp.ge.s32.totalorder %s16_s18, 4  }
 0x27a   :  { %15 = sbr.rel (!%p13_p4) target bundleno = 1 (0x1), region = 80 }

</bundles_post_ra>
